<compile_context>
chip_gen: v6e
topology: v6e:2x2x1
jax: 0.10.0
libtpu: 0.0.40
codegen_flags: <defaults>
</compile_context>

<pallas_src>
import math

import jax
import jax.numpy as jnp
from jax.experimental import pallas as pl
from jax.experimental.pallas import tpu as pltpu

KSIZE = 5          # Conv2d kernel_size
PAD = 2            # Conv2d padding
COUT_PAD = 128     # output channels padded to one full lane group


# ----------------------------- Basic_layer kernel ------------------------------------------

def basic_layer_kernel(x_ref, w_ref, scale_ref, bias_ref, o_ref):
    """One grid step == one batch block.

    x_ref:     (B, H, W, Cin)        bf16  unpadded NHWC tile
    w_ref:     (Kp, 128)             bf16  conv weights, rows ordered (kh, kw, ci) (+ zero rows)
    scale_ref: (1, 128)              f32   gamma / sqrt(var + eps)       (0 in padded channels)
    bias_ref:  (1, 128)              f32   beta + (conv_b - mean)*scale  (0 in padded channels)
    o_ref:     (B, H//2, W//2, 128)  f32
    """
    B, H, W, Cin = x_ref.shape
    Cp = o_ref.shape[-1]
    Ho, Wo = H // 2, W // 2
    Kp = w_ref.shape[0]

    # ---- in-kernel zero padding (pad=2 on both spatial dims) ----
    x = x_ref[...]
    zw = jnp.zeros((B, H, PAD, Cin), x.dtype)
    xp = jnp.concatenate([zw, x, zw], axis=2)                    # (B, H,   W+4, Cin)
    zh = jnp.zeros((B, PAD, W + 2 * PAD, Cin), x.dtype)
    xp = jnp.concatenate([zh, xp, zh], axis=1)                   # (B, H+4, W+4, Cin)

    # ---- im2col: 5 kw-shifted views (sublane shifts), re-used for every kh (major slices) ----
    shifted = [xp[:, :, kw:kw + W, :] for kw in range(KSIZE)]    # each (B, H+4, W, Cin)
    cols = []
    for kh in range(KSIZE):
        for kw in range(KSIZE):
            cols.append(shifted[kw][:, kh:kh + H])               # (B, H, W, Cin)
    extra = Kp - KSIZE * KSIZE * Cin
    if extra > 0:                                                # keep K a multiple of 8
        cols.append(jnp.zeros((B, H, W, extra), x.dtype))
    patch = jnp.concatenate(cols, axis=-1)                       # (B, H, W, Kp)
    patch = patch.reshape(B * H * W, Kp)

    # ---- single MXU matmul: bf16 in, f32 accumulate ----
    acc = jnp.dot(patch, w_ref[...], preferred_element_type=jnp.float32)   # (B*H*W, 128)

    # ---- fused conv-bias + BatchNorm (eval) + ReLU, all f32 and full-lane ----
    y = jnp.maximum(acc * scale_ref[...] + bias_ref[...], 0.0)

    # ---- MaxPool2d(kernel_size=2, stride=2) ----
    y = y.reshape(B, Ho, 2, W, Cp)
    y = jnp.max(y, axis=2)                                       # H pairs (major axis)   -> (B, Ho, W, Cp)
    y = y.reshape(B, Ho, Wo, 2, Cp)
    y = jnp.max(y, axis=3)                                       # W pairs (sublane axis) -> (B, Ho, Wo, Cp)

    o_ref[...] = y.astype(o_ref.dtype)


def _pick_batch_block(n):
    """Block several images per grid step, but keep >= 2 steps when possible so the
    parallel batch axis can still be split across TensorCores on megacore parts (v7x)."""
    for blk in (8, 4, 2):
        if n % blk == 0 and n // blk >= 2:
            return blk
    return 1


def basic_layer_pallas(x_nhwc, lp):
    """Conv2d(5x5, pad=2) + Dropout(eval) + BatchNorm(eval) + ReLU + MaxPool(2).

    x_nhwc: (N, H, W, Cin) f32;  returns (N, H//2, W//2, Cout) f32.
    """
    N, H, W, Cin = x_nhwc.shape
    Cout = lp["conv_w"].shape[0]
    assert H % 2 == 0 and W % 2 == 0, "MaxPool2d(2) path assumes even spatial dims"
    assert Cout <= COUT_PAD
    Ho, Wo = H // 2, W // 2
    K = KSIZE * KSIZE * Cin
    Kp = ((K + 7) // 8) * 8

    # Fold conv bias + BatchNorm (eval / running stats) into per-channel scale & bias.
    inv_std = jax.lax.rsqrt(lp["bn_var"].astype(jnp.float32) + lp["bn_eps"])
    scale = lp["bn_gamma"].astype(jnp.float32) * inv_std
    bias = lp["bn_beta"].astype(jnp.float32) + \
        (lp["conv_b"].astype(jnp.float32) - lp["bn_mean"].astype(jnp.float32)) * scale

    # Weights -> (K, Cout) with rows ordered (kh, kw, ci); pad to (Kp, 128); bf16 for the MXU.
    w_hwio = jnp.transpose(lp["conv_w"], (2, 3, 1, 0))           # (5, 5, Cin, Cout)
    w_mat = w_hwio.reshape(K, Cout).astype(jnp.bfloat16)
    w_pad = jnp.zeros((Kp, COUT_PAD), jnp.bfloat16).at[:K, :Cout].set(w_mat)
    scale_pad = jnp.zeros((1, COUT_PAD), jnp.float32).at[0, :Cout].set(scale)
    bias_pad = jnp.zeros((1, COUT_PAD), jnp.float32).at[0, :Cout].set(bias)

    x_bf16 = x_nhwc.astype(jnp.bfloat16)                         # halves the input DMA bytes

    b_blk = _pick_batch_block(N)

    out_padded = pl.pallas_call(
        basic_layer_kernel,
        out_shape=jax.ShapeDtypeStruct((N, Ho, Wo, COUT_PAD), jnp.float32),
        grid=(N // b_blk,),
        in_specs=[
            pl.BlockSpec((b_blk, H, W, Cin), lambda n: (n, 0, 0, 0)),
            pl.BlockSpec((Kp, COUT_PAD), lambda n: (0, 0)),
            pl.BlockSpec((1, COUT_PAD), lambda n: (0, 0)),
            pl.BlockSpec((1, COUT_PAD), lambda n: (0, 0)),
        ],
        out_specs=pl.BlockSpec((b_blk, Ho, Wo, COUT_PAD), lambda n: (n, 0, 0, 0)),
        compiler_params=pltpu.CompilerParams(dimension_semantics=("parallel",)),
    )(x_bf16, w_pad, scale_pad, bias_pad)

    return out_padded[..., :Cout]                                # drop the lane padding


# ----------------------------- final Linear layer ------------------------------------------

def linear_kernel(x_ref, w_ref, b_ref, o_ref):
    """x: (N, F) f32, w: (1, F) f32, b: (1, 1) f32, o: (N, 1) f32."""
    o_ref[...] = jnp.sum(x_ref[...] * w_ref[...], axis=-1, keepdims=True) + b_ref[...]


def linear_pallas(x, w, b):
    N, F = x.shape
    w2 = w.reshape(1, F).astype(jnp.float32)
    b2 = b.reshape(1, 1).astype(jnp.float32)
    return pl.pallas_call(
        linear_kernel,
        out_shape=jax.ShapeDtypeStruct((N, 1), jnp.float32),
        grid=(1,),
        in_specs=[
            pl.BlockSpec((N, F), lambda i: (0, 0)),
            pl.BlockSpec((1, F), lambda i: (0, 0)),
            pl.BlockSpec((1, 1), lambda i: (0, 0)),
        ],
        out_specs=pl.BlockSpec((N, 1), lambda i: (0, 0)),
    )(x.astype(jnp.float32), w2, b2)


# ----------------------------- full network ------------------------------------------------

def cnn_net_forward(x_nchw, params):
    """PyTorch-compatible entry point: NCHW in, (N, 1) out."""
    x = jnp.transpose(x_nchw, (0, 2, 3, 1))                      # NCHW -> NHWC
    for lp in params["layers"]:
        x = basic_layer_pallas(x, lp)
    # flatten exactly like torch `x.view(-1, C*H*W)` (channel-major order)
    feat = jnp.transpose(x, (0, 3, 1, 2)).reshape(x.shape[0], -1)
    return linear_pallas(feat, params["fc_w"], params["fc_b"])


# ----------------------------- pure-JAX (XLA) reference ------------------------------------

def basic_layer_reference(x_nhwc, lp):
    w_hwio = jnp.transpose(lp["conv_w"], (2, 3, 1, 0))
    y = jax.lax.conv_general_dilated(
        x_nhwc, w_hwio, window_strides=(1, 1), padding=((PAD, PAD), (PAD, PAD)),
        dimension_numbers=("NHWC", "HWIO", "NHWC"),
        precision=jax.lax.Precision.HIGHEST)
    y = y + lp["conv_b"]
    y = (y - lp["bn_mean"]) * jax.lax.rsqrt(lp["bn_var"] + lp["bn_eps"])
    y = y * lp["bn_gamma"] + lp["bn_beta"]
    y = jnp.maximum(y, 0.0)
    y = jax.lax.reduce_window(y, -jnp.inf, jax.lax.max,
                              (1, 2, 2, 1), (1, 2, 2, 1), "VALID")
    return y


def cnn_net_reference(x_nchw, params):
    x = jnp.transpose(x_nchw, (0, 2, 3, 1))
    for lp in params["layers"]:
        x = basic_layer_reference(x, lp)
    feat = jnp.transpose(x, (0, 3, 1, 2)).reshape(x.shape[0], -1)
    return feat @ params["fc_w"].T + params["fc_b"]


# ----------------------------- demo / self-test ---------------------------------------------

if __name__ == "__main__":
    # Small shapes consistent with the module (the real net expects 720p inputs and a Linear
    # sized 64*160*90; here the Linear is sized to the toy activations).
    N, CIN, H, W = 2, 4, 16, 16
    channels = [CIN, 16, 32, 64]

    key = jax.random.PRNGKey(0)
    key, kx = jax.random.split(key)
    x = jax.random.normal(kx, (N, CIN, H, W), dtype=jnp.float32)     # NCHW, like PyTorch

    layers = []
    for li in range(3):
        cin, cout = channels[li], channels[li + 1]
        key, kw, kb, kg, kbe, km, kv = jax.random.split(key, 7)
        wstd = math.sqrt(2.0 / (KSIZE * KSIZE * cout))               # CNN_Net._initialize_weights
        layers.append({
            "conv_w": jax.random.normal(kw, (cout, cin, KSIZE, KSIZE), jnp.float32) * wstd,
            "conv_b": jax.random.normal(kb, (cout,), jnp.float32) * 0.1,
            "bn_gamma": jax.random.uniform(kg, (cout,), jnp.float32, 0.5, 1.5),
            "bn_beta": jax.random.normal(kbe, (cout,), jnp.float32) * 0.1,
            "bn_mean": jax.random.normal(km, (cout,), jnp.float32) * 0.1,
            "bn_var": jax.random.uniform(kv, (cout,), jnp.float32, 0.5, 1.5),
            "bn_eps": 1e-5,
        })

    feat_dim = channels[-1] * (H // 8) * (W // 8)                    # 64*2*2 at toy scale
    key, kfw = jax.random.split(key)
    params = {
        "layers": layers,
        "fc_w": jax.random.normal(kfw, (1, feat_dim), jnp.float32) * 0.01,
        "fc_b": jnp.zeros((1,), jnp.float32),
    }

    # per-layer check against the XLA reference (bf16 MXU inputs -> loosened tolerance)
    x_pal = jnp.transpose(x, (0, 2, 3, 1))
    x_chk = x_pal
    for li, lp in enumerate(params["layers"]):
        x_pal = basic_layer_pallas(x_pal, lp)
        x_chk = basic_layer_reference(x_chk, lp)
        assert x_pal.shape == x_chk.shape, (x_pal.shape, x_chk.shape)
        assert jnp.allclose(x_pal, x_chk, rtol=5e-2, atol=5e-2), \
            f"layer {li}: max abs err = {jnp.max(jnp.abs(x_pal - x_chk))}"

    out = jax.block_until_ready(cnn_net_forward(x, params))
    ref = jax.block_until_ready(cnn_net_reference(x, params))

    assert out.shape == (N, 1), out.shape
    assert jnp.allclose(out, ref, rtol=5e-2, atol=5e-2), \
        f"max abs err = {jnp.max(jnp.abs(out - ref))}"

    print("KERNEL_OK")
</pallas_src>

<mosaic_0001>
module attributes {stable_mosaic.version = 11 : i64} {
  func.func @basic_layer_kernel(%arg0: i32, %arg1: memref<1x16x16x4xbf16, #tpu.memory_space<vmem>>, %arg2: memref<104x128xbf16, #tpu.memory_space<vmem>>, %arg3: memref<1x128xf32, #tpu.memory_space<vmem>>, %arg4: memref<1x128xf32, #tpu.memory_space<vmem>>, %arg5: memref<1x8x8x128xf32, #tpu.memory_space<vmem>>) attributes {dimension_semantics = [#tpu.dimension_semantics<parallel>], iteration_bounds = array<i64: 2>, scalar_prefetch = 0 : i64, scratch_operands = 0 : i64, tpu.core_type = #tpu.core_type<tc>, window_params = [{transform_indices = @transform_0, window_bounds = array<i64: 1, 16, 16, 4>}, {pipeline_mode = #tpu.pipeline_mode<synchronous>, transform_indices = @transform_1, window_bounds = array<i64: 104, 128>}, {pipeline_mode = #tpu.pipeline_mode<synchronous>, transform_indices = @transform_2, window_bounds = array<i64: 1, 128>}, {pipeline_mode = #tpu.pipeline_mode<synchronous>, transform_indices = @transform_3, window_bounds = array<i64: 1, 128>}, {transform_indices = @transform_4, window_bounds = array<i64: 1, 8, 8, 128>}]} {
    %c0 = arith.constant 0 : index
    %c0_0 = arith.constant 0 : index
    %c0_1 = arith.constant 0 : index
    %c0_2 = arith.constant 0 : index
    %0 = vector.load %arg1[%c0, %c0_0, %c0_1, %c0_2] : memref<1x16x16x4xbf16, #tpu.memory_space<vmem>>, vector<1x16x16x4xbf16>
    %cst = arith.constant 0.000000e+00 : bf16
    %1 = vector.broadcast %cst : bf16 to vector<1x16x2x4xbf16>
    %2 = tpu.concatenate %1, %0, %1 in 2 : vector<1x16x2x4xbf16>, vector<1x16x16x4xbf16>, vector<1x16x2x4xbf16> -> vector<1x16x20x4xbf16>
    %cst_3 = arith.constant 0.000000e+00 : bf16
    %3 = vector.broadcast %cst_3 : bf16 to vector<1x2x20x4xbf16>
    %4 = tpu.concatenate %3, %2, %3 in 1 : vector<1x2x20x4xbf16>, vector<1x16x20x4xbf16>, vector<1x2x20x4xbf16> -> vector<1x20x20x4xbf16>
    %5 = vector.extract_strided_slice %4 {offsets = [0, 0, 0, 0], sizes = [1, 20, 16, 4], strides = [1, 1, 1, 1]} : vector<1x20x20x4xbf16> to vector<1x20x16x4xbf16>
    %6 = vector.extract_strided_slice %4 {offsets = [0, 0, 1, 0], sizes = [1, 20, 16, 4], strides = [1, 1, 1, 1]} : vector<1x20x20x4xbf16> to vector<1x20x16x4xbf16>
    %7 = vector.extract_strided_slice %4 {offsets = [0, 0, 2, 0], sizes = [1, 20, 16, 4], strides = [1, 1, 1, 1]} : vector<1x20x20x4xbf16> to vector<1x20x16x4xbf16>
    %8 = vector.extract_strided_slice %4 {offsets = [0, 0, 3, 0], sizes = [1, 20, 16, 4], strides = [1, 1, 1, 1]} : vector<1x20x20x4xbf16> to vector<1x20x16x4xbf16>
    %9 = vector.extract_strided_slice %4 {offsets = [0, 0, 4, 0], sizes = [1, 20, 16, 4], strides = [1, 1, 1, 1]} : vector<1x20x20x4xbf16> to vector<1x20x16x4xbf16>
    %10 = vector.extract_strided_slice %5 {offsets = [0, 0, 0, 0], sizes = [1, 16, 16, 4], strides = [1, 1, 1, 1]} : vector<1x20x16x4xbf16> to vector<1x16x16x4xbf16>
    %11 = vector.extract_strided_slice %6 {offsets = [0, 0, 0, 0], sizes = [1, 16, 16, 4], strides = [1, 1, 1, 1]} : vector<1x20x16x4xbf16> to vector<1x16x16x4xbf16>
    %12 = vector.extract_strided_slice %7 {offsets = [0, 0, 0, 0], sizes = [1, 16, 16, 4], strides = [1, 1, 1, 1]} : vector<1x20x16x4xbf16> to vector<1x16x16x4xbf16>
    %13 = vector.extract_strided_slice %8 {offsets = [0, 0, 0, 0], sizes = [1, 16, 16, 4], strides = [1, 1, 1, 1]} : vector<1x20x16x4xbf16> to vector<1x16x16x4xbf16>
    %14 = vector.extract_strided_slice %9 {offsets = [0, 0, 0, 0], sizes = [1, 16, 16, 4], strides = [1, 1, 1, 1]} : vector<1x20x16x4xbf16> to vector<1x16x16x4xbf16>
    %15 = vector.extract_strided_slice %5 {offsets = [0, 1, 0, 0], sizes = [1, 16, 16, 4], strides = [1, 1, 1, 1]} : vector<1x20x16x4xbf16> to vector<1x16x16x4xbf16>
    %16 = vector.extract_strided_slice %6 {offsets = [0, 1, 0, 0], sizes = [1, 16, 16, 4], strides = [1, 1, 1, 1]} : vector<1x20x16x4xbf16> to vector<1x16x16x4xbf16>
    %17 = vector.extract_strided_slice %7 {offsets = [0, 1, 0, 0], sizes = [1, 16, 16, 4], strides = [1, 1, 1, 1]} : vector<1x20x16x4xbf16> to vector<1x16x16x4xbf16>
    %18 = vector.extract_strided_slice %8 {offsets = [0, 1, 0, 0], sizes = [1, 16, 16, 4], strides = [1, 1, 1, 1]} : vector<1x20x16x4xbf16> to vector<1x16x16x4xbf16>
    %19 = vector.extract_strided_slice %9 {offsets = [0, 1, 0, 0], sizes = [1, 16, 16, 4], strides = [1, 1, 1, 1]} : vector<1x20x16x4xbf16> to vector<1x16x16x4xbf16>
    %20 = vector.extract_strided_slice %5 {offsets = [0, 2, 0, 0], sizes = [1, 16, 16, 4], strides = [1, 1, 1, 1]} : vector<1x20x16x4xbf16> to vector<1x16x16x4xbf16>
    %21 = vector.extract_strided_slice %6 {offsets = [0, 2, 0, 0], sizes = [1, 16, 16, 4], strides = [1, 1, 1, 1]} : vector<1x20x16x4xbf16> to vector<1x16x16x4xbf16>
    %22 = vector.extract_strided_slice %7 {offsets = [0, 2, 0, 0], sizes = [1, 16, 16, 4], strides = [1, 1, 1, 1]} : vector<1x20x16x4xbf16> to vector<1x16x16x4xbf16>
    %23 = vector.extract_strided_slice %8 {offsets = [0, 2, 0, 0], sizes = [1, 16, 16, 4], strides = [1, 1, 1, 1]} : vector<1x20x16x4xbf16> to vector<1x16x16x4xbf16>
    %24 = vector.extract_strided_slice %9 {offsets = [0, 2, 0, 0], sizes = [1, 16, 16, 4], strides = [1, 1, 1, 1]} : vector<1x20x16x4xbf16> to vector<1x16x16x4xbf16>
    %25 = vector.extract_strided_slice %5 {offsets = [0, 3, 0, 0], sizes = [1, 16, 16, 4], strides = [1, 1, 1, 1]} : vector<1x20x16x4xbf16> to vector<1x16x16x4xbf16>
    %26 = vector.extract_strided_slice %6 {offsets = [0, 3, 0, 0], sizes = [1, 16, 16, 4], strides = [1, 1, 1, 1]} : vector<1x20x16x4xbf16> to vector<1x16x16x4xbf16>
    %27 = vector.extract_strided_slice %7 {offsets = [0, 3, 0, 0], sizes = [1, 16, 16, 4], strides = [1, 1, 1, 1]} : vector<1x20x16x4xbf16> to vector<1x16x16x4xbf16>
    %28 = vector.extract_strided_slice %8 {offsets = [0, 3, 0, 0], sizes = [1, 16, 16, 4], strides = [1, 1, 1, 1]} : vector<1x20x16x4xbf16> to vector<1x16x16x4xbf16>
    %29 = vector.extract_strided_slice %9 {offsets = [0, 3, 0, 0], sizes = [1, 16, 16, 4], strides = [1, 1, 1, 1]} : vector<1x20x16x4xbf16> to vector<1x16x16x4xbf16>
    %30 = vector.extract_strided_slice %5 {offsets = [0, 4, 0, 0], sizes = [1, 16, 16, 4], strides = [1, 1, 1, 1]} : vector<1x20x16x4xbf16> to vector<1x16x16x4xbf16>
    %31 = vector.extract_strided_slice %6 {offsets = [0, 4, 0, 0], sizes = [1, 16, 16, 4], strides = [1, 1, 1, 1]} : vector<1x20x16x4xbf16> to vector<1x16x16x4xbf16>
    %32 = vector.extract_strided_slice %7 {offsets = [0, 4, 0, 0], sizes = [1, 16, 16, 4], strides = [1, 1, 1, 1]} : vector<1x20x16x4xbf16> to vector<1x16x16x4xbf16>
    %33 = vector.extract_strided_slice %8 {offsets = [0, 4, 0, 0], sizes = [1, 16, 16, 4], strides = [1, 1, 1, 1]} : vector<1x20x16x4xbf16> to vector<1x16x16x4xbf16>
    %34 = vector.extract_strided_slice %9 {offsets = [0, 4, 0, 0], sizes = [1, 16, 16, 4], strides = [1, 1, 1, 1]} : vector<1x20x16x4xbf16> to vector<1x16x16x4xbf16>
    %cst_4 = arith.constant 0.000000e+00 : bf16
    %35 = vector.broadcast %cst_4 : bf16 to vector<1x16x16x4xbf16>
    %36 = tpu.concatenate %10, %11, %12, %13, %14, %15, %16, %17, %18, %19, %20, %21, %22, %23, %24, %25 in 3 : vector<1x16x16x4xbf16>, vector<1x16x16x4xbf16>, vector<1x16x16x4xbf16>, vector<1x16x16x4xbf16>, vector<1x16x16x4xbf16>, vector<1x16x16x4xbf16>, vector<1x16x16x4xbf16>, vector<1x16x16x4xbf16>, vector<1x16x16x4xbf16>, vector<1x16x16x4xbf16>, vector<1x16x16x4xbf16>, vector<1x16x16x4xbf16>, vector<1x16x16x4xbf16>, vector<1x16x16x4xbf16>, vector<1x16x16x4xbf16>, vector<1x16x16x4xbf16> -> vector<1x16x16x64xbf16>
    %37 = tpu.concatenate %26, %27, %28, %29, %30, %31, %32, %33, %34, %35 in 3 : vector<1x16x16x4xbf16>, vector<1x16x16x4xbf16>, vector<1x16x16x4xbf16>, vector<1x16x16x4xbf16>, vector<1x16x16x4xbf16>, vector<1x16x16x4xbf16>, vector<1x16x16x4xbf16>, vector<1x16x16x4xbf16>, vector<1x16x16x4xbf16>, vector<1x16x16x4xbf16> -> vector<1x16x16x40xbf16>
    %38 = tpu.concatenate %36, %37 in 3 : vector<1x16x16x64xbf16>, vector<1x16x16x40xbf16> -> vector<1x16x16x104xbf16>
    %39 = vector.shape_cast %38 : vector<1x16x16x104xbf16> to vector<256x104xbf16>
    %c0_5 = arith.constant 0 : index
    %c0_6 = arith.constant 0 : index
    %40 = vector.load %arg2[%c0_5, %c0_6] : memref<104x128xbf16, #tpu.memory_space<vmem>>, vector<104x128xbf16>
    %cst_7 = arith.constant dense<0.000000e+00> : vector<256x128xf32>
    %41 = tpu.matmul %39, %40, %cst_7 {dimension_numbers = #tpu.dot_dimension_numbers<[1], [0], [0], [1], [0, 0, 1, 1], [], []>} : vector<256x104xbf16>, vector<104x128xbf16>, vector<256x128xf32> -> vector<256x128xf32>
    %c0_8 = arith.constant 0 : index
    %c0_9 = arith.constant 0 : index
    %42 = vector.load %arg3[%c0_8, %c0_9] : memref<1x128xf32, #tpu.memory_space<vmem>>, vector<1x128xf32>
    %43 = vector.broadcast %42 : vector<1x128xf32> to vector<256x128xf32>
    %44 = arith.mulf %41, %43 : vector<256x128xf32>
    %c0_10 = arith.constant 0 : index
    %c0_11 = arith.constant 0 : index
    %45 = vector.load %arg4[%c0_10, %c0_11] : memref<1x128xf32, #tpu.memory_space<vmem>>, vector<1x128xf32>
    %46 = vector.broadcast %45 : vector<1x128xf32> to vector<256x128xf32>
    %47 = arith.addf %44, %46 : vector<256x128xf32>
    %cst_12 = arith.constant 0.000000e+00 : f32
    %48 = vector.broadcast %cst_12 : f32 to vector<256x128xf32>
    %49 = arith.maximumf %47, %48 : vector<256x128xf32>
    %50 = vector.shape_cast %49 : vector<256x128xf32> to vector<1x8x2x16x128xf32>
    %cst_13 = arith.constant dense<0xFF800000> : vector<1x8x16x128xf32>
    %51 = vector.multi_reduction <maximumf>, %50, %cst_13 [2] : vector<1x8x2x16x128xf32> to vector<1x8x16x128xf32>
    %52 = vector.shape_cast %51 : vector<1x8x16x128xf32> to vector<1x8x8x2x128xf32>
    %cst_14 = arith.constant dense<0xFF800000> : vector<1x8x8x128xf32>
    %53 = vector.multi_reduction <maximumf>, %52, %cst_14 [3] : vector<1x8x8x2x128xf32> to vector<1x8x8x128xf32>
    %c0_15 = arith.constant 0 : index
    %c0_16 = arith.constant 0 : index
    %c0_17 = arith.constant 0 : index
    %c0_18 = arith.constant 0 : index
    %54 = vector.load %arg5[%c0_15, %c0_16, %c0_17, %c0_18] : memref<1x8x8x128xf32, #tpu.memory_space<vmem>>, vector<1x8x8x128xf32>
    tpu.vector_store %arg5[%c0_15, %c0_16, %c0_17, %c0_18], %53 {strides = array<i32>} : memref<1x8x8x128xf32, #tpu.memory_space<vmem>>, vector<1x8x8x128xf32>,
    return
  }
  func.func @transform_0(%arg0: i32) -> (i32, i32, i32, i32) {
    %c0_i32 = arith.constant 0 : i32
    %c0_i32_0 = arith.constant 0 : i32
    %c0_i32_1 = arith.constant 0 : i32
    %c0_i32_2 = arith.constant 0 : i32
    return %arg0, %c0_i32, %c0_i32_0, %c0_i32_1 : i32, i32, i32, i32
  }
  func.func @transform_1(%arg0: i32) -> (i32, i32) {
    %c0_i32 = arith.constant 0 : i32
    %c0_i32_0 = arith.constant 0 : i32
    %c0_i32_1 = arith.constant 0 : i32
    return %c0_i32, %c0_i32_0 : i32, i32
  }
  func.func @transform_2(%arg0: i32) -> (i32, i32) {
    %c0_i32 = arith.constant 0 : i32
    %c0_i32_0 = arith.constant 0 : i32
    %c0_i32_1 = arith.constant 0 : i32
    return %c0_i32, %c0_i32_0 : i32, i32
  }
  func.func @transform_3(%arg0: i32) -> (i32, i32) {
    %c0_i32 = arith.constant 0 : i32
    %c0_i32_0 = arith.constant 0 : i32
    %c0_i32_1 = arith.constant 0 : i32
    return %c0_i32, %c0_i32_0 : i32, i32
  }
  func.func @transform_4(%arg0: i32) -> (i32, i32, i32, i32) {
    %c0_i32 = arith.constant 0 : i32
    %c0_i32_0 = arith.constant 0 : i32
    %c0_i32_1 = arith.constant 0 : i32
    %c0_i32_2 = arith.constant 0 : i32
    return %arg0, %c0_i32, %c0_i32_0, %c0_i32_1 : i32, i32, i32, i32
  }
}

</mosaic_0001>

<bundles_post_ra>
// kernel: tpu_custom_call.1
= control target key start
LH: loop header
LB: loop body
LE: loop exit
PB: predicated region body
PF: predicated region fallthrough
CT: control target
= control target key end

     0   :  { %9 = vsyncpa [#allocation3], 0  ;;  %s8113_s0 = inlined_call_operand.vmem [shape: bf16[2,16,16,4], index: 0, kind: input, shape index: {}]   ;;  %s8114_s1 = inlined_call_operand.vmem [shape: bf16[104,128], index: 1, kind: input, shape index: {}]   ;;  %s8115_s2 = inlined_call_operand.vmem [shape: f32[1,128], index: 2, kind: input, shape index: {}]   ;;  %s8116_s3 = inlined_call_operand.vmem [shape: f32[1,128], index: 3, kind: input, shape index: {}]   ;;  %s8117_s4 = inlined_call_operand.hbm [shape: f32[2,8,8,128], index: 4, kind: output, shape index: {}]  }
   0x1   :  { %11 = vsyncpa [#allocation3 + $0x1], 0  ;;  %s4479_s15 = smov 0   ;;  %s4481_s16 = smov 0  }
   0x2   :  { %s4483_s17 = smov 0   ;;  %s4485_s18 = smov 0  }
   0x3 LB: > { %s4500_s19 = sadd.s32 4294967295, %s4432_s18   ;;  %s4124_s20 = sadd.s32 4294967294, %s4432_s18   ;;  %s4432_s18 = sphi %s4485_s18, %s9321_s18   ;;  %s4428_s17 = sphi %s4483_s17, %s9320_s17   ;;  %s4424_s16 = sphi %s4481_s16, %s9319_s16   ;;  %s4420_s15 = sphi %s4479_s15, %s9318_s15  }
   0x4   : > { %s4504_s21 = sadd.s32 1, %s4432_s18   ;;  %s113_s22 = sadd.s32 1, %s4428_s17 }
   0x5   : > { %s110_s23 = ssub.s32 %s4432_s18, %s4504_s21  ;;  %p123_p0 = scmp.ne.s32.totalorder %s4428_s17, %s4424_s16 }
   0x6   : > { %p111_p1 = scmp.eq.s32.totalorder %s110_s23, 0  ;;  %p124_p2 = scmp.eq.s32.totalorder %s4500_s19, 1 }
   0x7   : > { %p129_p3 = scmp.ne.s32.totalorder %s4424_s16, %s4420_s15  ;;  %p130_p4 = scmp.eq.s32.totalorder %s4124_s20, 1 }
   0x8   : > { %s4515_s24 = scalar_select %p111_p1, %s4428_s17, %s113_s22  }
   0x9   : > { %p4517_p5 = por %p124_p2, %p123_p0  ;;  %p4521_p6 = por %p130_p4, %p129_p3 }
   0xa   : > { %p4127_p7 = scmp.ge.s32.totalorder %s4432_s18, 1  ;;  %p165_p8 = scmp.lt.s32.totalorder %s4432_s18, 3 }
   0xc   : > { %p166_p9 = pnand %p4127_p7, %p165_p8 }
   0xe   : > { %169 = sbr.rel (%p166_p9) target bundleno = 1264 (0x4f0), region = 36 }
  0x13   : > { %p191_p10 = scmp.lt.s32.totalorder %s4500_s19, 1  ;;  %v8127_v0 = vmov 0   ;;  %s4435_s29 = smov 4   ;;  %vm375_vm0 = vsmask.f32 7424  ;;  %vm325_vm1 = vcmask 1040384  }
  0x14   : > { %v4529_v1 = vrot.slane %v8127_v0, 1  ;;  %vm582_vm2 = vcmask 1046528   ;;  %s4436_s7 = smov 8   ;;  %vm657_vm3 = vsmask.f32 6400  ;;  %s4437_s8 = smov 12  }
  0x15   : > { %s192_s27 = scalar_select %p191_p10, %s4500_s19, 1  ;;  %vm818_vm4 = vcmask 1045504   ;;  %vm1299_vm5 = vcmask 31744   ;;  %vm1330_vm6 = vcmask 64512   ;;  %vm1361_vm7 = vcmask 97280  }
  0x16   : > { %8473 = vst [vmem:[#allocation5_spill] sm:$0xff] %v4529_v1  ;;  %v4534_v2 = vpack.i.bf16 %v8127_v0, %v4529_v1  ;;  %s4438_s9 = smov 16   ;;  %s4439_s10 = smov 20   ;;  %vm1392_vm8 = vcmask 130048   ;;  %vm1423_vm9 = vcmask 162816   ;;  %vm1456_vm10 = vcmask 195584  }
  0x17   : > { %s4177_s28 = sshll.u32 %s192_s27, 7  ;;  %s4440_s11 = smov 24   ;;  %vm1489_vm11 = vcmask 228352   ;;  %vm8470_vm12 = vcmask 261120   ;;  %vm1555_vm13 = vcmask 293888   ;;  %vm1588_vm14 = vcmask 326656  }
  0x18   : > { %8474 = vst [vmem:[#allocation6_spill] sm:$0xff] %v4534_v2  ;;  %4323 = vrot.lane.b32.xlu0 %v4534_v2, %s4435_s29  ;;  %s4541_s6 = scalar_lea.vmem %s8113_s0, %s4177_s28  ;;  %s4441_s12 = smov 28   ;;  %vm1621_vm15 = vcmask 359424  }
  0x19   : > { %v4347_v3 = vld [vmem:[%s4541_s6 + $0x8] sm:$0xff]   ;;  %v4348_v4 = vld [vmem:[%s4541_s6] sm:$0xff]   ;;  %v4349_v6 = vld [vmem:[%s4541_s6 + $0x10] sm:$0xff]   ;;  %s4442_s13 = smov 32   ;;  %s4443_s14 = smov 36  }
  0x1a   : > { %v310_v5 = vrot.slane %v4347_v3, 7  ;;  %v309_v7 = vrot.slane %v4348_v4, 7  ;;  %v4350_v8 = vld [vmem:[%s4541_s6 + $0x18] sm:$0xff]   ;;  %v311_v11 = vrot.slane %v4349_v6, 7  ;;  %v4351_v12 = vld [vmem:[%s4541_s6 + $0x20] sm:$0xff]   ;;  %v4352_v29 = vld [vmem:[%s4541_s6 + $0x28] sm:$0xff]  }
  0x1b   : > { %v312_v32 = vrot.slane %v4350_v8, 7  ;;  %v313_v33 = vrot.slane %v4351_v12, 7  ;;  %v314_v37 = vrot.slane %v4352_v29, 7  ;;  %v4353_v42 = vld [vmem:[%s4541_s6 + $0x30] sm:$0xff]   ;;  %v4354_v43 = vld [vmem:[%s4541_s6 + $0x38] sm:$0xff]   ;;  %v4355_v44 = vld [vmem:[%s4541_s6 + $0x40] sm:$0xff]  }
  0x1c   : > { %v4548_v9 = vsel %vm325_vm1, 0, %v310_v5  ;;  %v4551_v10 = vsel %vm325_vm1, %v310_v5, 0  ;;  %v4558_v16 = vsel %vm325_vm1, 0, %v309_v7  ;;  %v4561_v17 = vsel %vm325_vm1, %v309_v7, 0  ;;  %v4356_v57 = vld [vmem:[%s4541_s6 + $0x48] sm:$0xff]   ;;  %s4444_s20 = smov 40  }
  0x1d   : > { %8475 = vst [vmem:[#allocation7_spill] sm:$0xff] %v4548_v9  ;;  %8476 = vst [vmem:[#allocation8_spill] sm:$0xff] %v4551_v10  ;;  %v8133_v13 = vshrl.u32 %v4548_v9, 16  ;;  %v8131_v14 = vshll.u32 %v4548_v9, 16  ;;  %v8130_v15 = vshll.u32 %v4551_v10, 16  ;;  %v8126_v18 = vshrl.u32 %v4558_v16, 16 }
  0x1e   : > { %8477 = vst [vmem:[#allocation9_spill] sm:$0xff] %v4558_v16  ;;  %v8125_v19 = vshll.u32 %v4558_v16, 16  ;;  %v4566_v20 = vsel %vm325_vm1, 0, %v311_v11  ;;  %v8124_v23 = vshll.u32 %v4561_v17, 16  ;;  %v4574_v24 = vsel %vm325_vm1, %v311_v11, 0  ;;  %s4445_s22 = smov 44  }
  0x1f   : > { %8478 = vst [vmem:[#allocation10_spill] sm:$0xff] %v4566_v20  ;;  %v397_v21 = vrot.slane %v8131_v14, 1  ;;  %v401_v22 = vrot.slane %v8130_v15, 1  ;;  %8479 = vst [vmem:[#allocation11_spill] sm:$0xff] %v4574_v24  ;;  %v4579_v26 = vshrl.u32 %v4566_v20, 16  ;;  %v4582_v27 = vshll.u32 %v4566_v20, 16 }
  0x20   : > { %v387_v25 = vrot.slane %v8125_v19, 1  ;;  %v8122_v28 = vshll.u32 %v4574_v24, 16  ;;  %v391_v31 = vrot.slane %v8124_v23, 1  ;;  %v4599_v39 = vsel %vm325_vm1, 0, %v312_v32  ;;  %s4446_s23 = smov 48   ;;  %s4447_s27 = smov 52  }
  0x21   : > { %8480 = vst [vmem:[#allocation12_spill] sm:$0xff] %v4579_v26  ;;  %8481 = vst [vmem:[#allocation13_spill] sm:$0xff] %v4582_v27  ;;  %v398_v30 = vor.u32 %v397_v21, %v8133_v13  ;;  %v407_v35 = vrot.slane %v4582_v27, 1  ;;  %v4602_v40 = vsel %vm325_vm1, %v312_v32, 0  ;;  %v4605_v41 = vsel %vm325_vm1, 0, %v313_v33  ;;  %s4448_s28 = smov 56  }
  0x22   : > { %v388_v34 = vor.u32 %v387_v25, %v8126_v18  ;;  %v411_v36 = vrot.slane %v8122_v28, 1  ;;  %8483 = vst [vmem:[#allocation15_spill] sm:$0xff] %v4599_v39  ;;  %8484 = vst [vmem:[#allocation16_spill] sm:$0xff] %v4602_v40  ;;  %v4617_v47 = vshrl.u32 %v4599_v39, 16  ;;  %v4620_v48 = vshll.u32 %v4599_v39, 16  ;;  %s4452_s30 = smov [#allocation2]  }
  0x23   : > { %v4596_v38 = vsel %vm375_vm0, %v398_v30, %v401_v22  ;;  %8485 = vst [vmem:[#allocation17_spill] sm:$0xff] %v4605_v41  ;;  %v408_v46 = vor.u32 %v407_v35, %v4579_v26  ;;  %v8121_v49 = vshll.u32 %v4602_v40, 16  ;;  %v4626_v50 = vsel %vm325_vm1, %v313_v33, 0  ;;  %s4376_s5 = sshll.u32 %s4452_s30, 4  ;;  %s4377_s5 = int_to_ptr.vmem [resolvable:$false] %s4376_s5 }
  0x24   : > { %8482 = vst [vmem:[#allocation14_spill] sm:$0xff] %v4596_v38  ;;  %527 = vrot.lane.b32.xlu1 %v4596_v38, %s4435_s29  ;;  %v4613_v45 = vsel %vm375_vm0, %v388_v34, %v391_v31  ;;  %8487 = vst [vmem:[#allocation19_spill] sm:$0xff] %v4617_v47  ;;  %v4629_v51 = vshrl.u32 %v4605_v41, 16  ;;  %v4632_v52 = vshll.u32 %v4605_v41, 16  ;;  %v417_v54 = vrot.slane %v4620_v48, 1 }
  0x25   : > { %8486 = vst [vmem:[#allocation18_spill] sm:$0xff] %v4613_v45  ;;  %8488 = vst [vmem:[#allocation20_spill] sm:$0xff] %v4620_v48  ;;  %525 = vrot.lane.b32.xlu0 %v4613_v45, %s4435_s29  ;;  %v4635_v53 = vsel %vm375_vm0, %v408_v46, %v411_v36  ;;  %v8120_v55 = vshll.u32 %v4626_v50, 16  ;;  %v4640_v56 = vsel %vm325_vm1, 0, %v314_v37  ;;  %v421_v58 = vrot.slane %v8121_v49, 1  ;;  %v4358_v46 = vld [vmem:[%s4541_s6 + $0x58] sm:$0xff]  }
  0x26   : > { %8489 = vst [vmem:[#allocation21_spill] sm:$0xff] %v4626_v50  ;;  %8490 = vst [vmem:[#allocation22_spill] sm:$0xff] %v4629_v51  ;;  %v427_v59 = vrot.slane %v4632_v52, 1  ;;  %v4647_v60 = vsel %vm325_vm1, %v314_v37, 0  ;;  %v4650_v61 = vshrl.u32 %v4640_v56, 16  ;;  %v418_v62 = vor.u32 %v417_v54, %v4617_v47 }
  0x27   : > { %8491 = vst [vmem:[#allocation23_spill] sm:$0xff] %v4632_v52  ;;  %8492 = vst [vmem:[#allocation24_spill] sm:$0xff] %v4635_v53  ;;  %v431_v63 = vrot.slane %v8120_v55, 1  ;;  %v4658_v3 = vshll.u32 %v4640_v56, 16  ;;  %v8119_v4 = vshll.u32 %v4647_v60, 16  ;;  %v315_v6 = vrot.slane %v4353_v42, 7 }
  0x28   : > { %8493 = vst [vmem:[#allocation25_spill] sm:$0xff] %v4640_v56  ;;  %8494 = vst [vmem:[#allocation26_spill] sm:$0xff] %v4647_v60  ;;  %529 = vrot.lane.b32.xlu1 %v4635_v53, %s4435_s29  ;;  %v428_v5 = vor.u32 %v427_v59, %v4629_v51  ;;  %v316_v7 = vrot.slane %v4354_v43, 7  ;;  %v317_v8 = vrot.slane %v4355_v44, 7  ;;  %v4663_v11 = vsel %vm375_vm0, %v418_v62, %v421_v58  ;;  %v4357_v44 = vld [vmem:[%s4541_s6 + $0x50] sm:$0xff]   ;;  %v4359_v62 = vld [vmem:[%s4541_s6 + $0x60] sm:$0xff]  }
  0x29   : > { %8495 = vst [vmem:[#allocation27_spill] sm:$0xff] %v4650_v61  ;;  %8496 = vst [vmem:[#allocation28_spill] sm:$0xff] %v4658_v3  ;;  %v437_v12 = vrot.slane %v4658_v3, 1  ;;  %v441_v21 = vrot.slane %v8119_v4, 1  ;;  %v318_v22 = vrot.slane %v4356_v57, 7  ;;  %531 = vrot.lane.b32.xlu0 %v4663_v11, %s4435_s29  ;;  %v4674_v29 = vsel %vm325_vm1, 0, %v315_v6 }
  0x2a   : > { %8497 = vst [vmem:[#allocation29_spill] sm:$0xff] %v4663_v11  ;;  %v4671_v25 = vsel %vm375_vm0, %v428_v5, %v431_v63  ;;  %8499 = vst [vmem:[#allocation31_spill] sm:$0xff] %v4674_v29  ;;  %v4677_v30 = vsel %vm325_vm1, %v315_v6, 0  ;;  %v4680_v31 = vsel %vm325_vm1, 0, %v316_v7  ;;  %v4686_v33 = vshrl.u32 %v4674_v29, 16  ;;  %v4360_v4 = vld [vmem:[%s4541_s6 + $0x68] sm:$0xff]  }
  0x2b   : > { %8498 = vst [vmem:[#allocation30_spill] sm:$0xff] %v4671_v25  ;;  %8500 = vst [vmem:[#allocation32_spill] sm:$0xff] %v4677_v30  ;;  %v438_v32 = vor.u32 %v437_v12, %v4650_v61  ;;  %v4689_v34 = vshll.u32 %v4674_v29, 16  ;;  %v8118_v35 = vshll.u32 %v4677_v30, 16  ;;  %v4693_v36 = vsel %vm325_vm1, %v316_v7, 0 }
  0x2c   : > { %8501 = vst [vmem:[#allocation33_spill] sm:$0xff] %v4680_v31  ;;  %533 = vrot.lane.b32.xlu1 %v4671_v25, %s4435_s29  ;;  %8502 = vst [vmem:[#allocation34_spill] sm:$0xff] %v4686_v33  ;;  %v4696_v37 = vshrl.u32 %v4680_v31, 16  ;;  %v4699_v42 = vshll.u32 %v4680_v31, 16  ;;  %v4702_v43 = vsel %vm325_vm1, 0, %v317_v8  ;;  %v8123_v59 = vshll.u32 %v4693_v36, 16 }
  0x2d   : > { %8503 = vst [vmem:[#allocation35_spill] sm:$0xff] %v4689_v34  ;;  %8504 = vst [vmem:[#allocation36_spill] sm:$0xff] %v4693_v36  ;;  %v4707_v54 = vsel %vm375_vm0, %v438_v32, %v441_v21  ;;  %v447_v57 = vrot.slane %v4689_v34, 1  ;;  %v451_v58 = vrot.slane %v8118_v35, 1  ;;  %v4718_v5 = vsel %vm325_vm1, %v317_v8, 0 }
  0x2e   : > { %8505 = vst [vmem:[#allocation37_spill] sm:$0xff] %v4696_v37  ;;  %8506 = vst [vmem:[#allocation38_spill] sm:$0xff] %v4699_v42  ;;  %535 = vrot.lane.b32.xlu0 %v4707_v54, %s4435_s29  ;;  %v457_v63 = vrot.slane %v4699_v42, 1  ;;  %v4721_v6 = vshrl.u32 %v4702_v43, 16  ;;  %v4724_v7 = vshll.u32 %v4702_v43, 16  ;;  %v461_v21 = vrot.slane %v8123_v59, 1 }
  0x2f   : > { %8507 = vst [vmem:[#allocation39_spill] sm:$0xff] %v4702_v43  ;;  %8508 = vst [vmem:[#allocation40_spill] sm:$0xff] %v4707_v54  ;;  %v448_v12 = vor.u32 %v447_v57, %v4686_v33  ;;  %v8129_v32 = vshll.u32 %v4718_v5, 16  ;;  %v4731_v35 = vsel %vm325_vm1, 0, %v318_v22  ;;  %v4737_v49 = vsel %vm325_vm1, %v318_v22, 0 }
  0x30   : > { %8509 = vst [vmem:[#allocation41_spill] sm:$0xff] %v4718_v5  ;;  %8510 = vst [vmem:[#allocation42_spill] sm:$0xff] %v4721_v6  ;;  %v458_v8 = vor.u32 %v457_v63, %v4696_v37  ;;  %v467_v55 = vrot.slane %v4724_v7, 1  ;;  %v4740_v28 = vshrl.u32 %v4731_v35, 16  ;;  %v4748_v23 = vshll.u32 %v4731_v35, 16 }
  0x31   : > { %8511 = vst [vmem:[#allocation43_spill] sm:$0xff] %v4724_v7  ;;  %8512 = vst [vmem:[#allocation44_spill] sm:$0xff] %v4731_v35  ;;  %v4743_v57 = vsel %vm375_vm0, %v448_v12, %v451_v58  ;;  %v471_v59 = vrot.slane %v8129_v32, 1  ;;  %v8132_v19 = vshll.u32 %v4737_v49, 16  ;;  %v319_v18 = vrot.slane %v4357_v44, 7 }
  0x32   : > { %8513 = vst [vmem:[#allocation45_spill] sm:$0xff] %v4737_v49  ;;  %8514 = vst [vmem:[#allocation46_spill] sm:$0xff] %v4740_v28  ;;  %537 = vrot.lane.b32.xlu1 %v4743_v57, %s4435_s29  ;;  %v4754_v22 = vsel %vm375_vm0, %v458_v8, %v461_v21  ;;  %v468_v63 = vor.u32 %v467_v55, %v4721_v6  ;;  %v320_v0 = vrot.slane %v4358_v46, 7  ;;  %v477_v58 = vrot.slane %v4748_v23, 1 }
  0x33   : > { %8515 = vst [vmem:[#allocation47_spill] sm:$0xff] %v4743_v57  ;;  %8516 = vst [vmem:[#allocation48_spill] sm:$0xff] %v4748_v23  ;;  %539 = vrot.lane.b32.xlu0 %v4754_v22, %s4435_s29  ;;  %v481_v12 = vrot.slane %v8132_v19, 1  ;;  %v321_v32 = vrot.slane %v4359_v62, 7  ;;  %v322_v15 = vrot.slane %v4360_v4, 7  ;;  %v4766_v21 = vsel %vm325_vm1, 0, %v319_v18 }
  0x34   : > { %8517 = vst [vmem:[#allocation49_spill] sm:$0xff] %v4754_v22  ;;  %v4763_v14 = vsel %vm375_vm0, %v468_v63, %v471_v59  ;;  %8519 = vst [vmem:[#allocation51_spill] sm:$0xff] %v4766_v21  ;;  %v4769_v55 = vsel %vm325_vm1, %v319_v18, 0  ;;  %v4772_v44 = vsel %vm325_vm1, 0, %v320_v0  ;;  %v478_v46 = vor.u32 %v477_v58, %v4740_v28 }
  0x35   : > { %8518 = vst [vmem:[#allocation50_spill] sm:$0xff] %v4763_v14  ;;  %8520 = vst [vmem:[#allocation52_spill] sm:$0xff] %v4769_v55  ;;  %v4776_v8 = vshrl.u32 %v4766_v21, 16  ;;  %v4779_v62 = vshll.u32 %v4766_v21, 16  ;;  %v8142_v4 = vshll.u32 %v4769_v55, 16  ;;  %v4785_v59 = vsel %vm325_vm1, %v320_v0, 0 }
  0x36   : > { %8521 = vst [vmem:[#allocation53_spill] sm:$0xff] %v4772_v44  ;;  %541 = vrot.lane.b32.xlu1 %v4763_v14, %s4435_s29  ;;  %8524 = vst [vmem:[#allocation56_spill] sm:$0xff] %v4785_v59  ;;  %v4788_v18 = vshrl.u32 %v4772_v44, 16  ;;  %v4791_v63 = vshll.u32 %v4772_v44, 16  ;;  %v4794_v58 = vsel %vm325_vm1, 0, %v321_v32  ;;  %v4797_v19 = vsel %vm375_vm0, %v478_v46, %v481_v12 }
  0x37   : > { %8522 = vst [vmem:[#allocation54_spill] sm:$0xff] %v4776_v8  ;;  %8523 = vst [vmem:[#allocation55_spill] sm:$0xff] %v4779_v62  ;;  %v487_v13 = vrot.slane %v4779_v62, 1  ;;  %v491_v14 = vrot.slane %v8142_v4, 1  ;;  %v8153_v0 = vshll.u32 %v4785_v59, 16  ;;  %543 = vrot.lane.b32.xlu0 %v4797_v19, %s4435_s29  ;;  %v4807_v57 = vsel %vm325_vm1, %v321_v32, 0 }
  0x38   : > { %8525 = vst [vmem:[#allocation57_spill] sm:$0xff] %v4788_v18  ;;  %8526 = vst [vmem:[#allocation58_spill] sm:$0xff] %v4791_v63  ;;  %v497_v22 = vrot.slane %v4791_v63, 1  ;;  %v4810_v54 = vshrl.u32 %v4794_v58, 16  ;;  %v4813_v12 = vshll.u32 %v4794_v58, 16  ;;  %v8157_v25 = vshll.u32 %v4807_v57, 16 }
  0x39   : > { %8527 = vst [vmem:[#allocation59_spill] sm:$0xff] %v4794_v58  ;;  %8528 = vst [vmem:[#allocation60_spill] sm:$0xff] %v4797_v19  ;;  %v488_v46 = vor.u32 %v487_v13, %v4776_v8  ;;  %v501_v4 = vrot.slane %v8153_v0, 1  ;;  %v4820_v19 = vsel %vm325_vm1, 0, %v322_v15  ;;  %v4825_v53 = vsel %vm325_vm1, %v322_v15, 0 }
  0x3a   : > { %8529 = vst [vmem:[#allocation61_spill] sm:$0xff] %v4807_v57  ;;  %8530 = vst [vmem:[#allocation62_spill] sm:$0xff] %v4810_v54  ;;  %v498_v11 = vor.u32 %v497_v22, %v4788_v18  ;;  %v507_v32 = vrot.slane %v4813_v12, 1  ;;  %v4828_v38 = vshrl.u32 %v4820_v19, 16  ;;  %v511_v0 = vrot.slane %v8157_v25, 1 }
  0x3b   : > { %8531 = vst [vmem:[#allocation63_spill] sm:$0xff] %v4813_v12  ;;  %8532 = vst [vmem:[#allocation64_spill] sm:$0xff] %v4820_v19  ;;  %v4831_v13 = vsel %vm375_vm0, %v488_v46, %v491_v14  ;;  %v4836_v45 = vshll.u32 %v4820_v19, 16  ;;  %v8162_v2 = vshll.u32 %v4825_v53, 16 }
  0x3c   : > { %8533 = vst [vmem:[#allocation65_spill] sm:$0xff] %v4825_v53  ;;  %8534 = vst [vmem:[#allocation66_spill] sm:$0xff] %v4828_v38  ;;  %545 = vrot.lane.b32.xlu1 %v4831_v13, %s4435_s29  ;;  %v4842_v15 = vsel %vm375_vm0, %v498_v11, %v501_v4  ;;  %v508_v22 = vor.u32 %v507_v32, %v4810_v54  ;;  %v586_v11 = vrot.slane %v4561_v17, 1 }
  0x3d   : > { %8535 = vst [vmem:[#allocation67_spill] sm:$0xff] %v4831_v13  ;;  %8536 = vst [vmem:[#allocation68_spill] sm:$0xff] %v4836_v45  ;;  %547 = vrot.lane.b32.xlu0 %v4842_v15, %s4435_s29  ;;  %v517_v14 = vrot.slane %v4836_v45, 1  ;;  %v521_v46 = vrot.slane %v8162_v2, 1  ;;  %v585_v13 = vrot.slane %v4558_v16, 1  ;;  %v4860_v4 = vpack.i.bf16 %v4529_v1, %v4529_v1 }
  0x3e   : > { %8537 = vst [vmem:[#allocation69_spill] sm:$0xff] %v4842_v15  ;;  %v4851_v25 = vsel %vm375_vm0, %v508_v22, %v511_v0  ;;  %v588_v0 = vrot.slane %v4548_v9, 1  ;;  %v8170_v22 = vrot.slane %v4551_v10, 1  ;;  %v591_v2 = vrot.slane %v4566_v20, 1 }
  0x3f   : > { %8538 = vst [vmem:[#allocation70_spill] sm:$0xff] %v4851_v25  ;;  %v518_v12 = vor.u32 %v517_v14, %v4828_v38  ;;  %8539 = vst [vmem:[#allocation71_spill] sm:$0xff] %v4860_v4  ;;  %v4870_v14 = vsel %vm582_vm2, %v585_v13, %v586_v11  ;;  %v597_v11 = vrot.slane %v4605_v41, 1  ;;  %v4922_v20 = vrot.slane %v4677_v30, 1 }
  0x40   : > { %549 = vrot.lane.b32.xlu1 %v4851_v25, %s4435_s29  ;;  %8541 = vst [vmem:[#allocation73_spill] sm:$0xff] %v4870_v14  ;;  %v4874_v25 = vrot.slane %v4574_v24, 1 }
  0x41   : > { %v4863_v32 = vsel %vm375_vm0, %v518_v12, %v521_v46  ;;  %v594_v12 = vrot.slane %v4599_v39, 1  ;;  %v4880_v46 = vrot.slane %v4602_v40, 1  ;;  %v8191_v39 = vshrl.u32 %v4551_v10, 16  ;;  %8553 = vst [vmem:[#allocation82_spill] sm:$0xff] %v4922_v20 }
  0x42   : > { %8540 = vst [vmem:[#allocation72_spill] sm:$0xff] %v4863_v32  ;;  %551 = vrot.lane.b32.xlu0 %v4863_v32, %s4435_s29  ;;  %8542 = vst [vmem:[#allocation74_spill] sm:$0xff] %v4874_v25  ;;  %v4885_v32 = vsel %vm582_vm2, %v588_v0, %v8170_v22  ;;  %v4891_v13 = vsel %vm582_vm2, %v591_v2, %v4874_v25  ;;  %v600_v0 = vrot.slane %v4640_v56, 1  ;;  %v4905_v22 = vrot.slane %v4647_v60, 1 }
  0x43   : > { %8543 = vst [vmem:[#allocation75_spill] sm:$0xff] %v4880_v46  ;;  %8544 = vst [vmem:[#allocation76_spill] sm:$0xff] %v4885_v32  ;;  %v4901_v15 = vsel %vm582_vm2, %v594_v12, %v4880_v46  ;;  %v8549_v2 = vshrl.u32 %v4548_v9, 16  ;;  %v8551_v12 = vshll.u32 %v4551_v10, 16 }
  0x44   : > { %4328 = vrot.lane.b32.xlu1 %v4860_v4, %s4436_s7  ;;  %8545 = vst [vmem:[#allocation77_spill] sm:$0xff] %v4891_v13  ;;  %v4895_v4 = vrot.slane %v4626_v50, 1  ;;  %8547 = vst [vmem:[#allocation79_spill] sm:$0xff] %v4901_v15 }
  0x45   : > { %8548 = vst [vmem:[#allocation80_spill] sm:$0xff] %v4905_v22  ;;  %v671_v25 = vrot.slane %v8549_v2, 1  ;;  %v677_v46 = vrot.slane %v8551_v12, 2  ;;  %v606_v12 = vrot.slane %v4680_v31, 1 }
  0x46   : > { %629 = vrot.lane.b32.xlu0 %v4870_v14, %s4436_s7  ;;  %8546 = vst [vmem:[#allocation78_spill] sm:$0xff] %v4895_v4  ;;  %v8550_v14 = vshll.u32 %v4548_v9, 16  ;;  %v4919_v56 = vsel %vm582_vm2, %v597_v11, %v4895_v4  ;;  %v4936_v11 = vrot.slane %v4693_v36, 1 }
  0x47   : > { %8552 = vst [vmem:[#allocation81_spill] sm:$0xff] %v4919_v56 }
  0x48   : > { %631 = vrot.lane.b32.xlu1 %v4885_v32, %s4436_s7  ;;  %v672_v41 = vrot.slane %v8550_v14, 2  ;;  %v603_v32 = vrot.slane %v4674_v29, 1  ;;  %v4926_v14 = vrot.slane %v8191_v39, 1  ;;  %8556 = vst [vmem:[#allocation85_spill] sm:$0xff] %v4936_v11  ;;  %v4947_v39 = vrot.slane %v4718_v5, 1 }
  0x4a   : > { %633 = vrot.lane.b32.xlu0 %v4891_v13, %s4436_s7  ;;  %v673_v2 = vor.u32 %v672_v41, %v671_v25  ;;  %8554 = vst [vmem:[#allocation83_spill] sm:$0xff] %v4926_v14  ;;  %v4932_v13 = vsel %vm582_vm2, %v600_v0, %v4905_v22  ;;  %v678_v4 = vor.u32 %v677_v46, %v4926_v14  ;;  %v609_v25 = vrot.slane %v4702_v43, 1 }
  0x4b   : > { %8555 = vst [vmem:[#allocation84_spill] sm:$0xff] %v4932_v13  ;;  %v4943_v41 = vsel %vm582_vm2, %v603_v32, %v4922_v20  ;;  %8558 = vst [vmem:[#allocation87_spill] sm:$0xff] %v4947_v39  ;;  %v4956_v46 = vsel %vm582_vm2, %v606_v12, %v4936_v11  ;;  %v612_v22 = vrot.slane %v4731_v35, 1  ;;  %v4960_v32 = vrot.slane %v4737_v49, 1 }
  0x4c   : > { %635 = vrot.lane.b32.xlu1 %v4901_v15, %s4436_s7  ;;  %8557 = vst [vmem:[#allocation86_spill] sm:$0xff] %v4943_v41  ;;  %v4950_v0 = vsel %vm657_vm3, %v673_v2, %v678_v4  ;;  %8559 = vst [vmem:[#allocation88_spill] sm:$0xff] %v4956_v46  ;;  %v4966_v20 = vsel %vm582_vm2, %v609_v25, %v4947_v39  ;;  %v615_v4 = vrot.slane %v4766_v21, 1  ;;  %v4970_v2 = vrot.slane %v4769_v55, 1 }
  0x4d   : > { %8560 = vst [vmem:[#allocation89_spill] sm:$0xff] %v4960_v32  ;;  %8561 = vst [vmem:[#allocation90_spill] sm:$0xff] %v4966_v20  ;;  %v618_v12 = vrot.slane %v4772_v44, 1  ;;  %v4976_v11 = vrot.slane %v4785_v59, 1  ;;  %v4980_v14 = vsel %vm582_vm2, %v612_v22, %v4960_v32  ;;  %v665_v25 = vshrl.u32 %v4561_v17, 16 }
  0x4e   : > { %637 = vrot.lane.b32.xlu0 %v4919_v56, %s4436_s7  ;;  %8562 = vst [vmem:[#allocation91_spill] sm:$0xff] %v4970_v2  ;;  %8564 = vst [vmem:[#allocation93_spill] sm:$0xff] %v4980_v14  ;;  %v4987_v39 = vsel %vm582_vm2, %v615_v4, %v4970_v2  ;;  %v624_v32 = vrot.slane %v4820_v19, 1  ;;  %v5004_v4 = vrot.slane %v4825_v53, 1  ;;  %v5007_v2 = vshrl.u32 %v4574_v24, 16 }
  0x4f   : > { %8563 = vst [vmem:[#allocation92_spill] sm:$0xff] %v4976_v11  ;;  %8565 = vst [vmem:[#allocation94_spill] sm:$0xff] %v4987_v39  ;;  %v5000_v22 = vsel %vm582_vm2, %v618_v12, %v4976_v11  ;;  %v667_v21 = vrot.slane %v665_v25, 1  ;;  %v5018_v12 = vshrl.u32 %v4602_v40, 16  ;;  %v5042_v43 = vshrl.u32 %v4626_v50, 16 }
  0x50   : > { %639 = vrot.lane.b32.xlu1 %v4932_v13, %s4436_s7  ;;  %v8567_v13 = vmov 0   ;;  %8568 = vst [vmem:[#allocation96_spill] sm:$0xff] %v5000_v22  ;;  %8569 = vst [vmem:[#allocation97_spill] sm:$0xff] %v5004_v4  ;;  %v5033_v25 = vrot.slane %v5007_v2, 1 }
  0x51   : > { %v4994_v56 = vrot.slane %v8567_v13, 2  ;;  %8570 = vst [vmem:[#allocation98_spill] sm:$0xff] %v5007_v2  ;;  %8574 = vst [vmem:[#allocation99_spill] sm:$0xff] %v5018_v12  ;;  %v5049_v2 = vrot.slane %v5018_v12, 1  ;;  %v5065_v12 = vrot.slane %v5042_v43, 1 }
  0x52   : > { %641 = vrot.lane.b32.xlu0 %v4943_v41, %s4436_s7  ;;  %v4991_v41 = vrot.slane %v4807_v57, 1  ;;  %8575 = vst [vmem:[#allocation100_spill] sm:$0xff] %v5033_v25  ;;  %8577 = vst [vmem:[#allocation101_spill] sm:$0xff] %v5042_v43  ;;  %v8589_v43 = vshll.u32 %v4677_v30, 16 }
  0x53   : > { %8578 = vst [vmem:[#allocation102_spill] sm:$0xff] %v5049_v2  ;;  %8581 = vst [vmem:[#allocation104_spill] sm:$0xff] %v5065_v12 }
  0x54   : > { %643 = vrot.lane.b32.xlu1 %v4956_v46, %s4436_s7  ;;  %v621_v46 = vrot.slane %v4794_v58, 1  ;;  %8566 = vst [vmem:[#allocation95_spill] sm:$0xff] %v4991_v41  ;;  %v8572_v58 = vshll.u32 %v4558_v16, 16 }
  0x56   : > { %645 = vrot.lane.b32.xlu0 %v4966_v20, %s4436_s7  ;;  %v8571_v20 = vshrl.u32 %v4558_v16, 16  ;;  %v663_v44 = vrot.slane %v8572_v58, 2  ;;  %v5022_v11 = vsel %vm582_vm2, %v621_v46, %v4991_v41  ;;  %v680_v58 = vrot.slane %v4579_v26, 1 }
  0x57   : > { %v5039_v46 = vsel %vm582_vm2, %v624_v32, %v5004_v4  ;;  %v690_v26 = vrot.slane %v4620_v48, 2  ;;  %v5054_v32 = vshrl.u32 %v4647_v60, 16 }
  0x58   : > { %647 = vrot.lane.b32.xlu1 %v4980_v14, %s4436_s7  ;;  %v662_v15 = vrot.slane %v8571_v20, 1  ;;  %v8573_v14 = vshll.u32 %v4561_v17, 16  ;;  %v5026_v20 = vor.u32 %v4994_v56, %v4529_v1 }
  0x59   : > { %8580 = vst [vmem:[#allocation103_spill] sm:$0xff] %v5054_v32 }
  0x5a   : > { %v668_v35 = vrot.slane %v8573_v14, 2  ;;  %649 = vrot.lane.b32.xlu0 %v4987_v39, %s4436_s7  ;;  %v681_v14 = vrot.slane %v4582_v27, 2  ;;  %v8576_v39 = vshll.u32 %v4574_v24, 16  ;;  %v664_v41 = vor.u32 %v663_v44, %v662_v15 }
  0x5b   : > { %v689_v27 = vrot.slane %v4617_v47, 1  ;;  %v698_v44 = vrot.slane %v4629_v51, 1  ;;  %v699_v15 = vrot.slane %v4632_v52, 2  ;;  %v5070_v47 = vshrl.u32 %v4677_v30, 16 }
  0x5c   : > { %651 = vrot.lane.b32.xlu1 %v5000_v22, %s4436_s7  ;;  %v686_v19 = vrot.slane %v8576_v39, 2  ;;  %v669_v1 = vor.u32 %v668_v35, %v667_v21  ;;  %v8579_v39 = vshll.u32 %v4602_v40, 16  ;;  %v682_v35 = vor.u32 %v681_v14, %v680_v58 }
  0x5d   : > { %8583 = vst [vmem:[#allocation105_spill] sm:$0xff] %v5070_v47  ;;  %v707_v14 = vrot.slane %v4650_v61, 1  ;;  %v8585_v52 = vshll.u32 %v4647_v60, 16  ;;  %v5083_v51 = vshrl.u32 %v4693_v36, 16  ;;  %v717_v61 = vrot.slane %v4689_v34, 2 }
  0x5e   : > { %653 = vrot.lane.b32.xlu0 %v5022_v11, %s4436_s7  ;;  %v695_v22 = vrot.slane %v8579_v39, 2  ;;  %v687_v21 = vor.u32 %v686_v19, %v5033_v25  ;;  %v5062_v4 = vsel %vm657_vm3, %v664_v41, %v669_v1  ;;  %v8582_v39 = vshll.u32 %v4626_v50, 16 }
  0x5f   : > { %v691_v19 = vor.u32 %v690_v26, %v689_v27  ;;  %v708_v1 = vrot.slane %v4658_v3, 2  ;;  %v5078_v41 = vrot.slane %v5054_v32, 1  ;;  %8586 = vst [vmem:[#allocation107_spill] sm:$0xff] %v5083_v51  ;;  %v700_v27 = vor.u32 %v699_v15, %v698_v44 }
  0x60   : > { %655 = vrot.lane.b32.xlu1 %v5039_v46, %s4436_s7  ;;  %v704_v48 = vrot.slane %v8582_v39, 2  ;;  %v696_v58 = vor.u32 %v695_v22, %v5049_v2  ;;  %v713_v39 = vrot.slane %v8585_v52, 2  ;;  %v5088_v26 = vsel %vm657_vm3, %v682_v35, %v687_v21 }
  0x61   : > { %8584 = vst [vmem:[#allocation106_spill] sm:$0xff] %v5078_v41  ;;  %v716_v22 = vrot.slane %v4686_v33, 1  ;;  %v5092_v3 = vshrl.u32 %v4718_v5, 16  ;;  %v5097_v52 = vrot.slane %v5070_v47, 1  ;;  %v722_v2 = vrot.slane %v8589_v43, 2 }
  0x62   : > { %788 = vrot.lane.b32.xlu0 %v5026_v20, %s4437_s8  ;;  %v705_v32 = vor.u32 %v704_v48, %v5065_v12  ;;  %v5104_v35 = vsel %vm657_vm3, %v691_v19, %v696_v58  ;;  %v709_v21 = vor.u32 %v708_v1, %v707_v14  ;;  %v725_v44 = vrot.slane %v4696_v37, 1 }
  0x63   : > { %8587 = vst [vmem:[#allocation108_spill] sm:$0xff] %v5092_v3  ;;  %8588 = vst [vmem:[#allocation109_spill] sm:$0xff] %v5097_v52  ;;  %v5108_v15 = vshrl.u32 %v4737_v49, 16  ;;  %v714_v48 = vor.u32 %v713_v39, %v5078_v41  ;;  %v726_v34 = vrot.slane %v4699_v42, 2  ;;  %v5113_v33 = vrot.slane %v5083_v51, 1 }
  0x64   : > { %790 = vrot.lane.b32.xlu1 %v5062_v4, %s4437_s8  ;;  %v8592_v43 = vshll.u32 %v4693_v36, 16  ;;  %v734_v19 = vrot.slane %v4721_v6, 1  ;;  %v735_v58 = vrot.slane %v4724_v7, 2  ;;  %v5122_v14 = vrot.slane %v5092_v3, 1 }
  0x65   : > { %8590 = vst [vmem:[#allocation110_spill] sm:$0xff] %v5108_v15  ;;  %8591 = vst [vmem:[#allocation111_spill] sm:$0xff] %v5113_v33  ;;  %v8594_v1 = vshll.u32 %v4718_v5, 16  ;;  %v5127_v42 = vsel %vm657_vm3, %v700_v27, %v705_v32  ;;  %v718_v51 = vor.u32 %v717_v61, %v716_v22  ;;  %v723_v37 = vor.u32 %v722_v2, %v5097_v52 }
  0x66   : > { %792 = vrot.lane.b32.xlu0 %v4950_v0, %s4437_s8  ;;  %v731_v47 = vrot.slane %v8592_v43, 2  ;;  %8593 = vst [vmem:[#allocation112_spill] sm:$0xff] %v5122_v14  ;;  %v5131_v43 = vshrl.u32 %v4769_v55, 16  ;;  %v743_v7 = vrot.slane %v4740_v28, 1  ;;  %v744_v3 = vrot.slane %v4748_v23, 2 }
  0x67   : > { %v740_v39 = vrot.slane %v8594_v1, 2  ;;  %v5138_v6 = vrot.slane %v5108_v15, 1  ;;  %v8597_v1 = vshll.u32 %v4737_v49, 16  ;;  %v5143_v61 = vsel %vm657_vm3, %v709_v21, %v714_v48 }
  0x68   : > { %794 = vrot.lane.b32.xlu1 %v5088_v26, %s4437_s8  ;;  %8595 = vst [vmem:[#allocation113_spill] sm:$0xff] %v5131_v43  ;;  %v727_v2 = vor.u32 %v726_v34, %v725_v44  ;;  %v732_v27 = vor.u32 %v731_v47, %v5113_v33  ;;  %v5147_v22 = vshrl.u32 %v4785_v59, 16  ;;  %v736_v28 = vor.u32 %v735_v58, %v734_v19 }
  0x69   : > { %8596 = vst [vmem:[#allocation114_spill] sm:$0xff] %v5138_v6  ;;  %v749_v32 = vrot.slane %v8597_v1, 2  ;;  %v741_v23 = vor.u32 %v740_v39, %v5122_v14  ;;  %v752_v52 = vrot.slane %v4776_v8, 1  ;;  %v753_v41 = vrot.slane %v4779_v62, 2 }
  0x6a   : > { %796 = vrot.lane.b32.xlu0 %v5104_v35, %s4437_s8  ;;  %8598 = vst [vmem:[#allocation115_spill] sm:$0xff] %v5147_v22  ;;  %v5155_v1 = vsel %vm657_vm3, %v718_v51, %v723_v37  ;;  %v5158_v34 = vrot.slane %v5131_v43, 1  ;;  %v8601_v47 = vshll.u32 %v4769_v55, 16  ;;  %v5163_v44 = vshrl.u32 %v4807_v57, 16 }
  0x6b   : > { %8599 = vst [vmem:[#allocation116_spill] sm:$0xff] %v5155_v1  ;;  %v745_v48 = vor.u32 %v744_v3, %v743_v7  ;;  %v750_v19 = vor.u32 %v749_v32, %v5138_v6  ;;  %v761_v58 = vrot.slane %v4788_v18, 1  ;;  %v762_v51 = vrot.slane %v4791_v63, 2  ;;  %v8661_v6 = vld [vmem:[#allocation24_spill] sm:$0xff]  ;;  %v8662_v18 = vld [vmem:[#allocation29_spill] sm:$0xff] }
  0x6c   : > { %798 = vrot.lane.b32.xlu1 %v5127_v42, %s4437_s8  ;;  %8600 = vst [vmem:[#allocation117_spill] sm:$0xff] %v5158_v34  ;;  %v758_v21 = vrot.slane %v8601_v47, 2  ;;  %8602 = vst [vmem:[#allocation118_spill] sm:$0xff] %v5163_v44  ;;  %v5171_v37 = vsel %vm657_vm3, %v727_v2, %v732_v27  ;;  %v5174_v39 = vrot.slane %v5147_v22, 1  ;;  %v8605_v47 = vshll.u32 %v4785_v59, 16  ;;  %v8607_v27 = vld [vmem:[#allocation63_spill] sm:$0xff] }
  0x6d   : > { %8603 = vst [vmem:[#allocation119_spill] sm:$0xff] %v5171_v37  ;;  %v5179_v33 = vshrl.u32 %v4825_v53, 16  ;;  %v5184_v3 = vsel %vm657_vm3, %v736_v28, %v741_v23  ;;  %v754_v7 = vor.u32 %v753_v41, %v752_v52  ;;  %v770_v32 = vrot.slane %v4810_v54, 1 }
  0x6e   : > { %800 = vrot.lane.b32.xlu0 %v5143_v61, %s4437_s8  ;;  %8604 = vst [vmem:[#allocation120_spill] sm:$0xff] %v5174_v39  ;;  %v767_v14 = vrot.slane %v8605_v47, 2  ;;  %v759_v2 = vor.u32 %v758_v21, %v5158_v34  ;;  %v771_v12 = vrot.slane %v8607_v27, 2  ;;  %v5190_v22 = vrot.slane %v5163_v44, 1  ;;  %v8657_v34 = vld [vmem:[#allocation18_spill] sm:$0xff] }
  0x6f   : > { %8606 = vst [vmem:[#allocation121_spill] sm:$0xff] %v5179_v33  ;;  %v8609_v47 = vshll.u32 %v4807_v57, 16  ;;  %v5197_v63 = vsel %vm657_vm3, %v745_v48, %v750_v19  ;;  %v763_v23 = vor.u32 %v762_v51, %v761_v58  ;;  %v779_v28 = vrot.slane %v4828_v38, 1 }
  0x70   : > { %802 = vrot.lane.b32.xlu1 %v5155_v1, %s4437_s8  ;;  %8608 = vst [vmem:[#allocation122_spill] sm:$0xff] %v5190_v22  ;;  %v768_v41 = vor.u32 %v767_v14, %v5174_v39  ;;  %v780_v52 = vrot.slane %v4836_v45, 2  ;;  %v5203_v21 = vrot.slane %v5179_v33, 1  ;;  %v8611_v27 = vshll.u32 %v4825_v53, 16 }
  0x71   : > { %v776_v25 = vrot.slane %v8609_v47, 2  ;;  %v5210_v47 = vsel %vm657_vm3, %v754_v7, %v759_v2  ;;  %v772_v48 = vor.u32 %v771_v12, %v770_v32  ;;  %v822_v32 = vrot.slane %v4561_v17, 2 }
  0x72   : > { %804 = vrot.lane.b32.xlu0 %v5171_v37, %s4437_s8  ;;  %8610 = vst [vmem:[#allocation123_spill] sm:$0xff] %v5203_v21  ;;  %v785_v54 = vrot.slane %v8611_v27, 2  ;;  %v5216_v14 = vsel %vm657_vm3, %v763_v23, %v768_v41  ;;  %v781_v58 = vor.u32 %v780_v52, %v779_v28  ;;  %v5222_v27 = vrot.slane %v8567_v13, 7  ;;  %v8613_v41 = vld [vmem:[#allocation10_spill] sm:$0xff] }
  0x73   : > { %v777_v19 = vor.u32 %v776_v25, %v5190_v22  ;;  %v821_v25 = vrot.slane %v4558_v16, 2  ;;  %v824_v2 = vrot.slane %v4548_v9, 2  ;;  %v825_v23 = vrot.slane %v4551_v10, 2 }
  0x74   : > { %806 = vrot.lane.b32.xlu1 %v5184_v3, %s4437_s8  ;;  %v786_v51 = vor.u32 %v785_v54, %v5203_v21  ;;  %8612 = vst [vmem:[#allocation124_spill] sm:$0xff] %v5222_v27  ;;  %v4332_v54 = vpack.i.bf16 %v5222_v27, %v4994_v56  ;;  %v827_v52 = vrot.slane %v8613_v41, 2  ;;  %v828_v17 = vrot.slane %v4574_v24, 2 }
  0x75   : > { %v5225_v7 = vsel %vm657_vm3, %v772_v48, %v777_v19  ;;  %v5243_v28 = vsel %vm818_vm4, %v821_v25, %v822_v32  ;;  %v5249_v48 = vsel %vm818_vm4, %v824_v2, %v825_v23  ;;  %v8614_v19 = vld [vmem:[#allocation15_spill] sm:$0xff]  ;;  %v8615_v32 = vld [vmem:[#allocation17_spill] sm:$0xff]  ;;  %v834_v21 = vrot.slane %v4626_v50, 2 }
  0x76   : > { %808 = vrot.lane.b32.xlu0 %v5197_v63, %s4437_s8  ;;  %v5230_v12 = vsel %vm657_vm3, %v781_v58, %v786_v51  ;;  %v830_v58 = vrot.slane %v8614_v19, 2  ;;  %v831_v51 = vrot.slane %v4602_v40, 2  ;;  %v5256_v25 = vsel %vm818_vm4, %v827_v52, %v828_v17  ;;  %v8617_v2 = vld [vmem:[#allocation25_spill] sm:$0xff] }
  0x77   : > { %v833_v27 = vrot.slane %v8615_v32, 2  ;;  %v836_v23 = vrot.slane %v8617_v2, 2  ;;  %v837_v33 = vrot.slane %v4647_v60, 2  ;;  %v839_v17 = vrot.slane %v4674_v29, 2 }
  0x78   : > { %810 = vrot.lane.b32.xlu1 %v5210_v47, %s4437_s8  ;;  %v840_v50 = vrot.slane %v4677_v30, 2  ;;  %v843_v60 = vrot.slane %v4693_v36, 2  ;;  %v846_v30 = vrot.slane %v4718_v5, 2  ;;  %v849_v36 = vrot.slane %v4737_v49, 2 }
  0x79   : > { %v5270_v52 = vsel %vm818_vm4, %v833_v27, %v834_v21  ;;  %v8621_v27 = vld [vmem:[#allocation39_spill] sm:$0xff]  ;;  %v852_v5 = vrot.slane %v4769_v55, 2  ;;  %v855_v39 = vrot.slane %v4785_v59, 2  ;;  %v858_v55 = vrot.slane %v4807_v57, 2 }
  0x7a   : > { %812 = vrot.lane.b32.xlu0 %v5216_v14, %s4437_s8  ;;  %8618 = vst [vmem:[#allocation126_spill] sm:$0xff] %v5270_v52  ;;  %v5284_v21 = vsel %vm818_vm4, %v839_v17, %v840_v50  ;;  %v845_v22 = vrot.slane %v8621_v27, 2  ;;  %v8625_v17 = vld [vmem:[#allocation51_spill] sm:$0xff]  ;;  %v861_v24 = vrot.slane %v4825_v53, 2 }
  0x7b   : > { %8620 = vst [vmem:[#allocation128_spill] sm:$0xff] %v5284_v21  ;;  %v851_v38 = vrot.slane %v8625_v17, 2 }
  0x7c   : > { %814 = vrot.lane.b32.xlu1 %v5225_v7, %s4437_s8  ;;  %v5298_v50 = vsel %vm818_vm4, %v845_v22, %v846_v30  ;;  %v8630_v22 = vld [vmem:[#allocation59_spill] sm:$0xff] }
  0x7d   : > { %8624 = vst [vmem:[#allocation130_spill] sm:$0xff] %v5298_v50  ;;  %v5314_v30 = vsel %vm818_vm4, %v851_v38, %v852_v5  ;;  %v857_v40 = vrot.slane %v8630_v22, 2 }
  0x7e   : > { %816 = vrot.lane.b32.xlu0 %v5230_v12, %s4437_s8  ;;  %8629 = vst [vmem:[#allocation133_spill] sm:$0xff] %v5314_v30 }
  0x7f   : > { %v5332_v5 = vsel %vm818_vm4, %v857_v40, %v858_v55 }
  0x80   : > { %4333 = vrot.lane.b32.xlu1 %v4332_v54, %s4438_s9  ;;  %v5263_v54 = vsel %vm818_vm4, %v830_v58, %v831_v51  ;;  %v5277_v58 = vsel %vm818_vm4, %v836_v23, %v837_v33  ;;  %v842_v51 = vrot.slane %v4680_v31, 2  ;;  %v8623_v23 = vld [vmem:[#allocation44_spill] sm:$0xff]  ;;  %8635 = vst [vmem:[#allocation137_spill] sm:$0xff] %v5332_v5 }
  0x81   : > { %8616 = vst [vmem:[#allocation125_spill] sm:$0xff] %v5263_v54  ;;  %8619 = vst [vmem:[#allocation127_spill] sm:$0xff] %v5277_v58  ;;  %v848_v45 = vrot.slane %v8623_v23, 2 }
  0x82   : > { %865 = vrot.lane.b32.xlu0 %v5243_v28, %s4438_s9  ;;  %v5291_v33 = vsel %vm818_vm4, %v842_v51, %v843_v60  ;;  %v8628_v51 = vld [vmem:[#allocation53_spill] sm:$0xff] }
  0x83   : > { %8622 = vst [vmem:[#allocation129_spill] sm:$0xff] %v5291_v33  ;;  %v5307_v60 = vsel %vm818_vm4, %v848_v45, %v849_v36  ;;  %v854_v49 = vrot.slane %v8628_v51, 2 }
  0x84   : > { %867 = vrot.lane.b32.xlu1 %v5249_v48, %s4438_s9  ;;  %8627 = vst [vmem:[#allocation132_spill] sm:$0xff] %v5307_v60 }
  0x85   : > { %v5321_v45 = vsel %vm818_vm4, %v854_v49, %v855_v39 }
  0x86   : > { %869 = vrot.lane.b32.xlu0 %v5256_v25, %s4438_s9  ;;  %8631 = vst [vmem:[#allocation134_spill] sm:$0xff] %v5321_v45 }
  0x88   : > { %871 = vrot.lane.b32.xlu1 %v5263_v54, %s4438_s9 }
  0x8a   : > { %873 = vrot.lane.b32.xlu0 %v5270_v52, %s4438_s9  ;;  %v5304_v44 = vpop.permute.xlu0 %4323 }
  0x8b   : > { %8626 = vst [vmem:[#allocation131_spill] sm:$0xff] %v5304_v44  ;;  %v8633_v44 = vld [vmem:[#allocation64_spill] sm:$0xff] }
  0x8c   : > { %875 = vrot.lane.b32.xlu1 %v5277_v58, %s4438_s9  ;;  %v860_v59 = vrot.slane %v8633_v44, 2 }
  0x8e   : > { %877 = vrot.lane.b32.xlu0 %v5284_v21, %s4438_s9  ;;  %v5337_v49 = vsel %vm818_vm4, %v860_v59, %v861_v24 }
  0x8f   : > { %8636 = vst [vmem:[#allocation138_spill] sm:$0xff] %v5337_v49 }
  0x90   : > { %879 = vrot.lane.b32.xlu1 %v5291_v33, %s4438_s9 }
  0x92   : > { %881 = vrot.lane.b32.xlu0 %v5298_v50, %s4438_s9 }
  0x94   : > { %883 = vrot.lane.b32.xlu1 %v5307_v60, %s4438_s9 }
  0x96   : > { %v5323_v36 = vpop.permute.xlu1 %527  ;;  %885 = vrot.lane.b32.xlu0 %v5314_v30, %s4438_s9 }
  0x97   : > { %8632 = vst [vmem:[#allocation135_spill] sm:$0xff] %v5323_v36  ;;  %v5329_v38 = vpop.permute.xlu0 %525 }
  0x98   : > { %8634 = vst [vmem:[#allocation136_spill] sm:$0xff] %v5329_v38  ;;  %887 = vrot.lane.b32.xlu1 %v5321_v45, %s4438_s9 }
  0x9a   : > { %v5339_v39 = vpop.permute.xlu1 %529  ;;  %889 = vrot.lane.b32.xlu0 %v5332_v5, %s4438_s9 }
  0x9b   : > { %8637 = vst [vmem:[#allocation139_spill] sm:$0xff] %v5339_v39  ;;  %v5345_v36 = vpop.permute.xlu0 %531 }
  0x9c   : > { %891 = vrot.lane.b32.xlu1 %v5337_v49, %s4438_s9  ;;  %8638 = vst [vmem:[#allocation140_spill] sm:$0xff] %v5345_v36  ;;  %v4361_v36 = vld [vmem:[%s4541_s6 + $0x70] sm:$0xff]  }
  0x9d   : > { %v323_v39 = vrot.slane %v4361_v36, 7  ;;  %v8654_v36 = vld [vmem:[#allocation6_spill] sm:$0xff] }
  0x9e   : > { %894 = vrot.lane.b32.xlu0 %v8567_v13, %s4439_s10  ;;  %v5349_v40 = vpop.permute.xlu1 %533 }
  0x9f   : > { %8639 = vst [vmem:[#allocation141_spill] sm:$0xff] %v5349_v40  ;;  %v5401_v57 = vsel %vm325_vm1, 0, %v323_v39  ;;  %v5451_v8 = vsel %vm325_vm1, %v323_v39, 0  ;;  %v8680_v39 = vld [vmem:[#allocation67_spill] sm:$0xff] }
  0xa0   : > { %896 = vrot.lane.b32.xlu1 %v4558_v16, %s4439_s10  ;;  %v5353_v24 = vpop.permute.xlu0 %535  ;;  %8651 = vst [vmem:[#allocation153_spill] sm:$0xff] %v5401_v57  ;;  %v5444_v62 = vshll.u32 %v5401_v57, 16  ;;  %8673 = vst [vmem:[#allocation162_spill] sm:$0xff] %v5451_v8  ;;  %v8348_v10 = vshll.u32 %v5451_v8, 16 }
  0xa1   : > { %8640 = vst [vmem:[#allocation142_spill] sm:$0xff] %v5353_v24  ;;  %v8665_v24 = vld [vmem:[#allocation30_spill] sm:$0xff] }
  0xa2   : > { %898 = vrot.lane.b32.xlu0 %v4548_v9, %s4439_s10  ;;  %8670 = vst [vmem:[#allocation160_spill] sm:$0xff] %v5444_v62  ;;  %v930_v15 = vrot.slane %v5444_v62, 1 }
  0xa4   : > { %900 = vrot.lane.b32.xlu1 %v8613_v41, %s4439_s10  ;;  %v5359_v55 = vpop.permute.xlu1 %537 }
  0xa5   : > { %8641 = vst [vmem:[#allocation143_spill] sm:$0xff] %v5359_v55  ;;  %v5361_v59 = vpop.permute.xlu0 %539 }
  0xa6   : > { %8642 = vst [vmem:[#allocation144_spill] sm:$0xff] %v5361_v59  ;;  %902 = vrot.lane.b32.xlu0 %v8614_v19, %s4439_s10 }
  0xa8   : > { %904 = vrot.lane.b32.xlu1 %v8615_v32, %s4439_s10  ;;  %v5367_v38 = vpop.permute.xlu1 %541 }
  0xa9   : > { %8643 = vst [vmem:[#allocation145_spill] sm:$0xff] %v5367_v38  ;;  %v5371_v13 = vpop.permute.xlu0 %543 }
  0xaa   : > { %906 = vrot.lane.b32.xlu0 %v8617_v2, %s4439_s10  ;;  %8644 = vst [vmem:[#allocation146_spill] sm:$0xff] %v5371_v13 }
  0xac   : > { %908 = vrot.lane.b32.xlu1 %v4674_v29, %s4439_s10 }
  0xae   : > { %910 = vrot.lane.b32.xlu0 %v4680_v31, %s4439_s10  ;;  %v5377_v59 = vpop.permute.xlu1 %545 }
  0xaf   : > { %8645 = vst [vmem:[#allocation147_spill] sm:$0xff] %v5377_v59  ;;  %v5379_v55 = vpop.permute.xlu0 %547 }
  0xb0   : > { %8646 = vst [vmem:[#allocation148_spill] sm:$0xff] %v5379_v55  ;;  %912 = vrot.lane.b32.xlu1 %v8621_v27, %s4439_s10  ;;  %v8658_v55 = vld [vmem:[#allocation14_spill] sm:$0xff] }
  0xb2   : > { %914 = vrot.lane.b32.xlu0 %v8623_v23, %s4439_s10  ;;  %v5386_v38 = vpop.permute.xlu1 %549 }
  0xb3   : > { %8647 = vst [vmem:[#allocation149_spill] sm:$0xff] %v5386_v38 }
  0xb4   : > { %v5388_v13 = vpop.permute.xlu0 %551  ;;  %916 = vrot.lane.b32.xlu1 %v8625_v17, %s4439_s10 }
  0xb5   : > { %8648 = vst [vmem:[#allocation150_spill] sm:$0xff] %v5388_v13 }
  0xb6   : > { %918 = vrot.lane.b32.xlu0 %v8628_v51, %s4439_s10  ;;  %v5394_v59 = vpop.permute.xlu1 %4328 }
  0xb7   : > { %8649 = vst [vmem:[#allocation151_spill] sm:$0xff] %v5394_v59 }
  0xb8   : > { %v5396_v53 = vpop.permute.xlu0 %629  ;;  %920 = vrot.lane.b32.xlu1 %v8630_v22, %s4439_s10 }
  0xb9   : > { %8650 = vst [vmem:[#allocation152_spill] sm:$0xff] %v5396_v53 }
  0xba   : > { %922 = vrot.lane.b32.xlu0 %v8633_v44, %s4439_s10  ;;  %v5405_v13 = vpop.permute.xlu1 %631 }
  0xbb   : > { %8652 = vst [vmem:[#allocation154_spill] sm:$0xff] %v5405_v13 }
  0xbc   : > { %v5407_v38 = vpop.permute.xlu0 %633  ;;  %924 = vrot.lane.b32.xlu1 %v5401_v57, %s4439_s10 }
  0xbd   : > { %8653 = vst [vmem:[#allocation155_spill] sm:$0xff] %v5407_v38 }
  0xbe   : > { %4338 = vrot.lane.b32.xlu0 %v8654_v36, %s4440_s11  ;;  %v5413_v53 = vpop.permute.xlu1 %635 }
  0xbf   : > { %8655 = vst [vmem:[#allocation6_spill] sm:$0xff] %v5413_v53 }
  0xc0   : > { %v5415_v59 = vpop.permute.xlu0 %637  ;;  %938 = vrot.lane.b32.xlu1 %v8657_v34, %s4440_s11 }
  0xc1   : > { %8656 = vst [vmem:[#allocation156_spill] sm:$0xff] %v5415_v59  ;;  %v8666_v59 = vld [vmem:[#allocation40_spill] sm:$0xff] }
  0xc2   : > { %940 = vrot.lane.b32.xlu0 %v8658_v55, %s4440_s11  ;;  %v5421_v13 = vpop.permute.xlu1 %639 }
  0xc3   : > { %8659 = vst [vmem:[#allocation18_spill] sm:$0xff] %v5421_v13 }
  0xc4   : > { %v5423_v38 = vpop.permute.xlu0 %641  ;;  %942 = vrot.lane.b32.xlu1 %v8661_v6, %s4440_s11 }
  0xc5   : > { %8660 = vst [vmem:[#allocation14_spill] sm:$0xff] %v5423_v38  ;;  %v8669_v38 = vld [vmem:[#allocation47_spill] sm:$0xff] }
  0xc6   : > { %944 = vrot.lane.b32.xlu0 %v8662_v18, %s4440_s11  ;;  %v5429_v36 = vpop.permute.xlu1 %643 }
  0xc7   : > { %8663 = vst [vmem:[#allocation24_spill] sm:$0xff] %v5429_v36  ;;  %v8671_v36 = vld [vmem:[#allocation49_spill] sm:$0xff] }
  0xc8   : > { %v5431_v53 = vpop.permute.xlu0 %645  ;;  %946 = vrot.lane.b32.xlu1 %v8665_v24, %s4440_s11 }
  0xc9   : > { %8664 = vst [vmem:[#allocation157_spill] sm:$0xff] %v5431_v53 }
  0xca   : > { %948 = vrot.lane.b32.xlu0 %v8666_v59, %s4440_s11  ;;  %v5437_v40 = vpop.permute.xlu1 %647  ;;  %v8681_v59 = vld [vmem:[#allocation69_spill] sm:$0xff] }
  0xcb   : > { %8667 = vst [vmem:[#allocation158_spill] sm:$0xff] %v5437_v40  ;;  %v8675_v40 = vld [vmem:[#allocation50_spill] sm:$0xff] }
  0xcc   : > { %v5439_v13 = vpop.permute.xlu0 %649  ;;  %950 = vrot.lane.b32.xlu1 %v8669_v38, %s4440_s11  ;;  %v8677_v38 = vld [vmem:[#allocation60_spill] sm:$0xff] }
  0xcd   : > { %8668 = vst [vmem:[#allocation159_spill] sm:$0xff] %v5439_v13  ;;  %v5458_v13 = vshrl.u32 %v5401_v57, 16 }
  0xce   : > { %952 = vrot.lane.b32.xlu0 %v8671_v36, %s4440_s11  ;;  %v5448_v53 = vpop.permute.xlu1 %651 }
  0xcf   : > { %8672 = vst [vmem:[#allocation161_spill] sm:$0xff] %v5448_v53  ;;  %8676 = vst [vmem:[#allocation164_spill] sm:$0xff] %v5458_v13 }
  0xd0   : > { %v5453_v43 = vpop.permute.xlu0 %653  ;;  %954 = vrot.lane.b32.xlu1 %v8675_v40, %s4440_s11  ;;  %v934_v40 = vrot.slane %v8348_v10, 1  ;;  %v8689_v10 = vld [vmem:[#allocation71_spill] sm:$0xff] }
  0xd1   : > { %8674 = vst [vmem:[#allocation163_spill] sm:$0xff] %v5453_v43  ;;  %v931_v43 = vor.u32 %v930_v15, %v5458_v13 }
  0xd2   : > { %956 = vrot.lane.b32.xlu0 %v8677_v38, %s4440_s11  ;;  %v5464_v36 = vpop.permute.xlu1 %655  ;;  %v8684_v38 = vld [vmem:[#allocation70_spill] sm:$0xff] }
  0xd3   : > { %8678 = vst [vmem:[#allocation165_spill] sm:$0xff] %v5464_v36  ;;  %v8686_v36 = vld [vmem:[#allocation72_spill] sm:$0xff] }
  0xd4   : > { %v5466_v53 = vpop.permute.xlu0 %788  ;;  %958 = vrot.lane.b32.xlu1 %v8680_v39, %s4440_s11 }
  0xd5   : > { %8679 = vst [vmem:[#allocation166_spill] sm:$0xff] %v5466_v53  ;;  %v5482_v53 = vsel %vm375_vm0, %v931_v43, %v934_v40  ;;  %v8692_v43 = vld [vmem:[#allocation73_spill] sm:$0xff]  ;;  %v8693_v40 = vld [vmem:[#allocation76_spill] sm:$0xff] }
  0xd6   : > { %960 = vrot.lane.b32.xlu0 %v8681_v59, %s4440_s11  ;;  %v5475_v24 = vpop.permute.xlu1 %790  ;;  %8685 = vst [vmem:[#allocation70_spill] sm:$0xff] %v5482_v53 }
  0xd7   : > { %8682 = vst [vmem:[#allocation69_spill] sm:$0xff] %v5475_v24 }
  0xd8   : > { %v5477_v18 = vpop.permute.xlu0 %792  ;;  %962 = vrot.lane.b32.xlu1 %v8684_v38, %s4440_s11 }
  0xd9   : > { %8683 = vst [vmem:[#allocation167_spill] sm:$0xff] %v5477_v18 }
  0xda   : > { %964 = vrot.lane.b32.xlu0 %v8686_v36, %s4440_s11  ;;  %v5486_v15 = vpop.permute.xlu1 %794  ;;  %v8697_v36 = vld [vmem:[#allocation79_spill] sm:$0xff] }
  0xdb   : > { %8687 = vst [vmem:[#allocation168_spill] sm:$0xff] %v5486_v15 }
  0xdc   : > { %v5488_v39 = vpop.permute.xlu0 %796  ;;  %966 = vrot.lane.b32.xlu1 %v5482_v53, %s4440_s11  ;;  %v8696_v53 = vld [vmem:[#allocation77_spill] sm:$0xff] }
  0xdd   : > { %8688 = vst [vmem:[#allocation169_spill] sm:$0xff] %v5488_v39 }
  0xde   : > { %4343 = vrot.lane.b32.xlu0 %v8689_v10, %s4441_s12  ;;  %v5494_v24 = vpop.permute.xlu1 %798 }
  0xdf   : > { %8690 = vst [vmem:[#allocation71_spill] sm:$0xff] %v5494_v24 }
  0xe0   : > { %v5496_v18 = vpop.permute.xlu0 %800  ;;  %974 = vrot.lane.b32.xlu1 %v8692_v43, %s4441_s12  ;;  %v8701_v43 = vld [vmem:[#allocation84_spill] sm:$0xff] }
  0xe1   : > { %8691 = vst [vmem:[#allocation170_spill] sm:$0xff] %v5496_v18  ;;  %v8700_v18 = vld [vmem:[#allocation81_spill] sm:$0xff] }
  0xe2   : > { %976 = vrot.lane.b32.xlu0 %v8693_v40, %s4441_s12  ;;  %v5502_v15 = vpop.permute.xlu1 %802 }
  0xe3   : > { %8694 = vst [vmem:[#allocation171_spill] sm:$0xff] %v5502_v15 }
  0xe4   : > { %v5504_v39 = vpop.permute.xlu0 %804  ;;  %978 = vrot.lane.b32.xlu1 %v8696_v53, %s4441_s12  ;;  %v8705_v53 = vld [vmem:[#allocation88_spill] sm:$0xff] }
  0xe5   : > { %8695 = vst [vmem:[#allocation172_spill] sm:$0xff] %v5504_v39  ;;  %v8704_v39 = vld [vmem:[#allocation86_spill] sm:$0xff] }
  0xe6   : > { %980 = vrot.lane.b32.xlu0 %v8697_v36, %s4441_s12  ;;  %v5510_v10 = vpop.permute.xlu1 %806 }
  0xe7   : > { %8698 = vst [vmem:[#allocation173_spill] sm:$0xff] %v5510_v10 }
  0xe8   : > { %v5512_v24 = vpop.permute.xlu0 %808  ;;  %982 = vrot.lane.b32.xlu1 %v8700_v18, %s4441_s12  ;;  %v8709_v18 = vld [vmem:[#allocation93_spill] sm:$0xff] }
  0xe9   : > { %8699 = vst [vmem:[#allocation174_spill] sm:$0xff] %v5512_v24  ;;  %v8708_v24 = vld [vmem:[#allocation90_spill] sm:$0xff] }
  0xea   : > { %984 = vrot.lane.b32.xlu0 %v8701_v43, %s4441_s12  ;;  %v5518_v40 = vpop.permute.xlu1 %810 }
  0xeb   : > { %8702 = vst [vmem:[#allocation175_spill] sm:$0xff] %v5518_v40 }
  0xec   : > { %v5520_v15 = vpop.permute.xlu0 %812  ;;  %986 = vrot.lane.b32.xlu1 %v8704_v39, %s4441_s12  ;;  %v969_v39 = vrot.slane %v5401_v57, 1 }
  0xed   : > { %8703 = vst [vmem:[#allocation176_spill] sm:$0xff] %v5520_v15  ;;  %v8712_v15 = vld [vmem:[#allocation94_spill] sm:$0xff] }
  0xee   : > { %988 = vrot.lane.b32.xlu0 %v8705_v53, %s4441_s12  ;;  %v5526_v36 = vpop.permute.xlu1 %814  ;;  %v5542_v53 = vrot.slane %v5451_v8, 1 }
  0xef   : > { %8706 = vst [vmem:[#allocation177_spill] sm:$0xff] %v5526_v36 }
  0xf0   : > { %v5528_v10 = vpop.permute.xlu0 %816  ;;  %990 = vrot.lane.b32.xlu1 %v8708_v24, %s4441_s12  ;;  %8713 = vst [vmem:[#allocation180_spill] sm:$0xff] %v5542_v53 }
  0xf1   : > { %8707 = vst [vmem:[#allocation178_spill] sm:$0xff] %v5528_v10  ;;  %v8714_v10 = vld [vmem:[#allocation96_spill] sm:$0xff] }
  0xf2   : > { %992 = vrot.lane.b32.xlu0 %v8709_v18, %s4441_s12  ;;  %v5534_v43 = vpop.permute.xlu1 %4333 }
  0xf3   : > { %8710 = vst [vmem:[#allocation93_spill] sm:$0xff] %v5534_v43 }
  0xf4   : > { %v5536_v40 = vpop.permute.xlu0 %865  ;;  %994 = vrot.lane.b32.xlu1 %v8712_v15, %s4441_s12 }
  0xf5   : > { %8711 = vst [vmem:[#allocation179_spill] sm:$0xff] %v5536_v40  ;;  %v5554_v40 = vsel %vm582_vm2, %v969_v39, %v5542_v53 }
  0xf6   : > { %996 = vrot.lane.b32.xlu0 %v8714_v10, %s4441_s12  ;;  %v5546_v36 = vpop.permute.xlu1 %867 }
  0xf7   : > { %8715 = vst [vmem:[#allocation96_spill] sm:$0xff] %v5546_v36 }
  0xf8   : > { %v5548_v24 = vpop.permute.xlu0 %869  ;;  %998 = vrot.lane.b32.xlu1 %v5022_v11, %s4441_s12 }
  0xf9   : > { %8716 = vst [vmem:[#allocation181_spill] sm:$0xff] %v5548_v24 }
  0xfa   : > { %1000 = vrot.lane.b32.xlu0 %v5039_v46, %s4441_s12  ;;  %v5558_v43 = vpop.permute.xlu1 %871 }
  0xfb   : > { %8717 = vst [vmem:[#allocation182_spill] sm:$0xff] %v5558_v43 }
  0xfc   : > { %v5560_v15 = vpop.permute.xlu0 %873  ;;  %1002 = vrot.lane.b32.xlu1 %v5554_v40, %s4441_s12 }
  0xfd   : > { %8718 = vst [vmem:[#allocation183_spill] sm:$0xff] %v5560_v15  ;;  %v8730_v15 = vshll.u32 %v5451_v8, 16 }
  0xfe   : > { %1013 = vrot.lane.b32.xlu0 %v5026_v20, %s4442_s13  ;;  %v5566_v24 = vpop.permute.xlu1 %875 }
  0xff   : > { %8719 = vst [vmem:[#allocation184_spill] sm:$0xff] %v5566_v24 }
 0x100   : > { %v5568_v36 = vpop.permute.xlu0 %877  ;;  %1015 = vrot.lane.b32.xlu1 %v5062_v4, %s4442_s13 }
 0x101   : > { %8720 = vst [vmem:[#allocation185_spill] sm:$0xff] %v5568_v36 }
 0x102   : > { %1017 = vrot.lane.b32.xlu0 %v4950_v0, %s4442_s13  ;;  %v5574_v39 = vpop.permute.xlu1 %879 }
 0x103   : > { %8721 = vst [vmem:[#allocation186_spill] sm:$0xff] %v5574_v39 }
 0x104   : > { %v5576_v43 = vpop.permute.xlu0 %881  ;;  %1019 = vrot.lane.b32.xlu1 %v5088_v26, %s4442_s13 }
 0x105   : > { %8722 = vst [vmem:[#allocation187_spill] sm:$0xff] %v5576_v43  ;;  %v5597_v43 = vshrl.u32 %v5451_v8, 16 }
 0x106   : > { %1021 = vrot.lane.b32.xlu0 %v5104_v35, %s4442_s13  ;;  %v5582_v20 = vpop.permute.xlu1 %883 }
 0x107   : > { %8723 = vst [vmem:[#allocation188_spill] sm:$0xff] %v5582_v20  ;;  %8727 = vst [vmem:[#allocation192_spill] sm:$0xff] %v5597_v43  ;;  %v5610_v24 = vrot.slane %v5597_v43, 1 }
 0x108   : > { %v5584_v53 = vpop.permute.xlu0 %885  ;;  %1023 = vrot.lane.b32.xlu1 %v5127_v42, %s4442_s13 }
 0x109   : > { %8724 = vst [vmem:[#allocation189_spill] sm:$0xff] %v5584_v53 }
 0x10a   : > { %1025 = vrot.lane.b32.xlu0 %v5143_v61, %s4442_s13  ;;  %v5590_v36 = vpop.permute.xlu1 %887 }
 0x10b   : > { %8725 = vst [vmem:[#allocation190_spill] sm:$0xff] %v5590_v36  ;;  %v1004_v36 = vrot.slane %v5458_v13, 1 }
 0x10c   : > { %v5592_v39 = vpop.permute.xlu0 %889  ;;  %1027 = vrot.lane.b32.xlu1 %v5155_v1, %s4442_s13  ;;  %v1010_v1 = vrot.slane %v8730_v15, 2 }
 0x10d   : > { %8726 = vst [vmem:[#allocation191_spill] sm:$0xff] %v5592_v39  ;;  %v1005_v39 = vrot.slane %v5444_v62, 2 }
 0x10e   : > { %1029 = vrot.lane.b32.xlu0 %v5171_v37, %s4442_s13  ;;  %v5601_v53 = vpop.permute.xlu1 %891  ;;  %v1011_v13 = vor.u32 %v1010_v1, %v5610_v24 }
 0x10f   : > { %8728 = vst [vmem:[#allocation193_spill] sm:$0xff] %v5601_v53 }
 0x110   : > { %v5603_v20 = vpop.permute.xlu0 %894  ;;  %1031 = vrot.lane.b32.xlu1 %v5184_v3, %s4442_s13 }
 0x111   : > { %8729 = vst [vmem:[#allocation194_spill] sm:$0xff] %v5603_v20  ;;  %v1006_v20 = vor.u32 %v1005_v39, %v1004_v36 }
 0x112   : > { %1033 = vrot.lane.b32.xlu0 %v5197_v63, %s4442_s13  ;;  %v5616_v37 = vpop.permute.xlu1 %896 }
 0x113   : > { %8731 = vst [vmem:[#allocation195_spill] sm:$0xff] %v5616_v37  ;;  %v5632_v15 = vsel %vm657_vm3, %v1006_v20, %v1011_v13 }
 0x114   : > { %v5618_v53 = vpop.permute.xlu0 %898  ;;  %1035 = vrot.lane.b32.xlu1 %v5210_v47, %s4442_s13 }
 0x115   : > { %8732 = vst [vmem:[#allocation196_spill] sm:$0xff] %v5618_v53 }
 0x116   : > { %1037 = vrot.lane.b32.xlu0 %v5216_v14, %s4442_s13  ;;  %v5625_v62 = vpop.permute.xlu1 %900 }
 0x117   : > { %8733 = vst [vmem:[#allocation197_spill] sm:$0xff] %v5625_v62 }
 0x118   : > { %v5627_v43 = vpop.permute.xlu0 %902  ;;  %1039 = vrot.lane.b32.xlu1 %v5225_v7, %s4442_s13 }
 0x119   : > { %8734 = vst [vmem:[#allocation198_spill] sm:$0xff] %v5627_v43 }
 0x11a   : > { %1041 = vrot.lane.b32.xlu0 %v5230_v12, %s4442_s13  ;;  %v5636_v53 = vpop.permute.xlu1 %904 }
 0x11b   : > { %8735 = vst [vmem:[#allocation199_spill] sm:$0xff] %v5636_v53 }
 0x11c   : > { %v5638_v36 = vpop.permute.xlu0 %906  ;;  %1043 = vrot.lane.b32.xlu1 %v5632_v15, %s4442_s13 }
 0x11d   : > { %8736 = vst [vmem:[#allocation200_spill] sm:$0xff] %v5638_v36 }
 0x11e   : > { %1048 = vrot.lane.b32.xlu0 %v4994_v56, %s4443_s14  ;;  %v5644_v1 = vpop.permute.xlu1 %908 }
 0x11f   : > { %8737 = vst [vmem:[#allocation201_spill] sm:$0xff] %v5644_v1 }
 0x120   : > { %v5646_v39 = vpop.permute.xlu0 %910  ;;  %1050 = vrot.lane.b32.xlu1 %v5243_v28, %s4443_s14 }
 0x121   : > { %8738 = vst [vmem:[#allocation202_spill] sm:$0xff] %v5646_v39 }
 0x122   : > { %1052 = vrot.lane.b32.xlu0 %v5249_v48, %s4443_s14  ;;  %v5652_v13 = vpop.permute.xlu1 %912 }
 0x123   : > { %8739 = vst [vmem:[#allocation203_spill] sm:$0xff] %v5652_v13 }
 0x124   : > { %v5654_v20 = vpop.permute.xlu0 %914  ;;  %1054 = vrot.lane.b32.xlu1 %v5256_v25, %s4443_s14 }
 0x125   : > { %8740 = vst [vmem:[#allocation204_spill] sm:$0xff] %v5654_v20 }
 0x126   : > { %1056 = vrot.lane.b32.xlu0 %v5263_v54, %s4443_s14  ;;  %v5660_v56 = vpop.permute.xlu1 %916 }
 0x127   : > { %8741 = vst [vmem:[#allocation205_spill] sm:$0xff] %v5660_v56  ;;  %v8806_v56 = vld [vmem:[#allocation81_spill] sm:$0xff] }
 0x128   : > { %v5662_v37 = vpop.permute.xlu0 %918  ;;  %1058 = vrot.lane.b32.xlu1 %v5270_v52, %s4443_s14 }
 0x129   : > { %8742 = vst [vmem:[#allocation206_spill] sm:$0xff] %v5662_v37  ;;  %v8789_v37 = vld [vmem:[#allocation67_spill] sm:$0xff] }
 0x12a   : > { %1060 = vrot.lane.b32.xlu0 %v5277_v58, %s4443_s14  ;;  %v5668_v39 = vpop.permute.xlu1 %920 }
 0x12b   : > { %8743 = vst [vmem:[#allocation207_spill] sm:$0xff] %v5668_v39 }
 0x12c   : > { %v5670_v13 = vpop.permute.xlu0 %922  ;;  %1062 = vrot.lane.b32.xlu1 %v5284_v21, %s4443_s14  ;;  %v1045_v21 = vrot.slane %v5401_v57, 2 }
 0x12d   : > { %8744 = vst [vmem:[#allocation208_spill] sm:$0xff] %v5670_v13 }
 0x12e   : > { %1064 = vrot.lane.b32.xlu0 %v5291_v33, %s4443_s14  ;;  %v5676_v20 = vpop.permute.xlu1 %924  ;;  %v1046_v33 = vrot.slane %v5451_v8, 2 }
 0x12f   : > { %8745 = vst [vmem:[#allocation209_spill] sm:$0xff] %v5676_v20 }
 0x130   : > { %v5678_v54 = vpop.permute.xlu0 %4338  ;;  %1066 = vrot.lane.b32.xlu1 %v5298_v50, %s4443_s14 }
 0x131   : > { %8746 = vst [vmem:[#allocation210_spill] sm:$0xff] %v5678_v54 }
 0x132   : > { %1068 = vrot.lane.b32.xlu0 %v5307_v60, %s4443_s14  ;;  %v5684_v58 = vpop.permute.xlu1 %938 }
 0x133   : > { %8747 = vst [vmem:[#allocation211_spill] sm:$0xff] %v5684_v58  ;;  %v5701_v58 = vsel %vm818_vm4, %v1045_v21, %v1046_v33 }
 0x134   : > { %v5686_v52 = vpop.permute.xlu0 %940  ;;  %1070 = vrot.lane.b32.xlu1 %v5314_v30, %s4443_s14  ;;  %8751 = vst [vmem:[#allocation215_spill] sm:$0xff] %v5701_v58 }
 0x135   : > { %8748 = vst [vmem:[#allocation212_spill] sm:$0xff] %v5686_v52 }
 0x136   : > { %1072 = vrot.lane.b32.xlu0 %v5321_v45, %s4443_s14  ;;  %v5694_v54 = vpop.permute.xlu1 %942 }
 0x137   : > { %8749 = vst [vmem:[#allocation213_spill] sm:$0xff] %v5694_v54 }
 0x138   : > { %v5696_v53 = vpop.permute.xlu0 %944  ;;  %1074 = vrot.lane.b32.xlu1 %v5332_v5, %s4443_s14 }
 0x139   : > { %8750 = vst [vmem:[#allocation214_spill] sm:$0xff] %v5696_v53 }
 0x13a   : > { %1076 = vrot.lane.b32.xlu0 %v5337_v49, %s4443_s14  ;;  %v5705_v52 = vpop.permute.xlu1 %946 }
 0x13b   : > { %8752 = vst [vmem:[#allocation216_spill] sm:$0xff] %v5705_v52  ;;  %v4362_v52 = vld [vmem:[%s4541_s6 + $0x78] sm:$0xff]   ;;  %s4378_s6 = scalar_lea.vmem %s4377_s5, 2048 }
 0x13c   : > { %v5707_v30 = vpop.permute.xlu0 %948  ;;  %1078 = vrot.lane.b32.xlu1 %v5701_v58, %s4443_s14 }
 0x13d   : > { %8753 = vst [vmem:[#allocation217_spill] sm:$0xff] %v5707_v30 }
 0x13e   : > { %1081 = vrot.lane.b32.xlu0 %v4558_v16, %s4444_s20  ;;  %v5713_v45 = vpop.permute.xlu1 %950 }
 0x13f   : > { %8754 = vst [vmem:[#allocation218_spill] sm:$0xff] %v5713_v45 }
 0x140   : > { %v5715_v5 = vpop.permute.xlu0 %952  ;;  %1083 = vrot.lane.b32.xlu1 %v4548_v9, %s4444_s20 }
 0x141   : > { %8755 = vst [vmem:[#allocation219_spill] sm:$0xff] %v5715_v5 }
 0x142   : > { %1085 = vrot.lane.b32.xlu0 %v8613_v41, %s4444_s20  ;;  %v5721_v21 = vpop.permute.xlu1 %954 }
 0x143   : > { %8756 = vst [vmem:[#allocation220_spill] sm:$0xff] %v5721_v21 }
 0x144   : > { %v5723_v33 = vpop.permute.xlu0 %956  ;;  %1087 = vrot.lane.b32.xlu1 %v8614_v19, %s4444_s20 }
 0x145   : > { %8757 = vst [vmem:[#allocation221_spill] sm:$0xff] %v5723_v33 }
 0x146   : > { %1089 = vrot.lane.b32.xlu0 %v8615_v32, %s4444_s20  ;;  %v5729_v16 = vpop.permute.xlu1 %958 }
 0x147   : > { %8758 = vst [vmem:[#allocation222_spill] sm:$0xff] %v5729_v16 }
 0x148   : > { %v5731_v58 = vpop.permute.xlu0 %960  ;;  %1091 = vrot.lane.b32.xlu1 %v8617_v2, %s4444_s20 }
 0x149   : > { %8759 = vst [vmem:[#allocation223_spill] sm:$0xff] %v5731_v58  ;;  %v8775_v58 = vld [vmem:[#allocation29_spill] sm:$0xff] }
 0x14a   : > { %1093 = vrot.lane.b32.xlu0 %v4674_v29, %s4444_s20  ;;  %v5737_v5 = vpop.permute.xlu1 %962 }
 0x14b   : > { %8760 = vst [vmem:[#allocation224_spill] sm:$0xff] %v5737_v5 }
 0x14c   : > { %v5739_v21 = vpop.permute.xlu0 %964  ;;  %1095 = vrot.lane.b32.xlu1 %v4680_v31, %s4444_s20  ;;  %v324_v31 = vrot.slane %v4362_v52, 7 }
 0x14d   : > { %8761 = vst [vmem:[#allocation225_spill] sm:$0xff] %v5739_v21 }
 0x14e   : > { %1097 = vrot.lane.b32.xlu0 %v8621_v27, %s4444_s20  ;;  %v5745_v33 = vpop.permute.xlu1 %966  ;;  %v5769_v50 = vsel %vm325_vm1, 0, %v324_v31 }
 0x14f   : > { %8762 = vst [vmem:[#allocation226_spill] sm:$0xff] %v5745_v33  ;;  %8768 = vst [vmem:[#allocation232_spill] sm:$0xff] %v5769_v50  ;;  %v5826_v19 = vshrl.u32 %v5769_v50, 16 }
 0x150   : > { %v5747_v49 = vpop.permute.xlu0 %4343  ;;  %1099 = vrot.lane.b32.xlu1 %v8623_v23, %s4444_s20  ;;  %v8855_v23 = vld [vmem:[#allocation55_spill] sm:$0xff] }
 0x151   : > { %8763 = vst [vmem:[#allocation227_spill] sm:$0xff] %v5747_v49 }
 0x152   : > { %1101 = vrot.lane.b32.xlu0 %v8625_v17, %s4444_s20  ;;  %v5754_v29 = vpop.permute.xlu1 %974 }
 0x153   : > { %8764 = vst [vmem:[#allocation228_spill] sm:$0xff] %v5754_v29 }
 0x154   : > { %v5756_v60 = vpop.permute.xlu0 %976  ;;  %1103 = vrot.lane.b32.xlu1 %v8628_v51, %s4444_s20 }
 0x155   : > { %8765 = vst [vmem:[#allocation229_spill] sm:$0xff] %v5756_v60 }
 0x156   : > { %1105 = vrot.lane.b32.xlu0 %v8630_v22, %s4444_s20  ;;  %v5762_v27 = vpop.permute.xlu1 %978 }
 0x157   : > { %8766 = vst [vmem:[#allocation230_spill] sm:$0xff] %v5762_v27  ;;  %v8776_v27 = vld [vmem:[#allocation30_spill] sm:$0xff] }
 0x158   : > { %v5764_v49 = vpop.permute.xlu0 %980  ;;  %1107 = vrot.lane.b32.xlu1 %v8633_v44, %s4444_s20 }
 0x159   : > { %8767 = vst [vmem:[#allocation231_spill] sm:$0xff] %v5764_v49 }
 0x15a   : > { %1109 = vrot.lane.b32.xlu0 %v5401_v57, %s4444_s20  ;;  %v5773_v60 = vpop.permute.xlu1 %982 }
 0x15b   : > { %8769 = vst [vmem:[#allocation233_spill] sm:$0xff] %v5773_v60 }
 0x15c   : > { %v5775_v29 = vpop.permute.xlu0 %984  ;;  %1111 = vrot.lane.b32.xlu1 %v5769_v50, %s4444_s20 }
 0x15d   : > { %8770 = vst [vmem:[#allocation234_spill] sm:$0xff] %v5775_v29 }
 0x15e   : > { %1123 = vrot.lane.b32.xlu0 %v8657_v34, %s4445_s22  ;;  %v5781_v52 = vpop.permute.xlu1 %986 }
 0x15f   : > { %8771 = vst [vmem:[#allocation235_spill] sm:$0xff] %v5781_v52 }
 0x160   : > { %v5783_v49 = vpop.permute.xlu0 %988  ;;  %1125 = vrot.lane.b32.xlu1 %v8658_v55, %s4445_s22  ;;  %v8780_v55 = vld [vmem:[#allocation47_spill] sm:$0xff] }
 0x161   : > { %8772 = vst [vmem:[#allocation236_spill] sm:$0xff] %v5783_v49  ;;  %v8779_v49 = vld [vmem:[#allocation40_spill] sm:$0xff] }
 0x162   : > { %1127 = vrot.lane.b32.xlu0 %v8661_v6, %s4445_s22  ;;  %v5789_v57 = vpop.permute.xlu1 %990 }
 0x163   : > { %8773 = vst [vmem:[#allocation237_spill] sm:$0xff] %v5789_v57 }
 0x164   : > { %v5791_v60 = vpop.permute.xlu0 %992  ;;  %1129 = vrot.lane.b32.xlu1 %v8775_v58, %s4445_s22  ;;  %v5812_v58 = vshll.u32 %v5769_v50, 16 }
 0x165   : > { %8774 = vst [vmem:[#allocation238_spill] sm:$0xff] %v5791_v60  ;;  %v8783_v60 = vld [vmem:[#allocation49_spill] sm:$0xff] }
 0x166   : > { %1131 = vrot.lane.b32.xlu0 %v8776_v27, %s4445_s22  ;;  %v5797_v34 = vpop.permute.xlu1 %994  ;;  %v8784_v27 = vld [vmem:[#allocation50_spill] sm:$0xff] }
 0x167   : > { %8777 = vst [vmem:[#allocation29_spill] sm:$0xff] %v5797_v34 }
 0x168   : > { %v5799_v53 = vpop.permute.xlu0 %996  ;;  %1133 = vrot.lane.b32.xlu1 %v8779_v49, %s4445_s22  ;;  %v5819_v49 = vsel %vm325_vm1, %v324_v31, 0  ;;  %vm1654_vm1 = vcmask 392192  }
 0x169   : > { %8778 = vst [vmem:[#allocation30_spill] sm:$0xff] %v5799_v53  ;;  %8786 = vst [vmem:[#allocation50_spill] sm:$0xff] %v5819_v49  ;;  %v8407_v16 = vshll.u32 %v5819_v49, 16 }
 0x16a   : > { %1135 = vrot.lane.b32.xlu0 %v8780_v55, %s4445_s22  ;;  %v5805_v6 = vpop.permute.xlu1 %998  ;;  %v8788_v55 = vld [vmem:[#allocation60_spill] sm:$0xff] }
 0x16b   : > { %8781 = vst [vmem:[#allocation40_spill] sm:$0xff] %v5805_v6 }
 0x16c   : > { %v5807_v57 = vpop.permute.xlu0 %1000  ;;  %1137 = vrot.lane.b32.xlu1 %v8783_v60, %s4445_s22  ;;  %v1117_v60 = vrot.slane %v5812_v58, 1 }
 0x16d   : > { %8782 = vst [vmem:[#allocation47_spill] sm:$0xff] %v5807_v57 }
 0x16e   : > { %1139 = vrot.lane.b32.xlu0 %v8784_v27, %s4445_s22  ;;  %v5816_v53 = vpop.permute.xlu1 %1002  ;;  %v1118_v31 = vor.u32 %v1117_v60, %v5826_v19 }
 0x16f   : > { %8785 = vst [vmem:[#allocation49_spill] sm:$0xff] %v5816_v53 }
 0x170   : > { %v5821_v34 = vpop.permute.xlu0 %1013  ;;  %1141 = vrot.lane.b32.xlu1 %v8788_v55, %s4445_s22  ;;  %v1121_v55 = vrot.slane %v8407_v16, 1 }
 0x171   : > { %8787 = vst [vmem:[#allocation239_spill] sm:$0xff] %v5821_v34 }
 0x172   : > { %1143 = vrot.lane.b32.xlu0 %v8789_v37, %s4445_s22  ;;  %v5832_v27 = vpop.permute.xlu1 %1015  ;;  %v8794_v37 = vld [vmem:[#allocation72_spill] sm:$0xff] }
 0x173   : > { %8790 = vst [vmem:[#allocation60_spill] sm:$0xff] %v5832_v27 }
 0x174   : > { %v5834_v54 = vpop.permute.xlu0 %1017  ;;  %1145 = vrot.lane.b32.xlu1 %v8681_v59, %s4445_s22  ;;  %v8795_v59 = vld [vmem:[#allocation70_spill] sm:$0xff] }
 0x175   : > { %8791 = vst [vmem:[#allocation67_spill] sm:$0xff] %v5834_v54  ;;  %v5850_v54 = vsel %vm375_vm0, %v1118_v31, %v1121_v55  ;;  %v8801_v31 = vld [vmem:[#allocation76_spill] sm:$0xff]  ;;  %v8802_v55 = vld [vmem:[#allocation77_spill] sm:$0xff] }
 0x176   : > { %1147 = vrot.lane.b32.xlu0 %v8684_v38, %s4445_s22  ;;  %v5843_v34 = vpop.permute.xlu1 %1019  ;;  %v8798_v38 = vld [vmem:[#allocation73_spill] sm:$0xff] }
 0x177   : > { %8792 = vst [vmem:[#allocation240_spill] sm:$0xff] %v5843_v34  ;;  %v8805_v34 = vld [vmem:[#allocation79_spill] sm:$0xff] }
 0x178   : > { %v5845_v43 = vpop.permute.xlu0 %1021  ;;  %1149 = vrot.lane.b32.xlu1 %v8794_v37, %s4445_s22 }
 0x179   : > { %8793 = vst [vmem:[#allocation241_spill] sm:$0xff] %v5845_v43 }
 0x17a   : > { %1151 = vrot.lane.b32.xlu0 %v8795_v59, %s4445_s22  ;;  %v5854_v60 = vpop.permute.xlu1 %1023 }
 0x17b   : > { %8796 = vst [vmem:[#allocation72_spill] sm:$0xff] %v5854_v60 }
 0x17c   : > { %v5856_v27 = vpop.permute.xlu0 %1025  ;;  %1153 = vrot.lane.b32.xlu1 %v5850_v54, %s4445_s22  ;;  %s4178_s22 = sshll.u32 %s4500_s19, 10 }
 0x17d   : > { %8797 = vst [vmem:[#allocation70_spill] sm:$0xff] %v5856_v27 }
 0x17e   : > { %1159 = vrot.lane.b32.xlu0 %v8798_v38, %s4446_s23  ;;  %v5862_v16 = vpop.permute.xlu1 %1027 }
 0x17f   : > { %8799 = vst [vmem:[#allocation73_spill] sm:$0xff] %v5862_v16 }
 0x180   : > { %v5864_v37 = vpop.permute.xlu0 %1029  ;;  %1161 = vrot.lane.b32.xlu1 %v8801_v31, %s4446_s23  ;;  %v8810_v31 = vld [vmem:[#allocation86_spill] sm:$0xff] }
 0x181   : > { %8800 = vst [vmem:[#allocation242_spill] sm:$0xff] %v5864_v37  ;;  %v8809_v37 = vld [vmem:[#allocation84_spill] sm:$0xff] }
 0x182   : > { %1163 = vrot.lane.b32.xlu0 %v8802_v55, %s4446_s23  ;;  %v5870_v60 = vpop.permute.xlu1 %1031 }
 0x183   : > { %8803 = vst [vmem:[#allocation76_spill] sm:$0xff] %v5870_v60 }
 0x184   : > { %v5872_v43 = vpop.permute.xlu0 %1033  ;;  %1165 = vrot.lane.b32.xlu1 %v8805_v34, %s4446_s23  ;;  %v8814_v34 = vld [vmem:[#allocation90_spill] sm:$0xff] }
 0x185   : > { %8804 = vst [vmem:[#allocation77_spill] sm:$0xff] %v5872_v43  ;;  %v8813_v43 = vld [vmem:[#allocation88_spill] sm:$0xff] }
 0x186   : > { %1167 = vrot.lane.b32.xlu0 %v8806_v56, %s4446_s23  ;;  %v5878_v38 = vpop.permute.xlu1 %1035 }
 0x187   : > { %8807 = vst [vmem:[#allocation79_spill] sm:$0xff] %v5878_v38 }
 0x188   : > { %v5880_v62 = vpop.permute.xlu0 %1037  ;;  %1169 = vrot.lane.b32.xlu1 %v8809_v37, %s4446_s23  ;;  %v8817_v37 = vld [vmem:[#allocation94_spill] sm:$0xff] }
 0x189   : > { %8808 = vst [vmem:[#allocation81_spill] sm:$0xff] %v5880_v62 }
 0x18a   : > { %1171 = vrot.lane.b32.xlu0 %v8810_v31, %s4446_s23  ;;  %v5886_v55 = vpop.permute.xlu1 %1039 }
 0x18b   : > { %8811 = vst [vmem:[#allocation84_spill] sm:$0xff] %v5886_v55 }
 0x18c   : > { %v5888_v60 = vpop.permute.xlu0 %1041  ;;  %1173 = vrot.lane.b32.xlu1 %v8813_v43, %s4446_s23  ;;  %v1156_v43 = vrot.slane %v5769_v50, 1 }
 0x18d   : > { %8812 = vst [vmem:[#allocation86_spill] sm:$0xff] %v5888_v60 }
 0x18e   : > { %1175 = vrot.lane.b32.xlu0 %v8814_v34, %s4446_s23  ;;  %v5894_v56 = vpop.permute.xlu1 %1043  ;;  %v5910_v34 = vrot.slane %v5819_v49, 1 }
 0x18f   : > { %8815 = vst [vmem:[#allocation88_spill] sm:$0xff] %v5894_v56 }
 0x190   : > { %v5896_v38 = vpop.permute.xlu0 %1048  ;;  %1177 = vrot.lane.b32.xlu1 %v8709_v18, %s4446_s23  ;;  %8820 = vst [vmem:[#allocation244_spill] sm:$0xff] %v5910_v34 }
 0x191   : > { %8816 = vst [vmem:[#allocation90_spill] sm:$0xff] %v5896_v38 }
 0x192   : > { %1179 = vrot.lane.b32.xlu0 %v8817_v37, %s4446_s23  ;;  %v5902_v31 = vpop.permute.xlu1 %1050  ;;  %v5922_v37 = vsel %vm582_vm2, %v1156_v43, %v5910_v34  ;;  %vm1687_vm2 = vcmask 424960  }
 0x193   : > { %8818 = vst [vmem:[#allocation94_spill] sm:$0xff] %v5902_v31 }
 0x194   : > { %v5904_v62 = vpop.permute.xlu0 %1052  ;;  %1181 = vrot.lane.b32.xlu1 %v8714_v10, %s4446_s23 }
 0x195   : > { %8819 = vst [vmem:[#allocation243_spill] sm:$0xff] %v5904_v62 }
 0x196   : > { %1183 = vrot.lane.b32.xlu0 %v5022_v11, %s4446_s23  ;;  %v5914_v38 = vpop.permute.xlu1 %1054 }
 0x197   : > { %8821 = vst [vmem:[#allocation245_spill] sm:$0xff] %v5914_v38 }
 0x198   : > { %v5916_v18 = vpop.permute.xlu0 %1056  ;;  %1185 = vrot.lane.b32.xlu1 %v5039_v46, %s4446_s23 }
 0x199   : > { %8822 = vst [vmem:[#allocation246_spill] sm:$0xff] %v5916_v18 }
 0x19a   : > { %1187 = vrot.lane.b32.xlu0 %v5554_v40, %s4446_s23  ;;  %v5926_v10 = vpop.permute.xlu1 %1058 }
 0x19b   : > { %8823 = vst [vmem:[#allocation247_spill] sm:$0xff] %v5926_v10 }
 0x19c   : > { %v5928_v62 = vpop.permute.xlu0 %1060  ;;  %1189 = vrot.lane.b32.xlu1 %v5922_v37, %s4446_s23 }
 0x19e   : > { %1200 = vrot.lane.b32.xlu0 %v5062_v4, %s4447_s27  ;;  %v5934_v11 = vpop.permute.xlu1 %1062 }
 0x1a0   : > { %v5936_v46 = vpop.permute.xlu0 %1064  ;;  %1202 = vrot.lane.b32.xlu1 %v4950_v0, %s4447_s27  ;;  %v8829_v0 = vld [vmem:[#allocation116_spill] sm:$0xff] }
 0x1a1   : > { %8824 = vst [vmem:[#allocation248_spill] sm:$0xff] %v5936_v46 }
 0x1a2   : > { %1204 = vrot.lane.b32.xlu0 %v5088_v26, %s4447_s27  ;;  %v5942_v43 = vpop.permute.xlu1 %1066 }
 0x1a3   : > { %8825 = vst [vmem:[#allocation249_spill] sm:$0xff] %v5942_v43 }
 0x1a4   : > { %v5944_v10 = vpop.permute.xlu0 %1068  ;;  %1206 = vrot.lane.b32.xlu1 %v5104_v35, %s4447_s27  ;;  %v5965_v35 = vshrl.u32 %v5819_v49, 16 }
 0x1a5   : > { %8826 = vst [vmem:[#allocation250_spill] sm:$0xff] %v5944_v10  ;;  %v8830_v10 = vld [vmem:[#allocation119_spill] sm:$0xff] }
 0x1a6   : > { %1208 = vrot.lane.b32.xlu0 %v5127_v42, %s4447_s27  ;;  %v5950_v4 = vpop.permute.xlu1 %1070 }
 0x1a7   : > { %8827 = vst [vmem:[#allocation251_spill] sm:$0xff] %v5950_v4  ;;  %v5978_v4 = vrot.slane %v5965_v35, 1 }
 0x1a8   : > { %v5952_v18 = vpop.permute.xlu0 %1072  ;;  %1210 = vrot.lane.b32.xlu1 %v5143_v61, %s4447_s27  ;;  %v1191_v61 = vrot.slane %v5826_v19, 1 }
 0x1a9   : > { %8828 = vst [vmem:[#allocation252_spill] sm:$0xff] %v5952_v18  ;;  %8832 = vst [vmem:[#allocation119_spill] sm:$0xff] %v5978_v4 }
 0x1aa   : > { %1212 = vrot.lane.b32.xlu0 %v8829_v0, %s4447_s27  ;;  %v5958_v26 = vpop.permute.xlu1 %1074  ;;  %v1192_v0 = vrot.slane %v5812_v58, 2 }
 0x1ac   : > { %v5960_v38 = vpop.permute.xlu0 %1076  ;;  %1214 = vrot.lane.b32.xlu1 %v8830_v10, %s4447_s27  ;;  %v8833_v10 = vshll.u32 %v5819_v49, 16 }
 0x1ae   : > { %1216 = vrot.lane.b32.xlu0 %v5184_v3, %s4447_s27  ;;  %v5969_v42 = vpop.permute.xlu1 %1078  ;;  %v1197_v43 = vrot.slane %v8833_v10, 2 }
 0x1b0   : > { %v5971_v18 = vpop.permute.xlu0 %1081  ;;  %1218 = vrot.lane.b32.xlu1 %v5197_v63, %s4447_s27  ;;  %v1193_v63 = vor.u32 %v1192_v0, %v1191_v61  ;;  %v1198_v46 = vor.u32 %v1197_v43, %v5978_v4  ;;  %v8843_v0 = vld [vmem:[#allocation8_spill] sm:$0xff] }
 0x1b1   : > { %8831 = vst [vmem:[#allocation116_spill] sm:$0xff] %v5971_v18  ;;  %v8844_v10 = vshrl.u32 %v8843_v0, 16 }
 0x1b2   : > { %1220 = vrot.lane.b32.xlu0 %v5210_v47, %s4447_s27  ;;  %v5984_v3 = vpop.permute.xlu1 %1083  ;;  %v6000_v47 = vsel %vm657_vm3, %v1193_v63, %v1198_v46  ;;  %vm2813_vm3 = vcmask 1043456  }
 0x1b3   : > { %8834 = vst [vmem:[#allocation253_spill] sm:$0xff] %v5984_v3  ;;  %8838 = vst [vmem:[#allocation257_spill] sm:$0xff] %v6000_v47  ;;  %v8852_v3 = vrot.slane %v8843_v0, 1  ;;  %v8858_v0 = vld [vmem:[#allocation141_spill] sm:$0xff] }
 0x1b4   : > { %v5986_v31 = vpop.permute.xlu0 %1085  ;;  %1222 = vrot.lane.b32.xlu1 %v5216_v14, %s4447_s27 }
 0x1b5   : > { %8835 = vst [vmem:[#allocation254_spill] sm:$0xff] %v5986_v31  ;;  %v8851_v31 = vld [vmem:[#allocation54_spill] sm:$0xff] }
 0x1b6   : > { %1224 = vrot.lane.b32.xlu0 %v5225_v7, %s4447_s27  ;;  %v5993_v18 = vpop.permute.xlu1 %1087 }
 0x1b7   : > { %8836 = vst [vmem:[#allocation255_spill] sm:$0xff] %v5993_v18  ;;  %v8850_v18 = vld [vmem:[#allocation113_spill] sm:$0xff] }
 0x1b8   : > { %v5995_v17 = vpop.permute.xlu0 %1089  ;;  %1226 = vrot.lane.b32.xlu1 %v5230_v12, %s4447_s27 }
 0x1b9   : > { %8837 = vst [vmem:[#allocation256_spill] sm:$0xff] %v5995_v17  ;;  %v8849_v17 = vld [vmem:[#allocation12_spill] sm:$0xff] }
 0x1ba   : > { %1228 = vrot.lane.b32.xlu0 %v5632_v15, %s4447_s27  ;;  %v6004_v14 = vpop.permute.xlu1 %1091 }
 0x1bb   : > { %8839 = vst [vmem:[#allocation258_spill] sm:$0xff] %v6004_v14 }
 0x1bc   : > { %v6006_v61 = vpop.permute.xlu0 %1093  ;;  %1230 = vrot.lane.b32.xlu1 %v6000_v47, %s4447_s27  ;;  %v8870_v47 = vld [vmem:[#allocation57_spill] sm:$0xff]  ;;  %s4449_s27 = smov 60  }
 0x1be   : > { %1235 = vrot.lane.b32.xlu0 %v5243_v28, %s4448_s28  ;;  %v6012_v7 = vpop.permute.xlu1 %1095  ;;  %v8845_v28 = vld [vmem:[#allocation110_spill] sm:$0xff] }
 0x1c0   : > { %v6014_v12 = vpop.permute.xlu0 %1097  ;;  %1237 = vrot.lane.b32.xlu1 %v5249_v48, %s4448_s28  ;;  %v8848_v48 = vld [vmem:[#allocation98_spill] sm:$0xff] }
 0x1c1   : > { %8840 = vst [vmem:[#allocation259_spill] sm:$0xff] %v6014_v12  ;;  %v8854_v12 = vld [vmem:[#allocation89_spill] sm:$0xff] }
 0x1c2   : > { %1239 = vrot.lane.b32.xlu0 %v5256_v25, %s4448_s28  ;;  %v6020_v46 = vpop.permute.xlu1 %1099  ;;  %v8424_v25 = vrot.slane %v8849_v17, 7 }
 0x1c3   : > { %8841 = vst [vmem:[#allocation260_spill] sm:$0xff] %v6020_v46  ;;  %v8427_v46 = vrot.slane %v8851_v31, 7 }
 0x1c4   : > { %v6022_v43 = vpop.permute.xlu0 %1101  ;;  %1786 = vrot.lane.b32.xlu1 %v8844_v10, %s4435_s29 }
 0x1c5   : > { %8842 = vst [vmem:[#allocation261_spill] sm:$0xff] %v6022_v43  ;;  %v1911_v41 = vor.u32 %v8427_v46, %v8855_v23  ;;  %v8861_v23 = vld [vmem:[#allocation74_spill] sm:$0xff] }
 0x1c6   : > { %1802 = vrot.lane.b32.xlu0 %v8845_v28, %s4435_s29  ;;  %v6029_v63 = vpop.permute.xlu1 %1103 }
 0x1c7   : > { %8846 = vst [vmem:[#allocation262_spill] sm:$0xff] %v6029_v63  ;;  %v8853_v63 = vld [vmem:[#allocation13_spill] sm:$0xff] }
 0x1c8   : > { %v6031_v14 = vpop.permute.xlu0 %1105  ;;  %1788 = vrot.lane.b32.xlu1 %v8848_v48, %s4435_s29 }
 0x1c9   : > { %8847 = vst [vmem:[#allocation263_spill] sm:$0xff] %v6031_v14  ;;  %v1895_v14 = vor.u32 %v8424_v25, %v8853_v63  ;;  %v1311_v63 = vsel %vm1299_vm5, %v8615_v32, %v8858_v0  ;;  %v8859_v25 = vld [vmem:[#allocation156_spill] sm:$0xff]  ;;  %v8866_v0 = vld [vmem:[#allocation18_spill] sm:$0xff]  ;;  %v8868_v32 = vld [vmem:[#allocation91_spill] sm:$0xff] }
 0x1ca   : > { %1804 = vrot.lane.b32.xlu0 %v8850_v18, %s4435_s29  ;;  %v6038_v43 = vpop.permute.xlu1 %1107 }
 0x1cc   : > { %v6041_v10 = vpop.permute.xlu0 %1109  ;;  %1822 = vrot.lane.b32.xlu1 %v8852_v3, %s4436_s7 }
 0x1ce   : > { %1838 = vrot.lane.b32.xlu0 %v8854_v12, %s4436_s7  ;;  %v6051_v28 = vpop.permute.xlu1 %1111  ;;  %v1342_v12 = vsel %vm1330_vm6, %v1311_v63, %v8859_v25  ;;  %v8867_v63 = vld [vmem:[#allocation183_spill] sm:$0xff] }
 0x1d0   : > { %v6056_v9 = vpop.permute.xlu0 %1123  ;;  %1924 = vrot.lane.b32.xlu1 %v1895_v14, %s4438_s9  ;;  %v8862_v14 = vld [vmem:[#allocation19_spill] sm:$0xff] }
 0x1d1   : > { %8856 = vst [vmem:[#allocation98_spill] sm:$0xff] %v6056_v9  ;;  %v8863_v9 = vld [vmem:[#allocation142_spill] sm:$0xff] }
 0x1d2   : > { %1956 = vrot.lane.b32.xlu0 %v1911_v41, %s4438_s9  ;;  %v6060_v3 = vpop.permute.xlu1 %1125  ;;  %v1313_v41 = vsel %vm1299_vm5, %v8617_v2, %v8863_v9  ;;  %v8871_v2 = vld [vmem:[#allocation170_spill] sm:$0xff]  ;;  %v8875_v9 = vld [vmem:[#allocation83_spill] sm:$0xff] }
 0x1d3   : > { %8857 = vst [vmem:[#allocation12_spill] sm:$0xff] %v6060_v3  ;;  %v8864_v3 = vld [vmem:[#allocation71_spill] sm:$0xff]  ;;  %v1344_v25 = vsel %vm1330_vm6, %v1313_v41, %v8866_v0  ;;  %v8873_v41 = vld [vmem:[#allocation184_spill] sm:$0xff] }
 0x1d4   : > { %v6067_v4 = vpop.permute.xlu0 %1127  ;;  %1824 = vrot.lane.b32.xlu1 %v8861_v23, %s4436_s7  ;;  %v6077_v34 = vsel %vm1361_vm7, %v1342_v12, %v8864_v3  ;;  %v6091_v12 = vsel %vm1361_vm7, %v1344_v25, %v8871_v2  ;;  %v8877_v2 = vrot.slane %v8862_v14, 7 }
 0x1d5   : > { %8860 = vst [vmem:[#allocation113_spill] sm:$0xff] %v6067_v4  ;;  %8865 = vst [vmem:[#allocation54_spill] sm:$0xff] %v6077_v34  ;;  %v1404_v4 = vsel %vm1392_vm8, %v6077_v34, %v8867_v63  ;;  %v1406_v0 = vsel %vm1392_vm8, %v6091_v12, %v8873_v41 }
 0x1d6   : > { %1840 = vrot.lane.b32.xlu0 %v8868_v32, %s4436_s7  ;;  %v6086_v46 = vpop.permute.xlu1 %1129  ;;  %8872 = vst [vmem:[#allocation55_spill] sm:$0xff] %v6091_v12  ;;  %v1437_v3 = vsel %vm1423_vm9, %v1404_v4, %v5638_v36  ;;  %v1439_v4 = vsel %vm1423_vm9, %v1406_v0, %v5644_v1 }
 0x1d7   : > { %8869 = vst [vmem:[#allocation13_spill] sm:$0xff] %v6086_v46  ;;  %v1470_v63 = vsel %vm1456_vm10, %v1437_v3, %v5707_v30  ;;  %v8876_v46 = vld [vmem:[#allocation20_spill] sm:$0xff]  ;;  %v1472_v3 = vsel %vm1456_vm10, %v1439_v4, %v5713_v45 }
 0x1d8   : > { %v6100_v34 = vpop.permute.xlu0 %1131  ;;  %1858 = vrot.lane.b32.xlu1 %v8875_v9, %s4437_s8  ;;  %v1897_v25 = vor.u32 %v8877_v2, %v8876_v46  ;;  %v1503_v36 = vsel %vm1489_vm11, %v1470_v63, %v5775_v29  ;;  %v8878_v9 = vld [vmem:[#allocation114_spill] sm:$0xff]  ;;  %v8881_v2 = vrot.slane %v8870_v47, 7  ;;  %v1505_v63 = vsel %vm1489_vm11, %v1472_v3, %v5781_v52 }
 0x1d9   : > { %8874 = vst [vmem:[#allocation141_spill] sm:$0xff] %v6100_v34  ;;  %v1536_v41 = vsel %vm8470_vm12, %v1503_v36, %v5856_v27  ;;  %v8880_v46 = vld [vmem:[#allocation58_spill] sm:$0xff]  ;;  %v1538_v4 = vsel %vm8470_vm12, %v1505_v63, %v5862_v16  ;;  %v8895_v16 = vld [vmem:[#allocation177_spill] sm:$0xff] }
 0x1da   : > { %1874 = vrot.lane.b32.xlu0 %v8878_v9, %s4437_s8  ;;  %v6117_v34 = vpop.permute.xlu1 %1133  ;;  %v1913_v0 = vor.u32 %v8881_v2, %v8880_v46  ;;  %v1569_v1 = vsel %vm1555_vm13, %v1536_v41, %v5928_v62  ;;  %v1571_v46 = vsel %vm1555_vm13, %v1538_v4, %v5934_v11  ;;  %v8888_v4 = vld [vmem:[#allocation149_spill] sm:$0xff]  ;;  %v8973_v52 = vld [vmem:[#allocation34_spill] sm:$0xff] }
 0x1db   : > { %8879 = vst [vmem:[#allocation156_spill] sm:$0xff] %v6117_v34  ;;  %v1602_v36 = vsel %vm1588_vm14, %v1569_v1, %v6006_v61  ;;  %v1604_v62 = vsel %vm1588_vm14, %v1571_v46, %v6012_v7  ;;  %v8883_v61 = vld [vmem:[#allocation100_spill] sm:$0xff]  ;;  %v8886_v7 = vld [vmem:[#allocation117_spill] sm:$0xff] }
 0x1dc   : > { %v1136_v45 = vpop.permute.xlu0 %1135  ;;  %1928 = vrot.lane.b32.xlu1 %v1897_v25, %s4438_s9  ;;  %v8884_v25 = vld [vmem:[#allocation148_spill] sm:$0xff] }
 0x1dd   : > { %v6134_v2 = vsel %vm1621_vm15, %v1602_v36, %v1136_v45  ;;  %v1325_v11 = vsel %vm1299_vm5, %v8628_v51, %v8884_v25  ;;  %v8885_v45 = vld [vmem:[#allocation161_spill] sm:$0xff]  ;;  %v1327_v36 = vsel %vm1299_vm5, %v8630_v22, %v8888_v4  ;;  %v8889_v46 = vld [vmem:[#allocation176_spill] sm:$0xff]  ;;  %v8891_v25 = vld [vmem:[#allocation190_spill] sm:$0xff] }
 0x1de   : > { %1960 = vrot.lane.b32.xlu0 %v1913_v0, %s4438_s9  ;;  %v1138_v3 = vpop.permute.xlu1 %1137  ;;  %v1356_v63 = vsel %vm1330_vm6, %v1325_v11, %v8885_v45  ;;  %v8975_v51 = vld [vmem:[#allocation35_spill] sm:$0xff] }
 0x1df   : > { %v6140_v41 = vsel %vm1621_vm15, %v1604_v62, %v1138_v3  ;;  %v6160_v62 = vsel %vm1361_vm7, %v1356_v63, %v8889_v46  ;;  %v8890_v3 = vld [vmem:[#allocation163_spill] sm:$0xff]  ;;  %v8897_v46 = vld [vmem:[#allocation165_spill] sm:$0xff] }
 0x1e0   : > { %v6142_v1 = vpop.permute.xlu0 %1139  ;;  %1860 = vrot.lane.b32.xlu1 %v8883_v61, %s4437_s8  ;;  %v1358_v34 = vsel %vm1330_vm6, %v1327_v36, %v8890_v3  ;;  %v1418_v11 = vsel %vm1392_vm8, %v6160_v62, %v8891_v25  ;;  %v8898_v25 = vld [vmem:[#allocation191_spill] sm:$0xff] }
 0x1e1   : > { %8882 = vst [vmem:[#allocation74_spill] sm:$0xff] %v6142_v1  ;;  %v8894_v1 = vld [vmem:[#allocation150_spill] sm:$0xff]  ;;  %v6177_v63 = vsel %vm1361_vm7, %v1358_v34, %v8895_v16  ;;  %v1451_v36 = vsel %vm1423_vm9, %v1418_v11, %v5668_v39  ;;  %v9044_v39 = vld [vmem:[#allocation167_spill] sm:$0xff] }
 0x1e2   : > { %1876 = vrot.lane.b32.xlu0 %v8886_v7, %s4437_s8  ;;  %v6153_v0 = vpop.permute.xlu1 %1141  ;;  %v1329_v4 = vsel %vm1299_vm5, %v8633_v44, %v8894_v1  ;;  %8896 = vst [vmem:[#allocation71_spill] sm:$0xff] %v6177_v63  ;;  %v8899_v1 = vrot.slane %v8851_v31, 7  ;;  %v8901_v16 = vld [vmem:[#allocation178_spill] sm:$0xff] }
 0x1e3   : > { %8887 = vst [vmem:[#allocation19_spill] sm:$0xff] %v6153_v0  ;;  %v8893_v0 = vrot.slane %v8849_v17, 7  ;;  %v1360_v3 = vsel %vm1330_vm6, %v1329_v4, %v8897_v46  ;;  %v1484_v17 = vsel %vm1456_vm10, %v1451_v36, %v5737_v5  ;;  %v8903_v46 = vld [vmem:[#allocation193_spill] sm:$0xff]  ;;  %v9043_v5 = vld [vmem:[#allocation158_spill] sm:$0xff] }
 0x1e4   : > { %v6167_v45 = vpop.permute.xlu0 %1143  ;;  %v6195_v34 = vsel %vm1361_vm7, %v1360_v3, %v8901_v16  ;;  %v1517_v4 = vsel %vm1489_vm11, %v1484_v17, %v5805_v6  ;;  %v8905_v3 = vrot.slane %v8862_v14, 7  ;;  %v8906_v14 = vrot.slane %v8870_v47, 7 }
 0x1e5   : > { %8892 = vst [vmem:[#allocation142_spill] sm:$0xff] %v6167_v45  ;;  %1926 = vrot.lane.b32.xlu1 %v8893_v0, %s4438_s9  ;;  %v1420_v45 = vsel %vm1392_vm8, %v6177_v63, %v8898_v25  ;;  %8902 = vst [vmem:[#allocation183_spill] sm:$0xff] %v6195_v34  ;;  %v1422_v36 = vsel %vm1392_vm8, %v6195_v34, %v8903_v46  ;;  %v1550_v25 = vsel %vm8470_vm12, %v1517_v4, %v5886_v55  ;;  %v8974_v34 = vld [vmem:[#allocation164_spill] sm:$0xff]  ;;  %v9038_v63 = vld [vmem:[#allocation146_spill] sm:$0xff] }
 0x1e6   : > { %1958 = vrot.lane.b32.xlu0 %v8899_v1, %s4438_s9  ;;  %v6191_v0 = vpop.permute.xlu1 %1145  ;;  %v1453_v11 = vsel %vm1423_vm9, %v1420_v45, %v5670_v13  ;;  %v1455_v45 = vsel %vm1423_vm9, %v1422_v36, %v5676_v20  ;;  %v1583_v16 = vsel %vm1555_vm13, %v1550_v25, %v5958_v26  ;;  %v1918_v12 = vrot.slane %v8974_v34, 7  ;;  %v8977_v34 = vld [vmem:[#allocation82_spill] sm:$0xff] }
 0x1e7   : > { %8900 = vst [vmem:[#allocation18_spill] sm:$0xff] %v6191_v0  ;;  %v1486_v31 = vsel %vm1456_vm10, %v1453_v11, %v5739_v21  ;;  %v1488_v11 = vsel %vm1456_vm10, %v1455_v45, %v5745_v33  ;;  %v1616_v46 = vsel %vm1588_vm14, %v1583_v16, %v6038_v43  ;;  %v8926_v0 = vld [vmem:[#allocation102_spill] sm:$0xff]  ;;  %v1902_v33 = vrot.slane %v8973_v52, 7  ;;  %v8976_v52 = vld [vmem:[#allocation160_spill] sm:$0xff] }
 0x1e8   : > { %v6208_v1 = vpop.permute.xlu0 %1147  ;;  %v1519_v17 = vsel %vm1489_vm11, %v1486_v31, %v5807_v57  ;;  %v1521_v31 = vsel %vm1489_vm11, %v1488_v11, %v5816_v53  ;;  %v8908_v11 = vld [vmem:[#allocation52_spill] sm:$0xff]  ;;  %v8971_v53 = vld [vmem:[#allocation105_spill] sm:$0xff]  ;;  %v1919_v57 = vor.u32 %v1918_v12, %v8976_v52 }
 0x1e9   : > { %8904 = vst [vmem:[#allocation91_spill] sm:$0xff] %v6208_v1  ;;  %1930 = vrot.lane.b32.xlu1 %v8905_v3, %s4438_s9  ;;  %v1552_v4 = vsel %vm8470_vm12, %v1519_v17, %v5888_v60  ;;  %v1554_v3 = vsel %vm8470_vm12, %v1521_v31, %v5894_v56  ;;  %v8907_v17 = vld [vmem:[#allocation11_spill] sm:$0xff]  ;;  %v1903_v60 = vor.u32 %v1902_v33, %v8975_v51  ;;  %v8978_v51 = vld [vmem:[#allocation37_spill] sm:$0xff] }
 0x1ea   : > { %1962 = vrot.lane.b32.xlu0 %v8906_v14, %s4438_s9  ;;  %v1150_v36 = vpop.permute.xlu1 %1149  ;;  %v1585_v26 = vsel %vm1555_vm13, %v1552_v4, %v5960_v38  ;;  %v1587_v47 = vsel %vm1555_vm13, %v1554_v3, %v5969_v42  ;;  %v8916_v3 = vld [vmem:[#allocation99_spill] sm:$0xff]  ;;  %v1904_v21 = vrot.slane %v8978_v51, 7 }
 0x1eb   : > { %v1649_v25 = vsel %vm1621_vm15, %v1616_v46, %v1150_v36  ;;  %v1618_v45 = vsel %vm1588_vm14, %v1585_v26, %v6041_v10  ;;  %v1620_v38 = vsel %vm1588_vm14, %v1587_v47, %v6051_v28  ;;  %v8910_v10 = vld [vmem:[#allocation16_spill] sm:$0xff]  ;;  %v8920_v1 = vld [vmem:[#allocation75_spill] sm:$0xff] }
 0x1ec   : > { %v1152_v43 = vpop.permute.xlu0 %1151  ;;  %v8911_v36 = vld [vmem:[#allocation56_spill] sm:$0xff] }
 0x1ed   : > { %1984 = vrot.lane.b32.xlu1 %v8907_v17, %s4439_s10  ;;  %v1651_v16 = vsel %vm1621_vm15, %v1618_v45, %v1152_v43  ;;  %v8917_v45 = vld [vmem:[#allocation115_spill] sm:$0xff] }
 0x1ee   : > { %2000 = vrot.lane.b32.xlu0 %v8908_v11, %s4439_s10  ;;  %v1154_v4 = vpop.permute.xlu1 %1153 }
 0x1ef   : > { %v1653_v46 = vsel %vm1621_vm15, %v1620_v38, %v1154_v4 }
 0x1f0   : > { %v6247_v14 = vpop.permute.xlu0 %1159 }
 0x1f1   : > { %8909 = vst [vmem:[#allocation57_spill] sm:$0xff] %v6247_v14  ;;  %1986 = vrot.lane.b32.xlu1 %v8910_v10, %s4439_s10  ;;  %v9040_v10 = vld [vmem:[#allocation154_spill] sm:$0xff] }
 0x1f2   : > { %2002 = vrot.lane.b32.xlu0 %v8911_v36, %s4439_s10  ;;  %v6253_v42 = vpop.permute.xlu1 %1161  ;;  %v8986_v36 = vld [vmem:[#allocation32_spill] sm:$0xff] }
 0x1f3   : > { %8912 = vst [vmem:[#allocation170_spill] sm:$0xff] %v6253_v42 }
 0x1f4   : > { %v6255_v31 = vpop.permute.xlu0 %1163 }
 0x1f5   : > { %8913 = vst [vmem:[#allocation184_spill] sm:$0xff] %v6255_v31  ;;  %2014 = vrot.lane.b32.xlu1 %v8848_v48, %s4440_s11  ;;  %v8933_v31 = vld [vmem:[#allocation62_spill] sm:$0xff] }
 0x1f6   : > { %2030 = vrot.lane.b32.xlu0 %v8850_v18, %s4440_s11  ;;  %v6261_v28 = vpop.permute.xlu1 %1165 }
 0x1f7   : > { %8914 = vst [vmem:[#allocation83_spill] sm:$0xff] %v6261_v28 }
 0x1f8   : > { %v6263_v26 = vpop.permute.xlu0 %1167 }
 0x1f9   : > { %8915 = vst [vmem:[#allocation20_spill] sm:$0xff] %v6263_v26  ;;  %2016 = vrot.lane.b32.xlu1 %v8916_v3, %s4440_s11 }
 0x1fa   : > { %2032 = vrot.lane.b32.xlu0 %v8917_v45, %s4440_s11  ;;  %v6269_v43 = vpop.permute.xlu1 %1169 }
 0x1fb   : > { %8918 = vst [vmem:[#allocation114_spill] sm:$0xff] %v6269_v43  ;;  %v8921_v43 = vld [vmem:[#allocation92_spill] sm:$0xff] }
 0x1fc   : > { %v1172_v47 = vpop.permute.xlu0 %1171 }
 0x1fd   : > { %2046 = vrot.lane.b32.xlu1 %v8861_v23, %s4441_s12  ;;  %v1668_v18 = vsel %vm1654_vm1, %v6134_v2, %v1172_v47 }
 0x1fe   : > { %2062 = vrot.lane.b32.xlu0 %v8868_v32, %s4441_s12  ;;  %v1174_v48 = vpop.permute.xlu1 %1173 }
 0x1ff   : > { %v1670_v38 = vsel %vm1654_vm1, %v6140_v41, %v1174_v48 }
 0x200   : > { %v6279_v4 = vpop.permute.xlu0 %1175 }
 0x201   : > { %8919 = vst [vmem:[#allocation58_spill] sm:$0xff] %v6279_v4  ;;  %2048 = vrot.lane.b32.xlu1 %v8920_v1, %s4441_s12 }
 0x202   : > { %2064 = vrot.lane.b32.xlu0 %v8921_v43, %s4441_s12  ;;  %v6285_v26 = vpop.permute.xlu1 %1177 }
 0x203   : > { %8922 = vst [vmem:[#allocation100_spill] sm:$0xff] %v6285_v26 }
 0x204   : > { %v6287_v23 = vpop.permute.xlu0 %1179 }
 0x205   : > { %8923 = vst [vmem:[#allocation148_spill] sm:$0xff] %v6287_v23  ;;  %2078 = vrot.lane.b32.xlu1 %v8883_v61, %s4442_s13 }
 0x206   : > { %2094 = vrot.lane.b32.xlu0 %v8886_v7, %s4442_s13  ;;  %v6293_v32 = vpop.permute.xlu1 %1181  ;;  %v8927_v7 = vld [vmem:[#allocation120_spill] sm:$0xff] }
 0x207   : > { %8924 = vst [vmem:[#allocation161_spill] sm:$0xff] %v6293_v32 }
 0x208   : > { %v6295_v2 = vpop.permute.xlu0 %1183 }
 0x209   : > { %8925 = vst [vmem:[#allocation117_spill] sm:$0xff] %v6295_v2  ;;  %1790 = vrot.lane.b32.xlu1 %v8916_v3, %s4435_s29  ;;  %v8929_v3 = vld [vmem:[#allocation101_spill] sm:$0xff] }
 0x20a   : > { %1806 = vrot.lane.b32.xlu0 %v8917_v45, %s4435_s29  ;;  %v1186_v41 = vpop.permute.xlu1 %1185  ;;  %v8930_v45 = vld [vmem:[#allocation22_spill] sm:$0xff] }
 0x20b   : > { %v1682_v47 = vsel %vm1654_vm1, %v1649_v25, %v1186_v41  ;;  %v1898_v23 = vrot.slane %v8930_v45, 7  ;;  %v8931_v25 = vld [vmem:[#allocation118_spill] sm:$0xff]  ;;  %v8937_v45 = vld [vmem:[#allocation63_spill] sm:$0xff] }
 0x20c   : > { %v1188_v48 = vpop.permute.xlu0 %1187 }
 0x20d   : > { %2080 = vrot.lane.b32.xlu1 %v8926_v0, %s4442_s13  ;;  %v1684_v61 = vsel %vm1654_vm1, %v1651_v16, %v1188_v48  ;;  %v1914_v16 = vrot.slane %v8933_v31, 7 }
 0x20e   : > { %2096 = vrot.lane.b32.xlu0 %v8927_v7, %s4442_s13  ;;  %v1190_v32 = vpop.permute.xlu1 %1189 }
 0x20f   : > { %v1686_v2 = vsel %vm1654_vm1, %v1653_v46, %v1190_v32  ;;  %v8935_v46 = vld [vmem:[#allocation23_spill] sm:$0xff]  ;;  %v1915_v42 = vor.u32 %v1914_v16, %v8937_v45 }
 0x210   : > { %v6308_v28 = vpop.permute.xlu0 %1200  ;;  %v1899_v32 = vor.u32 %v1898_v23, %v8935_v46  ;;  %v8941_v46 = vld [vmem:[#allocation27_spill] sm:$0xff] }
 0x211   : > { %8928 = vst [vmem:[#allocation149_spill] sm:$0xff] %v6308_v28  ;;  %1792 = vrot.lane.b32.xlu1 %v8929_v3, %s4435_s29  ;;  %v8943_v45 = vld [vmem:[#allocation95_spill] sm:$0xff]  ;;  %v8947_v28 = vld [vmem:[#allocation28_spill] sm:$0xff] }
 0x212   : > { %1808 = vrot.lane.b32.xlu0 %v8931_v25, %s4435_s29  ;;  %v6315_v41 = vpop.permute.xlu1 %1202 }
 0x213   : > { %8932 = vst [vmem:[#allocation176_spill] sm:$0xff] %v6315_v41  ;;  %v1900_v41 = vrot.slane %v8941_v46, 7 }
 0x214   : > { %v6318_v48 = vpop.permute.xlu0 %1204 }
 0x215   : > { %8934 = vst [vmem:[#allocation163_spill] sm:$0xff] %v6318_v48  ;;  %1826 = vrot.lane.b32.xlu1 %v8920_v1, %s4436_s7  ;;  %v8940_v1 = vld [vmem:[#allocation78_spill] sm:$0xff]  ;;  %v1901_v14 = vor.u32 %v1900_v41, %v8947_v28 }
 0x216   : > { %1842 = vrot.lane.b32.xlu0 %v8921_v43, %s4436_s7  ;;  %v6325_v26 = vpop.permute.xlu1 %1206  ;;  %v8954_v28 = vld [vmem:[#allocation122_spill] sm:$0xff] }
 0x217   : > { %8936 = vst [vmem:[#allocation190_spill] sm:$0xff] %v6325_v26  ;;  %v8944_v26 = vld [vmem:[#allocation66_spill] sm:$0xff] }
 0x218   : > { %v6328_v4 = vpop.permute.xlu0 %1208 }
 0x219   : > { %8938 = vst [vmem:[#allocation150_spill] sm:$0xff] %v6328_v4  ;;  %1932 = vrot.lane.b32.xlu1 %v1899_v32, %s4438_s9  ;;  %v1916_v32 = vrot.slane %v8944_v26, 7 }
 0x21a   : > { %1964 = vrot.lane.b32.xlu0 %v1915_v42, %s4438_s9  ;;  %v6332_v31 = vpop.permute.xlu1 %1210 }
 0x21b   : > { %8939 = vst [vmem:[#allocation177_spill] sm:$0xff] %v6332_v31 }
 0x21c   : > { %v1213_v48 = vpop.permute.xlu0 %1212 }
 0x21d   : > { %1828 = vrot.lane.b32.xlu1 %v8940_v1, %s4436_s7  ;;  %v6338_v43 = vsel %vm1687_vm2, %v1668_v18, %v1213_v48  ;;  %v8949_v48 = vld [vmem:[#allocation68_spill] sm:$0xff] }
 0x21e   : > { %8942 = vst [vmem:[#allocation165_spill] sm:$0xff] %v6338_v43  ;;  %1844 = vrot.lane.b32.xlu0 %v8943_v45, %s4436_s7  ;;  %v1215_v4 = vpop.permute.xlu1 %1214  ;;  %v1917_v46 = vor.u32 %v1916_v32, %v8949_v48 }
 0x21f   : > { %v6344_v42 = vsel %vm1687_vm2, %v1670_v38, %v1215_v4 }
 0x220   : > { %8945 = vst [vmem:[#allocation191_spill] sm:$0xff] %v6344_v42  ;;  %v6346_v31 = vpop.permute.xlu0 %1216 }
 0x221   : > { %8946 = vst [vmem:[#allocation178_spill] sm:$0xff] %v6346_v31  ;;  %1862 = vrot.lane.b32.xlu1 %v8926_v0, %s4437_s8  ;;  %v8953_v0 = vld [vmem:[#allocation104_spill] sm:$0xff] }
 0x222   : > { %1878 = vrot.lane.b32.xlu0 %v8927_v7, %s4437_s8  ;;  %v6353_v18 = vpop.permute.xlu1 %1218 }
 0x223   : > { %8948 = vst [vmem:[#allocation193_spill] sm:$0xff] %v6353_v18  ;;  %v8967_v18 = vld [vmem:[#allocation80_spill] sm:$0xff] }
 0x224   : > { %v6356_v43 = vpop.permute.xlu0 %1220 }
 0x225   : > { %8950 = vst [vmem:[#allocation11_spill] sm:$0xff] %v6356_v43  ;;  %1936 = vrot.lane.b32.xlu1 %v1901_v14, %s4438_s9 }
 0x226   : > { %1968 = vrot.lane.b32.xlu0 %v1917_v46, %s4438_s9  ;;  %v6360_v26 = vpop.permute.xlu1 %1222 }
 0x227   : > { %8951 = vst [vmem:[#allocation52_spill] sm:$0xff] %v6360_v26  ;;  %v8966_v26 = vld [vmem:[#allocation121_spill] sm:$0xff] }
 0x228   : > { %v6362_v38 = vpop.permute.xlu0 %1224 }
 0x229   : > { %8952 = vst [vmem:[#allocation99_spill] sm:$0xff] %v6362_v38  ;;  %1864 = vrot.lane.b32.xlu1 %v8953_v0, %s4437_s8 }
 0x22a   : > { %1880 = vrot.lane.b32.xlu0 %v8954_v28, %s4437_s8  ;;  %v1227_v4 = vpop.permute.xlu1 %1226 }
 0x22b   : > { %v6369_v7 = vsel %vm1687_vm2, %v1682_v47, %v1227_v4 }
 0x22c   : > { %8955 = vst [vmem:[#allocation115_spill] sm:$0xff] %v6369_v7  ;;  %v1229_v48 = vpop.permute.xlu0 %1228  ;;  %v8965_v7 = vld [vmem:[#allocation103_spill] sm:$0xff] }
 0x22d   : > { %1934 = vrot.lane.b32.xlu1 %v1898_v23, %s4438_s9  ;;  %v6373_v14 = vsel %vm1687_vm2, %v1684_v61, %v1229_v48  ;;  %v8961_v23 = vld [vmem:[#allocation21_spill] sm:$0xff]  ;;  %v8963_v48 = vld [vmem:[#allocation26_spill] sm:$0xff] }
 0x22e   : > { %8956 = vst [vmem:[#allocation75_spill] sm:$0xff] %v6373_v14  ;;  %1966 = vrot.lane.b32.xlu0 %v1914_v16, %s4438_s9  ;;  %v1231_v46 = vpop.permute.xlu1 %1230  ;;  %v8962_v61 = vld [vmem:[#allocation61_spill] sm:$0xff] }
 0x22f   : > { %v6377_v42 = vsel %vm1687_vm2, %v1686_v2, %v1231_v46 }
 0x230   : > { %8957 = vst [vmem:[#allocation92_spill] sm:$0xff] %v6377_v42  ;;  %v6379_v38 = vpop.permute.xlu0 %1235 }
 0x231   : > { %8958 = vst [vmem:[#allocation102_spill] sm:$0xff] %v6379_v38  ;;  %1938 = vrot.lane.b32.xlu1 %v1900_v41, %s4438_s9  ;;  %v8964_v41 = vld [vmem:[#allocation65_spill] sm:$0xff] }
 0x232   : > { %1970 = vrot.lane.b32.xlu0 %v1916_v32, %s4438_s9  ;;  %v6383_v47 = vpop.permute.xlu1 %1237  ;;  %v8968_v38 = vld [vmem:[#allocation97_spill] sm:$0xff] }
 0x233   : > { %8959 = vst [vmem:[#allocation120_spill] sm:$0xff] %v6383_v47 }
 0x234   : > { %v6385_v4 = vpop.permute.xlu0 %1239 }
 0x235   : > { %8960 = vst [vmem:[#allocation101_spill] sm:$0xff] %v6385_v4  ;;  %1988 = vrot.lane.b32.xlu1 %v8961_v23, %s4439_s10 }
 0x236   : > { %2004 = vrot.lane.b32.xlu0 %v8962_v61, %s4439_s10  ;;  %v6391_v16 = vpop.permute.xlu1 %1786 }
 0x238   : > { %v6393_v2 = vpop.permute.xlu0 %1802 }
 0x239   : > { %1990 = vrot.lane.b32.xlu1 %v8963_v48, %s4439_s10  ;;  %v8969_v48 = vld [vmem:[#allocation106_spill] sm:$0xff] }
 0x23a   : > { %2006 = vrot.lane.b32.xlu0 %v8964_v41, %s4439_s10  ;;  %v6399_v32 = vpop.permute.xlu1 %1788 }
 0x23c   : > { %v6401_v46 = vpop.permute.xlu0 %1804 }
 0x23d   : > { %2018 = vrot.lane.b32.xlu1 %v8929_v3, %s4440_s11 }
 0x23e   : > { %2034 = vrot.lane.b32.xlu0 %v8931_v25, %s4440_s11  ;;  %v6407_v42 = vpop.permute.xlu1 %1822 }
 0x240   : > { %v6409_v14 = vpop.permute.xlu0 %1838 }
 0x241   : > { %2020 = vrot.lane.b32.xlu1 %v8965_v7, %s4440_s11 }
 0x242   : > { %2036 = vrot.lane.b32.xlu0 %v8966_v26, %s4440_s11  ;;  %v6415_v43 = vpop.permute.xlu1 %1924 }
 0x244   : > { %v6417_v4 = vpop.permute.xlu0 %1956 }
 0x245   : > { %2050 = vrot.lane.b32.xlu1 %v8940_v1, %s4441_s12 }
 0x246   : > { %2066 = vrot.lane.b32.xlu0 %v8943_v45, %s4441_s12  ;;  %v6423_v3 = vpop.permute.xlu1 %1824 }
 0x248   : > { %v6425_v25 = vpop.permute.xlu0 %1840 }
 0x249   : > { %1812 = vrot.lane.b32.xlu1 %v8795_v59, %s4435_s29 }
 0x24a   : > { %2052 = vrot.lane.b32.xlu0 %v8967_v18, %s4441_s12  ;;  %v6431_v47 = vpop.permute.xlu1 %1858 }
 0x24c   : > { %v6433_v31 = vpop.permute.xlu0 %1874 }
 0x24d   : > { %2068 = vrot.lane.b32.xlu1 %v8968_v38, %s4441_s12 }
 0x24e   : > { %2082 = vrot.lane.b32.xlu0 %v8953_v0, %s4442_s13  ;;  %v6439_v1 = vpop.permute.xlu1 %1928 }
 0x250   : > { %v6441_v45 = vpop.permute.xlu0 %1960 }
 0x251   : > { %2098 = vrot.lane.b32.xlu1 %v8954_v28, %s4442_s13  ;;  %v8970_v28 = vld [vmem:[#allocation123_spill] sm:$0xff] }
 0x252   : > { %1794 = vrot.lane.b32.xlu0 %v8965_v7, %s4435_s29  ;;  %v6447_v59 = vpop.permute.xlu1 %1860 }
 0x254   : > { %v6449_v44 = vpop.permute.xlu0 %1876 }
 0x255   : > { %1810 = vrot.lane.b32.xlu1 %v8966_v26, %s4435_s29  ;;  %v8972_v26 = vld [vmem:[#allocation192_spill] sm:$0xff] }
 0x256   : > { %1848 = vrot.lane.b32.xlu0 %v5554_v40, %s4436_s7 }
 0x257   : > { %v6455_v0 = vpop.permute.xlu1 %1926 }
 0x258   : > { %v6457_v41 = vpop.permute.xlu0 %1958 }
 0x259   : > { %2084 = vrot.lane.b32.xlu1 %v8969_v48, %s4442_s13 }
 0x25a   : > { %2100 = vrot.lane.b32.xlu0 %v8970_v28, %s4442_s13 }
 0x25b   : > { %v6463_v7 = vpop.permute.xlu1 %1930 }
 0x25c   : > { %v6465_v56 = vpop.permute.xlu0 %1962 }
 0x25d   : > { %1796 = vrot.lane.b32.xlu1 %v8971_v53, %s4435_s29 }
 0x25e   : > { %1814 = vrot.lane.b32.xlu0 %v8972_v26, %s4435_s29 }
 0x25f   : > { %v6471_v40 = vpop.permute.xlu1 %1984 }
 0x260   : > { %v6474_v20 = vpop.permute.xlu0 %2000 }
 0x261   : > { %1830 = vrot.lane.b32.xlu1 %v8967_v18, %s4436_s7 }
 0x262   : > { %1846 = vrot.lane.b32.xlu0 %v8968_v38, %s4436_s7 }
 0x263   : > { %v6481_v22 = vpop.permute.xlu1 %1986 }
 0x264   : > { %v6484_v27 = vpop.permute.xlu0 %2002 }
 0x265   : > { %1884 = vrot.lane.b32.xlu1 %v5632_v15, %s4437_s8  ;;  %v8979_v15 = vld [vmem:[#allocation180_spill] sm:$0xff] }
 0x266   : > { %1940 = vrot.lane.b32.xlu0 %v1903_v60, %s4438_s9  ;;  %v1920_v60 = vrot.slane %v5826_v19, 7  ;;  %v8981_v19 = vld [vmem:[#allocation109_spill] sm:$0xff] }
 0x267   : > { %v6490_v29 = vpop.permute.xlu1 %2014 }
 0x268   : > { %v6492_v18 = vpop.permute.xlu0 %2030  ;;  %v1921_v51 = vor.u32 %v1920_v60, %v5812_v58 }
 0x269   : > { %1972 = vrot.lane.b32.xlu1 %v1919_v57, %s4438_s9  ;;  %v8980_v57 = vld [vmem:[#allocation38_spill] sm:$0xff] }
 0x26a   : > { %1832 = vrot.lane.b32.xlu0 %v8977_v34, %s4436_s7  ;;  %v1905_v30 = vor.u32 %v1904_v21, %v8980_v57 }
 0x26b   : > { %v6497_v38 = vpop.permute.xlu1 %2016 }
 0x26c   : > { %v6500_v55 = vpop.permute.xlu0 %2032 }
 0x26d   : > { %1850 = vrot.lane.b32.xlu1 %v8979_v15, %s4436_s7 }
 0x26e   : > { %1866 = vrot.lane.b32.xlu0 %v8969_v48, %s4437_s8 }
 0x26f   : > { %v6507_v52 = vpop.permute.xlu1 %2046 }
 0x270   : > { %v6510_v13 = vpop.permute.xlu0 %2062 }
 0x271   : > { %1882 = vrot.lane.b32.xlu1 %v8970_v28, %s4437_s8 }
 0x272   : > { %1944 = vrot.lane.b32.xlu0 %v1905_v30, %s4438_s9 }
 0x273   : > { %v6516_v6 = vpop.permute.xlu1 %2048 }
 0x274   : > { %v6518_v61 = vpop.permute.xlu0 %2064 }
 0x275   : > { %1976 = vrot.lane.b32.xlu1 %v1921_v51, %s4438_s9 }
 0x276   : > { %1868 = vrot.lane.b32.xlu0 %v8981_v19, %s4437_s8 }
 0x277   : > { %v6523_v48 = vpop.permute.xlu1 %2078 }
 0x278   : > { %v6525_v57 = vpop.permute.xlu0 %2094 }
 0x279   : > { %1886 = vrot.lane.b32.xlu1 %v5610_v24, %s4437_s8 }
 0x27a   : > { %1942 = vrot.lane.b32.xlu0 %v1902_v33, %s4438_s9 }
 0x27b   : > { %v6530_v58 = vpop.permute.xlu1 %1790 }
 0x27c   : > { %8982 = vst [vmem:[#allocation22_spill] sm:$0xff] %v6530_v58  ;;  %v6532_v30 = vpop.permute.xlu0 %1806 }
 0x27d   : > { %8983 = vst [vmem:[#allocation118_spill] sm:$0xff] %v6532_v30  ;;  %1974 = vrot.lane.b32.xlu1 %v1918_v12, %s4438_s9  ;;  %v9024_v30 = vld [vmem:[#allocation87_spill] sm:$0xff] }
 0x27e   : > { %2010 = vrot.lane.b32.xlu0 %v5769_v50, %s4439_s10 }
 0x27f   : > { %v6537_v28 = vpop.permute.xlu1 %2080 }
 0x280   : > { %v6539_v51 = vpop.permute.xlu0 %2096 }
 0x281   : > { %1946 = vrot.lane.b32.xlu1 %v1904_v21, %s4438_s9  ;;  %v8989_v21 = vld [vmem:[#allocation36_spill] sm:$0xff] }
 0x282   : > { %1978 = vrot.lane.b32.xlu0 %v1920_v60, %s4438_s9 }
 0x283   : > { %v6543_v23 = vpop.permute.xlu1 %1792 }
 0x284   : > { %8984 = vst [vmem:[#allocation62_spill] sm:$0xff] %v6543_v23  ;;  %v6545_v33 = vpop.permute.xlu0 %1808 }
 0x285   : > { %8985 = vst [vmem:[#allocation23_spill] sm:$0xff] %v6545_v33  ;;  %1992 = vrot.lane.b32.xlu1 %v8986_v36, %s4439_s10 }
 0x286   : > { %2008 = vrot.lane.b32.xlu0 %v5451_v8, %s4439_s10 }
 0x287   : > { %v6551_v12 = vpop.permute.xlu1 %1826 }
 0x288   : > { %8987 = vst [vmem:[#allocation63_spill] sm:$0xff] %v6551_v12  ;;  %v6553_v50 = vpop.permute.xlu0 %1842  ;;  %v9002_v12 = vld [vmem:[#allocation85_spill] sm:$0xff] }
 0x289   : > { %8988 = vst [vmem:[#allocation78_spill] sm:$0xff] %v6553_v50  ;;  %2040 = vrot.lane.b32.xlu1 %v5850_v54, %s4440_s11 }
 0x28a   : > { %1994 = vrot.lane.b32.xlu0 %v8989_v21, %s4439_s10 }
 0x28b   : > { %v6559_v60 = vpop.permute.xlu1 %1932 }
 0x28c   : > { %v6561_v23 = vpop.permute.xlu0 %1964 }
 0x28d   : > { %2012 = vrot.lane.b32.xlu1 %v5819_v49, %s4439_s10  ;;  %v8994_v49 = vld [vmem:[#allocation107_spill] sm:$0xff] }
 0x28e   : > { %2022 = vrot.lane.b32.xlu0 %v8971_v53, %s4440_s11 }
 0x28f   : > { %v6567_v8 = vpop.permute.xlu1 %1828 }
 0x290   : > { %8990 = vst [vmem:[#allocation27_spill] sm:$0xff] %v6567_v8  ;;  %v6569_v36 = vpop.permute.xlu0 %1844 }
 0x291   : > { %8991 = vst [vmem:[#allocation95_spill] sm:$0xff] %v6569_v36  ;;  %2038 = vrot.lane.b32.xlu1 %v8972_v26, %s4440_s11 }
 0x292   : > { %2072 = vrot.lane.b32.xlu0 %v5922_v37, %s4441_s12 }
 0x293   : > { %v6575_v21 = vpop.permute.xlu1 %1862 }
 0x294   : > { %8992 = vst [vmem:[#allocation66_spill] sm:$0xff] %v6575_v21  ;;  %v6577_v50 = vpop.permute.xlu0 %1878 }
 0x295   : > { %8993 = vst [vmem:[#allocation28_spill] sm:$0xff] %v6577_v50  ;;  %1816 = vrot.lane.b32.xlu1 %v5850_v54, %s4435_s29  ;;  %v8999_v54 = vld [vmem:[#allocation257_spill] sm:$0xff] }
 0x296   : > { %2024 = vrot.lane.b32.xlu0 %v8994_v49, %s4440_s11 }
 0x297   : > { %v6583_v53 = vpop.permute.xlu1 %1936 }
 0x298   : > { %8995 = vst [vmem:[#allocation68_spill] sm:$0xff] %v6583_v53  ;;  %v6585_v8 = vpop.permute.xlu0 %1968 }
 0x299   : > { %8996 = vst [vmem:[#allocation104_spill] sm:$0xff] %v6585_v8  ;;  %2042 = vrot.lane.b32.xlu1 %v5965_v35, %s4440_s11  ;;  %v9039_v8 = vld [vmem:[#allocation44_spill] sm:$0xff] }
 0x29a   : > { %2054 = vrot.lane.b32.xlu0 %v8977_v34, %s4441_s12 }
 0x29b   : > { %v6591_v26 = vpop.permute.xlu1 %1864 }
 0x29c   : > { %8997 = vst [vmem:[#allocation122_spill] sm:$0xff] %v6591_v26  ;;  %v6593_v36 = vpop.permute.xlu0 %1880 }
 0x29d   : > { %8998 = vst [vmem:[#allocation103_spill] sm:$0xff] %v6593_v36  ;;  %2070 = vrot.lane.b32.xlu1 %v8979_v15, %s4441_s12  ;;  %v9005_v36 = vld [vmem:[#allocation244_spill] sm:$0xff] }
 0x29e   : > { %2104 = vrot.lane.b32.xlu0 %v8999_v54, %s4442_s13 }
 0x29f   : > { %v6599_v50 = vpop.permute.xlu1 %1934 }
 0x2a0   : > { %9000 = vst [vmem:[#allocation121_spill] sm:$0xff] %v6599_v50  ;;  %v6601_v21 = vpop.permute.xlu0 %1966 }
 0x2a1   : > { %9001 = vst [vmem:[#allocation80_spill] sm:$0xff] %v6601_v21  ;;  %1852 = vrot.lane.b32.xlu1 %v5922_v37, %s4436_s7 }
 0x2a2   : > { %2056 = vrot.lane.b32.xlu0 %v9002_v12, %s4441_s12 }
 0x2a3   : > { %v6607_v34 = vpop.permute.xlu1 %1938 }
 0x2a4   : > { %9003 = vst [vmem:[#allocation97_spill] sm:$0xff] %v6607_v34  ;;  %v6609_v26 = vpop.permute.xlu0 %1970 }
 0x2a5   : > { %9004 = vst [vmem:[#allocation106_spill] sm:$0xff] %v6609_v26  ;;  %2074 = vrot.lane.b32.xlu1 %v9005_v36, %s4441_s12 }
 0x2a6   : > { %2086 = vrot.lane.b32.xlu0 %v8981_v19, %s4442_s13 }
 0x2a7   : > { %v6615_v15 = vpop.permute.xlu1 %1988 }
 0x2a8   : > { %9006 = vst [vmem:[#allocation123_spill] sm:$0xff] %v6615_v15  ;;  %v6617_v50 = vpop.permute.xlu0 %2004 }
 0x2a9   : > { %9007 = vst [vmem:[#allocation105_spill] sm:$0xff] %v6617_v50  ;;  %2102 = vrot.lane.b32.xlu1 %v5610_v24, %s4442_s13  ;;  %v9012_v50 = vld [vmem:[#allocation111_spill] sm:$0xff] }
 0x2aa   : > { %1798 = vrot.lane.b32.xlu0 %v8994_v49, %s4435_s29  ;;  %v9013_v24 = vld [vmem:[#allocation119_spill] sm:$0xff] }
 0x2ab   : > { %v6623_v37 = vpop.permute.xlu1 %1990 }
 0x2ac   : > { %9008 = vst [vmem:[#allocation192_spill] sm:$0xff] %v6623_v37  ;;  %v6625_v34 = vpop.permute.xlu0 %2006  ;;  %v9015_v37 = vld [vmem:[#allocation42_spill] sm:$0xff] }
 0x2ad   : > { %9009 = vst [vmem:[#allocation34_spill] sm:$0xff] %v6625_v34  ;;  %1818 = vrot.lane.b32.xlu1 %v5965_v35, %s4435_s29  ;;  %v1906_v34 = vrot.slane %v9015_v37, 7  ;;  %v9017_v35 = vld [vmem:[#allocation108_spill] sm:$0xff] }
 0x2ae   : > { %1888 = vrot.lane.b32.xlu0 %v8999_v54, %s4437_s8 }
 0x2af   : > { %v6631_v19 = vpop.permute.xlu1 %2018 }
 0x2b0   : > { %9010 = vst [vmem:[#allocation164_spill] sm:$0xff] %v6631_v19  ;;  %v6633_v26 = vpop.permute.xlu0 %2034 }
 0x2b1   : > { %9011 = vst [vmem:[#allocation35_spill] sm:$0xff] %v6633_v26  ;;  %2088 = vrot.lane.b32.xlu1 %v9012_v50, %s4442_s13  ;;  %v9019_v26 = vld [vmem:[#allocation43_spill] sm:$0xff] }
 0x2b2   : > { %2106 = vrot.lane.b32.xlu0 %v9013_v24, %s4442_s13  ;;  %v1907_v19 = vor.u32 %v1906_v34, %v9019_v26  ;;  %v9026_v26 = vld [vmem:[#allocation48_spill] sm:$0xff] }
 0x2b3   : > { %v6639_v49 = vpop.permute.xlu1 %2020 }
 0x2b4   : > { %9014 = vst [vmem:[#allocation160_spill] sm:$0xff] %v6639_v49  ;;  %v6642_v21 = vpop.permute.xlu0 %2036 }
 0x2b5   : > { %9016 = vst [vmem:[#allocation82_spill] sm:$0xff] %v6642_v21  ;;  %1800 = vrot.lane.b32.xlu1 %v9017_v35, %s4435_s29  ;;  %v9022_v21 = vld [vmem:[#allocation46_spill] sm:$0xff]  ;;  %s4450_s29 = smov 64  }
 0x2b6   : > { %1834 = vrot.lane.b32.xlu0 %v9002_v12, %s4436_s7  ;;  %v1908_v49 = vrot.slane %v9022_v21, 7 }
 0x2b7   : > { %v6648_v54 = vpop.permute.xlu1 %2050 }
 0x2b8   : > { %9018 = vst [vmem:[#allocation37_spill] sm:$0xff] %v6648_v54  ;;  %v6651_v15 = vpop.permute.xlu0 %2066 }
 0x2b9   : > { %9020 = vst [vmem:[#allocation180_spill] sm:$0xff] %v6651_v15  ;;  %1854 = vrot.lane.b32.xlu1 %v9005_v36, %s4436_s7  ;;  %v1909_v15 = vor.u32 %v1908_v49, %v9026_v26  ;;  %v9033_v26 = vld [vmem:[#allocation135_spill] sm:$0xff] }
 0x2ba   : > { %1948 = vrot.lane.b32.xlu0 %v1907_v19, %s4438_s9  ;;  %v9030_v19 = vld [vmem:[#allocation112_spill] sm:$0xff] }
 0x2bb   : > { %v6656_v37 = vpop.permute.xlu1 %1812 }
 0x2bc   : > { %9021 = vst [vmem:[#allocation38_spill] sm:$0xff] %v6656_v37  ;;  %v6659_v33 = vpop.permute.xlu0 %2052 }
 0x2bd   : > { %9023 = vst [vmem:[#allocation109_spill] sm:$0xff] %v6659_v33  ;;  %1836 = vrot.lane.b32.xlu1 %v9024_v30, %s4436_s7 }
 0x2be   : > { %1870 = vrot.lane.b32.xlu0 %v9012_v50, %s4437_s8  ;;  %v9031_v50 = vld [vmem:[#allocation5_spill] sm:$0xff] }
 0x2bf   : > { %v6665_v12 = vpop.permute.xlu1 %2068 }
 0x2c0   : > { %9025 = vst [vmem:[#allocation107_spill] sm:$0xff] %v6665_v12  ;;  %v6668_v54 = vpop.permute.xlu0 %2082  ;;  %v9034_v12 = vld [vmem:[#allocation7_spill] sm:$0xff] }
 0x2c1   : > { %9027 = vst [vmem:[#allocation257_spill] sm:$0xff] %v6668_v54  ;;  %1890 = vrot.lane.b32.xlu1 %v9013_v24, %s4437_s8  ;;  %v1305_v33 = vsel %vm1299_vm5, %v9034_v12, %v9033_v26  ;;  %v9036_v24 = vld [vmem:[#allocation139_spill] sm:$0xff] }
 0x2c2   : > { %1952 = vrot.lane.b32.xlu0 %v1909_v15, %s4438_s9  ;;  %v4363_v15 = vld [vmem:[%s8114_s1 + $0x30] ss:$0 sps:$4 sm:$0xff]   ;;  %v1336_v58 = vsel %vm1330_vm6, %v1305_v33, %v9040_v10 }
 0x2c3   : > { %v6673_v36 = vpop.permute.xlu1 %2098  ;;  %v9041_v26 = vld [vmem:[#allocation147_spill] sm:$0xff]  ;;  %v6707_v12 = vsel %vm1361_vm7, %v1336_v58, %v9044_v39  ;;  %4262 = vmatprep.subr.msk.bf16.mxu0 %vm2813_vm3, %v4363_v15  ;;  %4263 = vmatprep.subr.msk.bf16.mxu1 %vm2813_vm3, %v4363_v15 }
 0x2c4   : > { %9028 = vst [vmem:[#allocation85_spill] sm:$0xff] %v6673_v36  ;;  %v6675_v21 = vpop.permute.xlu0 %1794  ;;  %9045 = vst [vmem:[#allocation42_spill] sm:$0xff] %v6707_v12  ;;  %v9047_v10 = vld [vmem:[#allocation155_spill] sm:$0xff] }
 0x2c5   : > { %9029 = vst [vmem:[#allocation244_spill] sm:$0xff] %v6675_v21  ;;  %1872 = vrot.lane.b32.xlu1 %v9030_v19, %s4437_s8  ;;  %v9037_v21 = vld [vmem:[#allocation10_spill] sm:$0xff]  ;;  %v9050_v39 = vld [vmem:[#allocation159_spill] sm:$0xff] }
 0x2c6   : > { %1892 = vrot.lane.b32.xlu0 %v9031_v50, %s4437_s8  ;;  %v1307_v36 = vsel %vm1299_vm5, %v9037_v21, %v9036_v24  ;;  %v9046_v24 = vld [vmem:[#allocation124_spill] sm:$0xff]  ;;  %s188_s8 = sand.u32 1, %s4424_s16  }
 0x2c7   : > { %v6681_v37 = vpop.permute.xlu1 %1810  ;;  %v1338_v33 = vsel %vm1330_vm6, %v1307_v36, %v9047_v10  ;;  %s8072_s19 = scalar_lea.sflag [#allocation3], %s188_s8 }
 0x2c8   : > { %9032 = vst [vmem:[#allocation111_spill] sm:$0xff] %v6681_v37  ;;  %v6686_v54 = vpop.permute.xlu0 %1848  ;;  %v1321_v37 = vsel %vm1299_vm5, %v9039_v8, %v9038_v63  ;;  %v2815_v63 = vsel %vm2813_vm3, %v4363_v15, 0  ;;  %v9048_v8 = vld [vmem:[#allocation174_spill] sm:$0xff]  ;;  %vm2695_vm3 = vcmask 523264  }
 0x2c9   : > { %9035 = vst [vmem:[#allocation119_spill] sm:$0xff] %v6686_v54  ;;  %1950 = vrot.lane.b32.xlu1 %v1906_v34, %s4438_s9  ;;  %v9042_v54 = vld [vmem:[#allocation51_spill] sm:$0xff]  ;;  %v1352_v53 = vsel %vm1330_vm6, %v1321_v37, %v9043_v5  ;;  %v2219_v5 = vsel %vm1392_vm8, %v6707_v12, %v6415_v43  ;;  %4203 = vmatpush3.bf16.msra.mxu0 %v2815_v63  ;;  %v9051_v37 = vld [vmem:[#allocation168_spill] sm:$0xff] }
 0x2ca   : > { %v1323_v34 = vsel %vm1299_vm5, %v9042_v54, %v9041_v26  ;;  %1982 = vrot.lane.b32.xlu0 %v9046_v24, %s4438_s9  ;;  %v6717_v26 = vsel %vm1361_vm7, %v1352_v53, %v9048_v8  ;;  %v6726_v24 = vsel %vm1361_vm7, %v1338_v33, %v9051_v37  ;;  %4255 = vmatpush3.bf16.msra.mxu1 %v2815_v63  ;;  %v4364_v8 = vld [vmem:[%s8114_s1 + $0x28] sm:$0xff]   ;;  %v9053_v43 = vld [vmem:[#allocation175_spill] sm:$0xff]  ;;  %v9056_v63 = vld [vmem:[#allocation41_spill] sm:$0xff] }
 0x2cb   : > { %v6711_v21 = vpop.permute.xlu1 %2084  ;;  %9049 = vst [vmem:[#allocation108_spill] sm:$0xff] %v6717_v26  ;;  %v1354_v58 = vsel %vm1330_vm6, %v1323_v34, %v9050_v39  ;;  %9052 = vst [vmem:[#allocation43_spill] sm:$0xff] %v6726_v24  ;;  %v2251_v36 = vsel %vm1392_vm8, %v6717_v26, %v6417_v4  ;;  %v2223_v15 = vsel %vm1392_vm8, %v6726_v24, %v6439_v1  ;;  %v9055_v34 = vld [vmem:[#allocation197_spill] sm:$0xff]  ;;  %4204 = vmatprep.subr.bf16.mxu0 %v4364_v8  ;;  %v9059_v37 = vld [vmem:[#allocation198_spill] sm:$0xff] }
 0x2cc   : > { %v6731_v10 = vpop.permute.xlu0 %2100  ;;  %v6739_v53 = vsel %vm1361_vm7, %v1354_v58, %v9053_v43  ;;  %v2280_v4 = vsel %vm1423_vm9, %v2219_v5, %v9055_v34  ;;  %v9058_v39 = vld [vmem:[#allocation205_spill] sm:$0xff]  ;;  %4249 = vmatprep.subr.bf16.mxu1 %v4364_v8  ;;  %v2283_v1 = vsel %vm1423_vm9, %v2223_v15, %v9059_v37  ;;  %v9063_v26 = vld [vmem:[#allocation206_spill] sm:$0xff]  ;;  %v9066_v37 = vld [vmem:[#allocation15_spill] sm:$0xff] }
 0x2cd   : > { %1954 = vrot.lane.b32.xlu1 %v1908_v49, %s4438_s9  ;;  %9054 = vst [vmem:[#allocation46_spill] sm:$0xff] %v6739_v53  ;;  %v2255_v49 = vsel %vm1392_vm8, %v6739_v53, %v6441_v45  ;;  %v2304_v58 = vsel %vm1423_vm9, %v2251_v36, %v9058_v39  ;;  %4205 = vmatpush3.bf16.msra.mxu0 %v4364_v8  ;;  %v9061_v5 = vld [vmem:[#allocation45_spill] sm:$0xff]  ;;  %v9064_v39 = vld [vmem:[#allocation222_spill] sm:$0xff]  ;;  %s4128_s9 = sshll.u32 %s188_s8, 6 }
 0x2ce   : > { %1996 = vrot.lane.b32.xlu0 %v9056_v63, %s4439_s10  ;;  %4256 = vmatpush3.bf16.msra.mxu1 %v4364_v8  ;;  %v4365_v45 = vld [vmem:[%s8114_s1 + $0x20] sm:$0xff]   ;;  %v2307_v36 = vsel %vm1423_vm9, %v2255_v49, %v9063_v26  ;;  %v2351_v34 = vsel %vm1456_vm10, %v2304_v58, %v9064_v39  ;;  %v9065_v8 = vld [vmem:[#allocation140_spill] sm:$0xff]  ;;  %v9067_v63 = vld [vmem:[#allocation214_spill] sm:$0xff] }
 0x2cf   : > { %v6751_v33 = vpop.permute.xlu1 %1796  ;;  %v9062_v53 = vld [vmem:[#allocation213_spill] sm:$0xff]  ;;  %4206 = vmatprep.subr.bf16.mxu0 %v4365_v45  ;;  %v1309_v12 = vsel %vm1299_vm5, %v9066_v37, %v9065_v8  ;;  %4250 = vmatprep.subr.bf16.mxu1 %v4365_v45  ;;  %v9069_v58 = vld [vmem:[#allocation230_spill] sm:$0xff] }
 0x2d0   : > { %9057 = vst [vmem:[#allocation87_spill] sm:$0xff] %v6751_v33  ;;  %v6757_v43 = vpop.permute.xlu0 %1814  ;;  %v2327_v24 = vsel %vm1456_vm10, %v2280_v4, %v9062_v53  ;;  %v9068_v4 = vld [vmem:[#allocation6_spill] sm:$0xff] }
 0x2d1   : > { %9060 = vst [vmem:[#allocation48_spill] sm:$0xff] %v6757_v43  ;;  %1998 = vrot.lane.b32.xlu1 %v9061_v5, %s4439_s10  ;;  %v2330_v43 = vsel %vm1456_vm10, %v2283_v1, %v9067_v63  ;;  %4207 = vmatpush3.bf16.msra.mxu0 %v4365_v45  ;;  %v6781_v49 = vsel %vm1330_vm6, %v1309_v12, %v9068_v4  ;;  %v9071_v33 = vld [vmem:[#allocation110_spill] sm:$0xff]  ;;  %v9072_v1 = vld [vmem:[#allocation8_spill] sm:$0xff]  ;;  %v9073_v4 = vld [vmem:[#allocation29_spill] sm:$0xff]  ;;  %s7873_s10 = scalar_lea.vmem [#allocation2], %s4128_s9 }
 0x2d2   : > { %2026 = vrot.lane.b32.xlu0 %v9017_v35, %s4440_s11  ;;  %v2375_v26 = vsel %vm1489_vm11, %v2327_v24, %v9069_v58  ;;  %v9070_v35 = vld [vmem:[#allocation223_spill] sm:$0xff]  ;;  %4257 = vmatpush3.bf16.msra.mxu1 %v4365_v45  ;;  %v2111_v8 = vsel %vm1299_vm5, %v9072_v1, %v6391_v16  ;;  %v2127_v12 = vsel %vm1299_vm5, %v9061_v5, %v6393_v2 }
 0x2d3   : > { %v6772_v15 = vpop.permute.xlu1 %1830  ;;  %v2354_v39 = vsel %vm1456_vm10, %v2307_v36, %v9070_v35  ;;  %v2113_v24 = vsel %vm1299_vm5, %v8907_v17, %v6399_v32  ;;  %v2399_v36 = vsel %vm1489_vm11, %v2351_v34, %v9073_v4  ;;  %v2129_v45 = vsel %vm1299_vm5, %v8908_v11, %v6401_v46  ;;  %v9074_v5 = vld [vmem:[#allocation231_spill] sm:$0xff]  ;;  %v9075_v34 = vld [vmem:[#allocation240_spill] sm:$0xff]  ;;  %v9076_v46 = vld [vmem:[#allocation30_spill] sm:$0xff] }
 0x2d4   : > { %v6787_v53 = vpop.permute.xlu0 %1846  ;;  %v2147_v16 = vsel %vm1330_vm6, %v2111_v8, %v6407_v42  ;;  %v2163_v2 = vsel %vm1330_vm6, %v2127_v12, %v6409_v14  ;;  %v2378_v17 = vsel %vm1489_vm11, %v2330_v43, %v9074_v5  ;;  %v2423_v1 = vsel %vm8470_vm12, %v2375_v26, %v9075_v34  ;;  %v9077_v14 = vld [vmem:[#allocation79_spill] sm:$0xff]  ;;  %v9078_v26 = vld [vmem:[#allocation89_spill] sm:$0xff] }
 0x2d5   : > { %2028 = vrot.lane.b32.xlu1 %v9071_v33, %s4440_s11  ;;  %v4366_v33 = vld [vmem:[%s8114_s1 + $0x18] sm:$0xff]   ;;  %v2149_v11 = vsel %vm1330_vm6, %v2113_v24, %v6423_v3  ;;  %v2402_v42 = vsel %vm1489_vm11, %v2354_v39, %v9076_v46  ;;  %v2447_v8 = vsel %vm8470_vm12, %v2399_v36, %v9077_v14  ;;  %v2165_v43 = vsel %vm1330_vm6, %v2129_v45, %v6425_v25  ;;  %v9079_v39 = vld [vmem:[#allocation241_spill] sm:$0xff] }
 0x2d6   : > { %2058 = vrot.lane.b32.xlu0 %v9024_v30, %s4441_s12  ;;  %4208 = vmatprep.subr.bf16.mxu0 %v4366_v33  ;;  %v2183_v30 = vsel %vm1361_vm7, %v2147_v16, %v6431_v47  ;;  %v2199_v3 = vsel %vm1361_vm7, %v2163_v2, %v6433_v31  ;;  %v2426_v24 = vsel %vm8470_vm12, %v2378_v17, %v9079_v39  ;;  %v4367_v47 = vld [vmem:[%s8114_s1 + $0x10] sm:$0xff]   ;;  %v9080_v45 = vld [vmem:[#allocation81_spill] sm:$0xff] }
 0x2d7   : > { %v6816_v32 = vpop.permute.xlu1 %1884  ;;  %4251 = vmatprep.subr.bf16.mxu1 %v4366_v33  ;;  %4209 = vmatpush3.bf16.msra.mxu0 %v4366_v33  ;;  %v2185_v36 = vsel %vm1361_vm7, %v2149_v11, %v6447_v59  ;;  %v2221_v25 = vsel %vm1392_vm8, %v2183_v30, %v6455_v0  ;;  %v2450_v16 = vsel %vm8470_vm12, %v2402_v42, %v9080_v45  ;;  %v6864_v11 = vsel %vm1555_vm13, %v2423_v1, 0  ;;  %v9081_v42 = vld [vmem:[#allocation169_spill] sm:$0xff] }
 0x2d8   : > { %v6830_v12 = vpop.permute.xlu0 %1940  ;;  %4258 = vmatpush3.bf16.msra.mxu1 %v4366_v33  ;;  %v2201_v31 = vsel %vm1361_vm7, %v2165_v43, %v6449_v44  ;;  %v2253_v2 = vsel %vm1392_vm8, %v2199_v3, %v6457_v41  ;;  %v2282_v59 = vsel %vm1423_vm9, %v2221_v25, %v6471_v40  ;;  %v2225_v33 = vsel %vm1392_vm8, %v2185_v36, %v6463_v7  ;;  %v9083_v36 = vld [vmem:[#allocation132_spill] sm:$0xff] }
 0x2d9   : > { %2060 = vrot.lane.b32.xlu1 %v9078_v26, %s4441_s12  ;;  %v2306_v17 = vsel %vm1423_vm9, %v2253_v2, %v6474_v20  ;;  %v2329_v44 = vsel %vm1456_vm10, %v2282_v59, %v6490_v29  ;;  %4210 = vmatprep.subr.bf16.mxu0 %v4367_v47  ;;  %v2257_v41 = vsel %vm1392_vm8, %v2201_v31, %v6465_v56  ;;  %v6877_v29 = vsel %vm1555_vm13, %v2447_v8, 0  ;;  %v9082_v26 = vld [vmem:[#allocation130_spill] sm:$0xff] }
 0x2da   : > { %2090 = vrot.lane.b32.xlu0 %v9030_v19, %s4442_s13  ;;  %4252 = vmatprep.subr.bf16.mxu1 %v4367_v47  ;;  %v2353_v40 = vsel %vm1456_vm10, %v2306_v17, %v6492_v18  ;;  %v2377_v7 = vsel %vm1489_vm11, %v2329_v44, %v6507_v52  ;;  %v2285_v20 = vsel %vm1423_vm9, %v2225_v33, %v6481_v22  ;;  %v9084_v33 = vld [vmem:[#allocation199_spill] sm:$0xff] }
 0x2db   : > { %v6855_v0 = vpop.permute.xlu1 %1972  ;;  %4211 = vmatpush3.bf16.msra.mxu0 %v4367_v47  ;;  %v2309_v56 = vsel %vm1423_vm9, %v2257_v41, %v6484_v27  ;;  %v2401_v18 = vsel %vm1489_vm11, %v2353_v40, %v6510_v13  ;;  %v2425_v52 = vsel %vm8470_vm12, %v2377_v7, %v6523_v48  ;;  %v2332_v1 = vsel %vm1456_vm10, %v2285_v20, %v6497_v38  ;;  %v9085_v41 = vld [vmem:[#allocation7_spill] sm:$0xff] }
 0x2dc   : > { %v6872_v19 = vpop.permute.xlu0 %1832  ;;  %4259 = vmatpush3.bf16.msra.mxu1 %v4367_v47  ;;  %v2356_v22 = vsel %vm1456_vm10, %v2309_v56, %v6500_v55  ;;  %v2449_v27 = vsel %vm8470_vm12, %v2401_v18, %v6525_v57  ;;  %v2473_v48 = vsel %vm1555_vm13, %v2426_v24, 0  ;;  %v6904_v8 = vsel %vm1361_vm7, %v6781_v49, %v9081_v42 }
 0x2dd   : > { %2108 = vrot.lane.b32.xlu1 %v9031_v50, %s4442_s13  ;;  %v4368_v50 = vld [vmem:[%s8114_s1 + $0x8] sm:$0xff]   ;;  %v2380_v38 = vsel %vm1489_vm11, %v2332_v1, %v6516_v6  ;;  %v2404_v55 = vsel %vm1489_vm11, %v2356_v22, %v6518_v61  ;;  %v2505_v57 = vshll.u32 %v6864_v11, 16  ;;  %v2489_v6 = vsel %vm1555_vm13, %v2450_v16, 0  ;;  %v4369_v61 = vld [vmem:[%s8114_s1] sm:$0xff]  }
 0x2de   : > { %2092 = vrot.lane.b32.xlu0 %v8878_v9, %s4442_s13  ;;  %4212 = vmatprep.subr.bf16.mxu0 %v4368_v50  ;;  %v2472_v9 = vsel %vm1555_vm13, %v2425_v52, 0  ;;  %v2428_v43 = vsel %vm8470_vm12, %v2380_v38, %v6537_v28  ;;  %v2452_v30 = vsel %vm8470_vm12, %v2404_v55, %v6539_v51  ;;  %v2488_v3 = vsel %vm1555_vm13, %v2449_v27, 0  ;;  %v9087_v27 = vld [vmem:[#allocation216_spill] sm:$0xff]  ;;  %v9088_v38 = vld [vmem:[#allocation207_spill] sm:$0xff]  ;;  %s4062_s13 = sshll.u32 %s7873_s10, 4  ;;  %s8066_s13 = int_to_ptr.vmem [resolvable:$true] %s4062_s13 }
 0x2df   : > { %v6898_v13 = vpop.permute.xlu1 %1850  ;;  %4253 = vmatprep.subr.bf16.mxu1 %v4368_v50  ;;  %4213 = vmatpush3.bf16.msra.mxu0 %v4368_v50  ;;  %v2227_v28 = vsel %vm1392_vm8, %v6904_v8, %v6559_v60  ;;  %v2585_v51 = vshll.u32 %v6877_v29, 16  ;;  %v2515_v24 = vshll.u32 %v2473_v48, 16  ;;  %v2509_v47 = vshll.u32 %v2472_v9, 16  ;;  %p4379_p0 = scmp.lt.s32.totalorder %s8066_s13, %s4377_s5 }
 0x2e0   : > { %v6916_v49 = vpop.permute.xlu0 %1866  ;;  %4260 = vmatpush3.bf16.msra.mxu1 %v4368_v50  ;;  %4214 = vmatprep.subr.bf16.mxu0 %v4369_v61  ;;  %v2474_v16 = vsel %vm1555_vm13, %v2428_v43, 0  ;;  %v2490_v31 = vsel %vm1555_vm13, %v2452_v30, 0  ;;  %v2595_v2 = vshll.u32 %v2489_v6, 16  ;;  %v2589_v59 = vshll.u32 %v2488_v3, 16  ;;  %v9086_v50 = vld [vmem:[#allocation44_spill] sm:$0xff]  ;;  %v9089_v43 = vld [vmem:[#allocation10_spill] sm:$0xff] }
 0x2e1   : > { %1251 = vrot.lane.b32.xlu1 %v9082_v26, %s4448_s28  ;;  %4254 = vmatprep.subr.bf16.mxu1 %v4369_v61  ;;  %v2286_v60 = vsel %vm1423_vm9, %v2227_v28, %v9084_v33  ;;  %v2259_v17 = vsel %vm1392_vm8, %v6160_v62, %v6561_v23  ;;  %v2507_v40 = vrot.slane %v2505_v57, 1  ;;  %v2503_v7 = vshrl.u32 %v6864_v11, 16  ;;  %v9090_v26 = vld [vmem:[#allocation68_spill] sm:$0xff] }
 0x2e2   : > { %1253 = vrot.lane.b32.xlu0 %v9083_v36, %s4448_s28  ;;  %v2587_v20 = vrot.slane %v2585_v51, 1  ;;  %v2517_v56 = vrot.slane %v2515_v24, 1  ;;  %v2519_v18 = vshll.u32 %v2474_v16, 16  ;;  %v2599_v52 = vshll.u32 %v2490_v31, 16  ;;  %v9092_v36 = vld [vmem:[#allocation233_spill] sm:$0xff]  ;;  %v9093_v16 = vld [vmem:[#allocation224_spill] sm:$0xff] }
 0x2e3   : > { %v6931_v25 = vpop.permute.xlu1 %1882  ;;  %4215 = vmatpush3.bf16.msra.mxu0 %v4369_v61  ;;  %v2583_v62 = vshrl.u32 %v6877_v29, 16  ;;  %v2513_v23 = vshrl.u32 %v2473_v48, 16  ;;  %v2511_v22 = vrot.slane %v2509_v47, 1  ;;  %v2333_v42 = vsel %vm1456_vm10, %v2286_v60, %v9087_v27  ;;  %v9095_v60 = vld [vmem:[#allocation16_spill] sm:$0xff] }
 0x2e4   : > { %v6940_v44 = vpop.permute.xlu0 %1944  ;;  %4261 = vmatpush3.bf16.msra.mxu1 %v4369_v61  ;;  %v2310_v11 = vsel %vm1423_vm9, %v2259_v17, %v9088_v38  ;;  %v2597_v55 = vrot.slane %v2595_v2, 1  ;;  %v2591_v57 = vrot.slane %v2589_v59, 1  ;;  %v2508_v30 = vor.u32 %v2507_v40, %v2503_v7  ;;  %v9091_v61 = vld [vmem:[#allocation54_spill] sm:$0xff]  ;;  %v9097_v40 = vld [vmem:[#allocation71_spill] sm:$0xff] }
 0x2e5   : > { %1267 = vrot.lane.b32.xlu1 %v9085_v41, %s4449_s27  ;;  %v2231_v29 = vsel %vm1392_vm8, %v9091_v61, %v9090_v26  ;;  %v2588_v48 = vor.u32 %v2587_v20, %v2583_v62  ;;  %v2518_v3 = vor.u32 %v2517_v56, %v2513_v23  ;;  %v2593_v28 = vshrl.u32 %v2489_v6, 16  ;;  %v9094_v59 = vld [vmem:[#allocation22_spill] sm:$0xff]  ;;  %v9096_v41 = vld [vmem:[#allocation104_spill] sm:$0xff]  ;;  %v9101_v62 = vld [vmem:[#allocation21_spill] sm:$0xff] }
 0x2e6   : > { %1283 = vrot.lane.b32.xlu0 %v9086_v50, %s4449_s27  ;;  %v2521_v51 = vrot.slane %v2519_v18, 1  ;;  %v2601_v24 = vrot.slane %v2599_v52, 1  ;;  %v2381_v47 = vsel %vm1489_vm11, %v2333_v42, %v9092_v36  ;;  %v2357_v31 = vsel %vm1456_vm10, %v2310_v11, %v9093_v16  ;;  %v9098_v56 = vld [vmem:[#allocation118_spill] sm:$0xff]  ;;  %v9099_v18 = vld [vmem:[#allocation56_spill] sm:$0xff] }
 0x2e7   : > { %v6947_v1 = vpop.permute.xlu1 %1976  ;;  %v2115_v17 = vsel %vm1299_vm5, %v9095_v60, %v9094_v59  ;;  %v2263_v6 = vsel %vm1392_vm8, %v9097_v40, %v9096_v41  ;;  %v2512_v7 = vsel %vm375_vm0, %v2508_v30, %v2511_v22  ;;  %v2598_v20 = vor.u32 %v2597_v55, %v2593_v28  ;;  %v9100_v50 = vld [vmem:[#allocation62_spill] sm:$0xff]  ;;  %v9102_v23 = vld [vmem:[#allocation200_spill] sm:$0xff]  ;;  %v9103_v22 = vld [vmem:[#allocation23_spill] sm:$0xff] }
 0x2e8   : > { %v6954_v9 = vpop.permute.xlu0 %1868  ;;  %v2131_v52 = vsel %vm1299_vm5, %v9099_v18, %v9098_v56  ;;  %v2289_v42 = vsel %vm1423_vm9, %v2231_v29, %v9102_v23  ;;  %v2592_v11 = vsel %vm375_vm0, %v2588_v48, %v2591_v57  ;;  %v9104_v55 = vld [vmem:[#allocation61_spill] sm:$0xff]  ;;  %v9105_v30 = vld [vmem:[#allocation63_spill] sm:$0xff]  ;;  %v9106_v61 = vld [vmem:[#allocation72_spill] sm:$0xff]  ;;  %v2522_v48 = vsel %vm375_vm0, %v2518_v3, %v2521_v51 }
 0x2e9   : > { %1269 = vrot.lane.b32.xlu1 %v9089_v43, %s4449_s27  ;;  %v2133_v43 = vsel %vm1299_vm5, %v9104_v55, %v9103_v22  ;;  %v2151_v26 = vsel %vm1330_vm6, %v2115_v17, %v9105_v30  ;;  %v2429_v28 = vsel %vm8470_vm12, %v2381_v47, %v9106_v61  ;;  %v9107_v16 = vld [vmem:[#allocation40_spill] sm:$0xff]  ;;  %v9108_v59 = vld [vmem:[#allocation66_spill] sm:$0xff]  ;;  %v2602_v17 = vsel %vm375_vm0, %v2598_v20, %v2601_v24  ;;  %v9111_v56 = vld [vmem:[#allocation27_spill] sm:$0xff] }
 0x2ea   : > { %1285 = vrot.lane.b32.xlu0 %v9042_v54, %s4449_s27  ;;  %v2117_v54 = vsel %vm1299_vm5, %v9101_v62, %v9100_v50  ;;  %v2405_v29 = vsel %vm1489_vm11, %v2357_v31, %v9107_v16  ;;  %v2187_v60 = vsel %vm1361_vm7, %v2151_v26, %v9108_v59  ;;  %v9109_v41 = vld [vmem:[#allocation208_spill] sm:$0xff]  ;;  %v9112_v18 = vld [vmem:[#allocation217_spill] sm:$0xff]  ;;  %v9116_v51 = vld [vmem:[#allocation123_spill] sm:$0xff] }
 0x2eb   : > { %v6967_v2 = vpop.permute.xlu1 %1886  ;;  %v2313_v40 = vsel %vm1423_vm9, %v2263_v6, %v9109_v41  ;;  %v2153_v31 = vsel %vm1330_vm6, %v2117_v54, %v9111_v56  ;;  %v2336_v50 = vsel %vm1456_vm10, %v2289_v42, %v9112_v18  ;;  %v9113_v62 = vld [vmem:[#allocation121_spill] sm:$0xff]  ;;  %v9114_v23 = vld [vmem:[#allocation84_spill] sm:$0xff]  ;;  %v9117_v54 = vld [vmem:[#allocation95_spill] sm:$0xff] }
 0x2ec   : > { %v6984_v38 = vpop.permute.xlu0 %1942  ;;  %v2229_v6 = vsel %vm1392_vm8, %v2187_v60, %v9113_v62  ;;  %v9115_v22 = vld [vmem:[#allocation28_spill] sm:$0xff]  ;;  %v2169_v42 = vsel %vm1330_vm6, %v2133_v43, %v9117_v54  ;;  %v9118_v55 = vld [vmem:[#allocation225_spill] sm:$0xff]  ;;  %v9121_v60 = vld [vmem:[#allocation234_spill] sm:$0xff] }
 0x2ed   : > { %2663 = vrot.lane.b32.xlu1 %v2512_v7, %s4450_s29  ;;  %v9110_v7 = vld [vmem:[#allocation78_spill] sm:$0xff]  ;;  %v2288_v24 = vsel %vm1423_vm9, %v2229_v6, %v9116_v51  ;;  %v2360_v30 = vsel %vm1456_vm10, %v2313_v40, %v9118_v55  ;;  %v9119_v26 = vld [vmem:[#allocation80_spill] sm:$0xff]  ;;  %v2384_v41 = vsel %vm1489_vm11, %v2336_v50, %v9121_v60  ;;  %v9124_v56 = vld [vmem:[#allocation37_spill] sm:$0xff] }
 0x2ee   : > { %2679 = vrot.lane.b32.xlu0 %v2592_v11, %s4450_s29  ;;  %v2167_v47 = vsel %vm1330_vm6, %v2131_v52, %v9110_v7  ;;  %v2453_v11 = vsel %vm8470_vm12, %v2405_v29, %v9114_v23  ;;  %v7024_v52 = vsel %vm1555_vm13, %v2429_v28, 0  ;;  %v9120_v29 = vld [vmem:[#allocation164_spill] sm:$0xff]  ;;  %v9122_v7 = vld [vmem:[#allocation122_spill] sm:$0xff]  ;;  %v9123_v28 = vld [vmem:[#allocation105_spill] sm:$0xff] }
 0x2ef   : > { %v7002_v57 = vpop.permute.xlu1 %1974  ;;  %v2203_v3 = vsel %vm1361_vm7, %v2167_v47, %v9115_v22  ;;  %v2335_v59 = vsel %vm1456_vm10, %v2288_v24, %v9120_v29  ;;  %v9125_v18 = vld [vmem:[#allocation97_spill] sm:$0xff]  ;;  %v9126_v6 = vld [vmem:[#allocation35_spill] sm:$0xff]  ;;  %v9133_v60 = vld [vmem:[#allocation70_spill] sm:$0xff] }
 0x2f0   : > { %v7020_v20 = vpop.permute.xlu0 %2010  ;;  %v2261_v16 = vsel %vm1392_vm8, %v2203_v3, %v9119_v26  ;;  %v2383_v43 = vsel %vm1489_vm11, %v2335_v59, %v9124_v56  ;;  %v9127_v50 = vld [vmem:[#allocation257_spill] sm:$0xff]  ;;  %v9128_v3 = vld [vmem:[#allocation47_spill] sm:$0xff]  ;;  %v9131_v26 = vld [vmem:[#allocation180_spill] sm:$0xff] }
 0x2f1   : > { %2665 = vrot.lane.b32.xlu1 %v2522_v48, %s4450_s29  ;;  %v2189_v48 = vsel %vm1361_vm7, %v2153_v31, %v9122_v7  ;;  %v2312_v47 = vsel %vm1423_vm9, %v2261_v16, %v9123_v28  ;;  %v2431_v22 = vsel %vm8470_vm12, %v2383_v43, %v9127_v50  ;;  %v2491_v31 = vsel %vm1555_vm13, %v2453_v11, 0  ;;  %v9129_v24 = vld [vmem:[#allocation103_spill] sm:$0xff]  ;;  %v9132_v59 = vld [vmem:[#allocation133_spill] sm:$0xff]  ;;  %v9134_v7 = vld [vmem:[#allocation106_spill] sm:$0xff] }
 0x2f2   : > { %2681 = vrot.lane.b32.xlu0 %v2602_v17, %s4450_s29  ;;  %v2233_v62 = vsel %vm1392_vm8, %v2189_v48, %v9125_v18  ;;  %v2359_v23 = vsel %vm1456_vm10, %v2312_v47, %v9126_v6  ;;  %v2408_v51 = vsel %vm1489_vm11, %v2360_v30, %v9128_v3  ;;  %v2205_v54 = vsel %vm1361_vm7, %v2169_v42, %v9129_v24  ;;  %v9130_v17 = vld [vmem:[#allocation192_spill] sm:$0xff]  ;;  %v9136_v28 = vld [vmem:[#allocation85_spill] sm:$0xff]  ;;  %v9137_v56 = vld [vmem:[#allocation34_spill] sm:$0xff] }
 0x2f3   : > { %v7043_v40 = vpop.permute.xlu1 %1946  ;;  %v2291_v55 = vsel %vm1423_vm9, %v2233_v62, %v9130_v17  ;;  %v2407_v16 = vsel %vm1489_vm11, %v2359_v23, %v9131_v26  ;;  %v2432_v11 = vsel %vm8470_vm12, %v2384_v41, %v9133_v60  ;;  %v2265_v30 = vsel %vm1392_vm8, %v2205_v54, %v9134_v7  ;;  %v9135_v48 = vld [vmem:[#allocation160_spill] sm:$0xff]  ;;  %v9138_v18 = vld [vmem:[#allocation109_spill] sm:$0xff]  ;;  %v9140_v50 = vld [vmem:[#allocation86_spill] sm:$0xff] }
 0x2f4   : > { %v7060_v29 = vpop.permute.xlu0 %1978  ;;  %v2338_v42 = vsel %vm1456_vm10, %v2291_v55, %v9135_v48  ;;  %v2455_v47 = vsel %vm8470_vm12, %v2407_v16, %v9136_v28  ;;  %v2315_v43 = vsel %vm1423_vm9, %v2265_v30, %v9137_v56  ;;  %v2476_v6 = vsel %vm1555_vm13, %v2431_v22, 0  ;;  %v9139_v23 = vld [vmem:[#allocation125_spill] sm:$0xff]  ;;  %v9141_v24 = vld [vmem:[#allocation82_spill] sm:$0xff]  ;;  %v9142_v26 = vld [vmem:[#allocation107_spill] sm:$0xff] }
 0x2f5   : > { %1255 = vrot.lane.b32.xlu1 %v9132_v59, %s4448_s28  ;;  %v2386_v62 = vsel %vm1489_vm11, %v2338_v42, %v9138_v18  ;;  %v2456_v3 = vsel %vm8470_vm12, %v2408_v51, %v9140_v50  ;;  %v2362_v54 = vsel %vm1456_vm10, %v2315_v43, %v9141_v24  ;;  %v2525_v55 = vshll.u32 %v7024_v52, 16  ;;  %v9143_v60 = vld [vmem:[#allocation134_spill] sm:$0xff]  ;;  %v9145_v24 = vld [vmem:[#allocation17_spill] sm:$0xff] }
 0x2f6   : > { %1241 = vrot.lane.b32.xlu0 %v9139_v23, %s4448_s28  ;;  %v2434_v17 = vsel %vm8470_vm12, %v2386_v62, %v6711_v21  ;;  %v2410_v16 = vsel %vm1489_vm11, %v2362_v54, %v9142_v26  ;;  %v2492_v22 = vsel %vm1555_vm13, %v2455_v47, 0  ;;  %v2605_v7 = vshll.u32 %v2491_v31, 16 }
 0x2f7   : > { %v7079_v41 = vpop.permute.xlu1 %1992  ;;  %v2477_v51 = vsel %vm1555_vm13, %v2432_v11, 0  ;;  %v2529_v30 = vshll.u32 %v2476_v6, 16  ;;  %v2458_v48 = vsel %vm8470_vm12, %v2410_v16, %v6731_v10  ;;  %v2478_v21 = vsel %vm1555_vm13, %v2434_v17, 0  ;;  %v9144_v11 = vld [vmem:[#allocation53_spill] sm:$0xff] }
 0x2f8   : > { %v7091_v59 = vpop.permute.xlu0 %2008  ;;  %v2493_v28 = vsel %vm1555_vm13, %v2456_v3, 0  ;;  %v2609_v47 = vshll.u32 %v2492_v22, 16  ;;  %v2527_v56 = vrot.slane %v2525_v55, 1  ;;  %v2535_v43 = vshll.u32 %v2477_v51, 16 }
 0x2f9   : > { %1257 = vrot.lane.b32.xlu1 %v9143_v60, %s4448_s28  ;;  %v2494_v18 = vsel %vm1555_vm13, %v2458_v48, 0  ;;  %v2607_v10 = vrot.slane %v2605_v7, 1  ;;  %v2531_v6 = vrot.slane %v2529_v30, 1  ;;  %v2539_v23 = vshll.u32 %v2478_v21, 16  ;;  %v9146_v60 = vld [vmem:[#allocation59_spill] sm:$0xff] }
 0x2fa   : > { %1271 = vrot.lane.b32.xlu0 %v9066_v37, %s4449_s27  ;;  %v2523_v50 = vshrl.u32 %v7024_v52, 16  ;;  %v2615_v37 = vshll.u32 %v2493_v28, 16  ;;  %v2603_v54 = vshrl.u32 %v2491_v31, 16  ;;  %v2611_v17 = vrot.slane %v2609_v47, 1 }
 0x2fb   : > { %v7101_v42 = vpop.permute.xlu1 %2040  ;;  %v2619_v55 = vshll.u32 %v2494_v18, 16  ;;  %v2537_v16 = vrot.slane %v2535_v43, 1  ;;  %v2541_v30 = vrot.slane %v2539_v23, 1  ;;  %v2533_v48 = vshrl.u32 %v2477_v51, 16  ;;  %v9149_v51 = vld [vmem:[#allocation201_spill] sm:$0xff] }
 0x2fc   : > { %v7105_v62 = vpop.permute.xlu0 %1994  ;;  %v2528_v26 = vor.u32 %v2527_v56, %v2523_v50  ;;  %v2608_v7 = vor.u32 %v2607_v10, %v2603_v54  ;;  %v2617_v21 = vrot.slane %v2615_v37, 1  ;;  %v2613_v18 = vshrl.u32 %v2493_v28, 16  ;;  %v9148_v10 = vld [vmem:[#allocation183_spill] sm:$0xff] }
 0x2fd   : > { %1287 = vrot.lane.b32.xlu1 %v9144_v11, %s4449_s27  ;;  %v9147_v11 = vld [vmem:[#allocation55_spill] sm:$0xff]  ;;  %v2621_v47 = vrot.slane %v2619_v55, 1  ;;  %v2538_v43 = vor.u32 %v2537_v16, %v2533_v48  ;;  %v2267_v23 = vsel %vm1392_vm8, %v9148_v10, %v6855_v0  ;;  %v9151_v0 = vld [vmem:[#allocation218_spill] sm:$0xff] }
 0x2fe   : > { %1273 = vrot.lane.b32.xlu0 %v9145_v24, %s4449_s27  ;;  %v2532_v52 = vsel %vm375_vm0, %v2528_v26, %v2531_v6  ;;  %v2235_v24 = vsel %vm1392_vm8, %v9147_v11, %v6830_v12  ;;  %v2612_v56 = vsel %vm375_vm0, %v2608_v7, %v2611_v17  ;;  %v2618_v37 = vor.u32 %v2617_v21, %v2613_v18  ;;  %v9150_v17 = vld [vmem:[#allocation209_spill] sm:$0xff]  ;;  %v9153_v7 = vld [vmem:[#allocation31_spill] sm:$0xff]  ;;  %v9155_v21 = vld [vmem:[#allocation126_spill] sm:$0xff] }
 0x2ff   : > { %v7112_v3 = vpop.permute.xlu1 %2012  ;;  %v2292_v12 = vsel %vm1423_vm9, %v2235_v24, %v9149_v51  ;;  %v2542_v50 = vsel %vm375_vm0, %v2538_v43, %v2541_v30  ;;  %v2316_v28 = vsel %vm1423_vm9, %v2267_v23, %v9150_v17  ;;  %v9156_v24 = vld [vmem:[#allocation14_spill] sm:$0xff]  ;;  %v9158_v18 = vld [vmem:[#allocation171_spill] sm:$0xff]  ;;  %v9159_v51 = vld [vmem:[#allocation137_spill] sm:$0xff] }
 0x300   : > { %v7114_v22 = vpop.permute.xlu0 %2022  ;;  %v2622_v55 = vsel %vm375_vm0, %v2618_v37, %v2621_v47  ;;  %v2339_v26 = vsel %vm1456_vm10, %v2292_v12, %v9151_v0  ;;  %v9160_v12 = vld [vmem:[#allocation49_spill] sm:$0xff] }
 0x301   : > { %1289 = vrot.lane.b32.xlu1 %v9146_v60, %s4449_s27  ;;  %v9152_v60 = vld [vmem:[#allocation143_spill] sm:$0xff]  ;;  %v9161_v17 = vld [vmem:[#allocation73_spill] sm:$0xff] }
 0x302   : > { %2667 = vrot.lane.b32.xlu0 %v2532_v52, %s4450_s29  ;;  %v1315_v30 = vsel %vm1299_vm5, %v9153_v7, %v9152_v60  ;;  %v9154_v52 = vld [vmem:[#allocation226_spill] sm:$0xff] }
 0x303   : > { %v7123_v31 = vpop.permute.xlu1 %2038  ;;  %v2363_v48 = vsel %vm1456_vm10, %v2316_v28, %v9154_v52  ;;  %v1346_v47 = vsel %vm1330_vm6, %v1315_v30, %v9156_v24  ;;  %v9164_v30 = vld [vmem:[#allocation202_spill] sm:$0xff] }
 0x304   : > { %v7129_v6 = vpop.permute.xlu0 %2072  ;;  %v7161_v10 = vsel %vm1361_vm7, %v1346_v47, %v9158_v18  ;;  %v9167_v47 = vld [vmem:[#allocation26_spill] sm:$0xff] }
 0x305   : > { %2683 = vrot.lane.b32.xlu1 %v2612_v56, %s4450_s29  ;;  %v9157_v56 = vld [vmem:[#allocation235_spill] sm:$0xff]  ;;  %v2239_v37 = vsel %vm1392_vm8, %v7161_v10, %v6940_v44  ;;  %v9166_v44 = vld [vmem:[#allocation244_spill] sm:$0xff] }
 0x306   : > { %2669 = vrot.lane.b32.xlu0 %v2542_v50, %s4450_s29  ;;  %v2387_v43 = vsel %vm1489_vm11, %v2339_v26, %v9157_v56  ;;  %v2411_v50 = vsel %vm1489_vm11, %v2363_v48, %v9160_v12  ;;  %v9163_v26 = vld [vmem:[#allocation88_spill] sm:$0xff]  ;;  %v2295_v52 = vsel %vm1423_vm9, %v2239_v37, %v9164_v30  ;;  %v9165_v48 = vld [vmem:[#allocation138_spill] sm:$0xff]  ;;  %v2119_v56 = vsel %vm1299_vm5, %v9167_v47, %v9166_v44  ;;  %v9170_v12 = vld [vmem:[#allocation153_spill] sm:$0xff] }
 0x307   : > { %v7136_v54 = vpop.permute.xlu1 %1816  ;;  %v2435_v28 = vsel %vm8470_vm12, %v2387_v43, %v9161_v17  ;;  %v2459_v60 = vsel %vm8470_vm12, %v2411_v50, %v9163_v26  ;;  %v9168_v43 = vld [vmem:[#allocation25_spill] sm:$0xff]  ;;  %v2155_v37 = vsel %vm1330_vm6, %v2119_v56, %v6772_v15  ;;  %v9171_v17 = vld [vmem:[#allocation219_spill] sm:$0xff] }
 0x308   : > { %v7143_v16 = vpop.permute.xlu0 %2024  ;;  %v2479_v24 = vsel %vm1555_vm13, %v2435_v28, 0  ;;  %v2495_v28 = vsel %vm1555_vm13, %v2459_v60, 0  ;;  %v9172_v26 = vld [vmem:[#allocation111_spill] sm:$0xff]  ;;  %v2191_v61 = vsel %vm1361_vm7, %v2155_v37, %v6916_v49 }
 0x309   : > { %2685 = vrot.lane.b32.xlu1 %v2622_v55, %s4450_s29  ;;  %v9162_v55 = vld [vmem:[#allocation127_spill] sm:$0xff]  ;;  %v2545_v15 = vshll.u32 %v2479_v24, 16  ;;  %v2237_v56 = vsel %vm1392_vm8, %v2191_v61, %v6984_v38 }
 0x30a   : > { %1243 = vrot.lane.b32.xlu0 %v9155_v21, %s4448_s28  ;;  %v9174_v47 = vld [vmem:[#allocation119_spill] sm:$0xff]  ;;  %v2294_v37 = vsel %vm1423_vm9, %v2237_v56, %v7079_v41 }
 0x30b   : > { %v7153_v11 = vpop.permute.xlu1 %2042  ;;  %v2341_v61 = vsel %vm1456_vm10, %v2294_v37, %v7114_v22  ;;  %v9180_v37 = vld [vmem:[#allocation48_spill] sm:$0xff] }
 0x30c   : > { %v2055_v23 = vpop.permute.xlu0 %2054 }
 0x30d   : > { %1259 = vrot.lane.b32.xlu1 %v9159_v51, %s4448_s28  ;;  %v9169_v51 = vld [vmem:[#allocation38_spill] sm:$0xff] }
 0x30e   : > { %1245 = vrot.lane.b32.xlu0 %v9162_v55, %s4448_s28  ;;  %v2137_v50 = vsel %vm1299_vm5, %v9170_v12, %v9169_v51  ;;  %v2342_v55 = vsel %vm1456_vm10, %v2295_v52, %v9171_v17  ;;  %v9175_v51 = vld [vmem:[#allocation64_spill] sm:$0xff] }
 0x30f   : > { %v2071_v0 = vpop.permute.xlu1 %2070 }
 0x310   : > { %v2105_v21 = vpop.permute.xlu0 %2104 }
 0x311   : > { %1261 = vrot.lane.b32.xlu1 %v9165_v48, %s4448_s28  ;;  %v9173_v48 = vld [vmem:[#allocation65_spill] sm:$0xff] }
 0x312   : > { %1275 = vrot.lane.b32.xlu0 %v9168_v43, %s4449_s27  ;;  %v2135_v44 = vsel %vm1299_vm5, %v9173_v48, %v9172_v26  ;;  %v2173_v43 = vsel %vm1330_vm6, %v2137_v50, %v9174_v47  ;;  %v9176_v26 = vld [vmem:[#allocation236_spill] sm:$0xff] }
 0x313   : > { %v7186_v18 = vpop.permute.xlu1 %1852  ;;  %v2171_v52 = vsel %vm1330_vm6, %v2135_v44, %v6787_v53  ;;  %v2209_v60 = vsel %vm1361_vm7, %v2173_v43, %v6816_v32  ;;  %v2390_v49 = vsel %vm1489_vm11, %v2342_v55, %v9176_v26  ;;  %v2625_v53 = vshll.u32 %v2495_v28, 16  ;;  %v9177_v44 = vld [vmem:[#allocation87_spill] sm:$0xff]  ;;  %v9178_v47 = vld [vmem:[#allocation32_spill] sm:$0xff] }
 0x314   : > { %v7203_v36 = vpop.permute.xlu0 %2056  ;;  %v2207_v50 = vsel %vm1361_vm7, %v2171_v52, %v6931_v25  ;;  %v2121_v32 = vsel %vm1299_vm5, %v9178_v47, %v9177_v44  ;;  %v2271_v38 = vsel %vm1392_vm8, %v2209_v60, %v6947_v1  ;;  %v2389_v55 = vsel %vm1489_vm11, %v2341_v61, %v2055_v23  ;;  %v9179_v1 = vld [vmem:[#allocation242_spill] sm:$0xff] }
 0x315   : > { %1291 = vrot.lane.b32.xlu1 %v9175_v51, %s4449_s27  ;;  %v2269_v25 = vsel %vm1392_vm8, %v2207_v50, %v7002_v57  ;;  %v2320_v41 = vsel %vm1423_vm9, %v2271_v38, %v7020_v20  ;;  %v2547_v51 = vrot.slane %v2545_v15, 1  ;;  %v2438_v52 = vsel %vm8470_vm12, %v2390_v49, %v9179_v1  ;;  %v9181_v44 = vld [vmem:[#allocation162_spill] sm:$0xff] }
 0x316   : > { %1277 = vrot.lane.b32.xlu0 %v9153_v7, %s4449_s27  ;;  %v2318_v7 = vsel %vm1423_vm9, %v2269_v25, %v7091_v59  ;;  %v2367_v57 = vsel %vm1456_vm10, %v2320_v41, %v7101_v42  ;;  %v2627_v15 = vrot.slane %v2625_v53, 1  ;;  %v2543_v42 = vshrl.u32 %v2479_v24, 16 }
 0x317   : > { %v2075_v48 = vpop.permute.xlu1 %2074  ;;  %v2365_v22 = vsel %vm1456_vm10, %v2318_v7, %v7123_v31  ;;  %v2415_v59 = vsel %vm1489_vm11, %v2367_v57, %v7129_v6  ;;  %v2139_v31 = vsel %vm1299_vm5, %v9181_v44, %v9180_v37  ;;  %v2623_v6 = vshrl.u32 %v2495_v28, 16 }
 0x318   : > { %v2087_v43 = vpop.permute.xlu0 %2086  ;;  %v2413_v23 = vsel %vm1489_vm11, %v2365_v22, %v2071_v0  ;;  %v2463_v56 = vsel %vm8470_vm12, %v2415_v59, %v2105_v21  ;;  %v2481_v0 = vsel %vm1555_vm13, %v2438_v52, 0  ;;  %v2157_v53 = vsel %vm1330_vm6, %v2121_v32, %v6872_v19 }
 0x319   : > { %1293 = vrot.lane.b32.xlu1 %v9170_v12, %s4449_s27  ;;  %v2437_v20 = vsel %vm8470_vm12, %v2389_v55, %v2087_v43  ;;  %v2548_v61 = vor.u32 %v2547_v51, %v2543_v42  ;;  %v2175_v24 = vsel %vm1330_vm6, %v2139_v31, %v6898_v13  ;;  %v2193_v41 = vsel %vm1361_vm7, %v2157_v53, %v6954_v9 }
 0x31a   : > { %v2480_v60 = vsel %vm1555_vm13, %v2437_v20, 0  ;;  %v2497_v7 = vsel %vm1555_vm13, %v2463_v56, 0  ;;  %v2628_v43 = vor.u32 %v2627_v15, %v2623_v6  ;;  %v2241_v28 = vsel %vm1392_vm8, %v2193_v41, %v7043_v40  ;;  %v9183_v41 = vld [vmem:[#allocation50_spill] sm:$0xff] }
 0x31b   : > { %v2103_v12 = vpop.permute.xlu1 %2102  ;;  %v2549_v50 = vshll.u32 %v2480_v60, 16  ;;  %v2555_v32 = vshll.u32 %v2481_v0, 16  ;;  %v2211_v51 = vsel %vm1361_vm7, %v2175_v24, %v6967_v2  ;;  %v2297_v13 = vsel %vm1423_vm9, %v2241_v28, %v7105_v62  ;;  %v9184_v28 = vld [vmem:[#allocation128_spill] sm:$0xff] }
 0x31c   : > { %v2461_v49 = vsel %vm8470_vm12, %v2413_v23, %v2103_v12  ;;  %v7254_v38 = vpop.permute.xlu0 %1798  ;;  %v2273_v57 = vsel %vm1392_vm8, %v2211_v51, %v7060_v29  ;;  %v2344_v22 = vsel %vm1456_vm10, %v2297_v13, %v7143_v16  ;;  %v2635_v40 = vshll.u32 %v2497_v7, 16 }
 0x31d   : > { %v2496_v47 = vsel %vm1555_vm13, %v2461_v49, 0  ;;  %v2551_v25 = vrot.slane %v2549_v50, 1  ;;  %v2322_v59 = vsel %vm1423_vm9, %v2273_v57, %v7112_v3  ;;  %v2392_v2 = vsel %vm1489_vm11, %v2344_v22, %v7203_v36  ;;  %v9186_v22 = vld [vmem:[#allocation129_spill] sm:$0xff] }
 0x31e   : > { %v2629_v21 = vshll.u32 %v2496_v47, 16  ;;  %v2369_v62 = vsel %vm1456_vm10, %v2322_v59, %v7153_v11  ;;  %v2557_v60 = vrot.slane %v2555_v32, 1  ;;  %v2637_v56 = vrot.slane %v2635_v40, 1  ;;  %v9188_v59 = vld [vmem:[#allocation33_spill] sm:$0xff] }
 0x31f   : > { %v7264_v55 = vpop.permute.xlu1 %1818  ;;  %v2552_v19 = vsel %vm375_vm0, %v2548_v61, %v2551_v25  ;;  %v2417_v16 = vsel %vm1489_vm11, %v2369_v62, %v2075_v48  ;;  %v2553_v49 = vshrl.u32 %v2481_v0, 16  ;;  %v2633_v37 = vshrl.u32 %v2497_v7, 16  ;;  %v9182_v61 = vld [vmem:[#allocation232_spill] sm:$0xff] }
 0x320   : > { %v2631_v52 = vrot.slane %v2629_v21, 1  ;;  %2671 = vrot.lane.b32.xlu0 %v2552_v19, %s4450_s29  ;;  %v1889_v9 = vpop.permute.xlu0 %1888  ;;  %v1232_v24 = vrot.slane %v9182_v61, 2  ;;  %v1233_v7 = vrot.slane %v9183_v41, 2  ;;  %v2141_v32 = vsel %vm1299_vm5, %v9182_v61, %v7136_v54 }
 0x321   : > { %v2558_v31 = vor.u32 %v2557_v60, %v2553_v49  ;;  %v2638_v6 = vor.u32 %v2637_v56, %v2633_v37  ;;  %v2177_v13 = vsel %vm1330_vm6, %v2141_v32, %v7186_v18  ;;  %v9193_v56 = vld [vmem:[#allocation39_spill] sm:$0xff]  ;;  %v9194_v49 = vld [vmem:[#allocation157_spill] sm:$0xff] }
 0x322   : > { %v2632_v20 = vsel %vm375_vm0, %v2628_v43, %v2631_v52  ;;  %v9185_v52 = vld [vmem:[#allocation215_spill] sm:$0xff]  ;;  %v1234_v51 = vsel %vm818_vm4, %v1232_v24, %v1233_v7  ;;  %v2213_v40 = vsel %vm1361_vm7, %v2177_v13, %v1889_v9  ;;  %v9192_v9 = vld [vmem:[#allocation145_spill] sm:$0xff]  ;;  %v9199_v7 = vld [vmem:[#allocation210_spill] sm:$0xff]  ;;  %vm1720_vm4 = vcmask 457728  }
 0x323   : > { %v2089_v23 = vpop.permute.xlu1 %2088  ;;  %2687 = vrot.lane.b32.xlu1 %v2632_v20, %s4450_s29  ;;  %v9187_v20 = vld [vmem:[#allocation144_spill] sm:$0xff] }
 0x324   : > { %v2440_v29 = vsel %vm8470_vm12, %v2392_v2, %v2089_v23  ;;  %v2107_v15 = vpop.permute.xlu0 %2106  ;;  %v1317_v2 = vsel %vm1299_vm5, %v9188_v59, %v9187_v20  ;;  %v9189_v23 = vld [vmem:[#allocation93_spill] sm:$0xff] }
 0x325   : > { %v2482_v12 = vsel %vm1555_vm13, %v2440_v29, 0  ;;  %v2465_v3 = vsel %vm8470_vm12, %v2417_v16, %v2107_v15  ;;  %v4336_v62 = vunpack.i.h.bf16 %v9189_v23  ;;  %v9190_v29 = vld [vmem:[#allocation24_spill] sm:$0xff] }
 0x326   : > { %v2559_v50 = vshll.u32 %v2482_v12, 16  ;;  %v2498_v36 = vsel %vm1555_vm13, %v2465_v3, 0  ;;  %v1348_v60 = vsel %vm1330_vm6, %v1317_v2, %v9190_v29  ;;  %v9191_v16 = vld [vmem:[#allocation172_spill] sm:$0xff] }
 0x327   : > { %v7291_v42 = vpop.permute.xlu1 %1800  ;;  %v2639_v11 = vshll.u32 %v2498_v36, 16  ;;  %v1379_v18 = vsel %vm1361_vm7, %v1348_v60, %v9191_v16  ;;  %v2275_v12 = vsel %vm1392_vm8, %v2213_v40, %v4336_v62  ;;  %v9203_v29 = vld [vmem:[#allocation220_spill] sm:$0xff] }
 0x328   : > { %v2561_v44 = vrot.slane %v2559_v50, 1  ;;  %v7293_v47 = vpop.permute.xlu0 %1834  ;;  %v1319_v50 = vsel %vm1299_vm5, %v9193_v56, %v9192_v9  ;;  %v9204_v60 = vld [vmem:[#allocation204_spill] sm:$0xff] }
 0x329   : > { %v2641_v48 = vrot.slane %v2639_v11, 1  ;;  %v1350_v36 = vsel %vm1330_vm6, %v1319_v50, %v9194_v49  ;;  %v9205_v50 = vld [vmem:[#allocation166_spill] sm:$0xff] }
 0x32a   : > { %v2562_v53 = vsel %vm375_vm0, %v2558_v31, %v2561_v44  ;;  %v9195_v44 = vld [vmem:[#allocation131_spill] sm:$0xff]  ;;  %v9196_v31 = vld [vmem:[#allocation173_spill] sm:$0xff] }
 0x32b   : > { %v7296_v25 = vpop.permute.xlu1 %1854  ;;  %2673 = vrot.lane.b32.xlu0 %v2562_v53, %s4450_s29  ;;  %v2642_v0 = vsel %vm375_vm0, %v2638_v6, %v2641_v48  ;;  %v4325_v11 = vunpack.i.l.bf16 %v9195_v44  ;;  %v7345_v6 = vsel %vm1361_vm7, %v1350_v36, %v9196_v31  ;;  %v9197_v48 = vld [vmem:[#allocation194_spill] sm:$0xff]  ;;  %v9207_v31 = vld [vmem:[#allocation221_spill] sm:$0xff] }
 0x32c   : > { %2689 = vrot.lane.b32.xlu1 %v2642_v0, %s4450_s29  ;;  %v1949_v21 = vpop.permute.xlu0 %1948  ;;  %v2323_v53 = vsel %vm1423_vm9, %v2275_v12, %v9197_v48  ;;  %v9198_v0 = vld [vmem:[#allocation151_spill] sm:$0xff] }
 0x32d   : > { %v2243_v3 = vsel %vm1392_vm8, %v1379_v18, %v1949_v21  ;;  %v4330_v24 = vunpack.i.l.bf16 %v9198_v0  ;;  %v7351_v21 = vunpack.i.l.bf16 %v9199_v7  ;;  %v1301_v20 = vsel %vm1299_vm5, 0, %v4325_v11 }
 0x32e   : > { %v4331_v12 = vunpack.i.h.bf16 %v9198_v0 }
 0x32f   : > { %v7303_v43 = vpop.permute.xlu1 %1836  ;;  %1247 = vrot.lane.b32.xlu0 %v9184_v28, %s4448_s28  ;;  %v9200_v28 = vld [vmem:[#allocation203_spill] sm:$0xff]  ;;  %v2370_v13 = vsel %vm1456_vm10, %v2323_v53, %v7351_v21  ;;  %v1332_v9 = vsel %vm1330_vm6, %v1301_v20, %v4330_v24  ;;  %v4335_v24 = vunpack.i.l.bf16 %v9189_v23 }
 0x330   : > { %1263 = vrot.lane.b32.xlu1 %v9185_v52, %s4448_s28  ;;  %v7309_v19 = vpop.permute.xlu0 %1870  ;;  %v2298_v52 = vsel %vm1423_vm9, %v2243_v3, %v9200_v28  ;;  %v1363_v3 = vsel %vm1361_vm7, %v1332_v9, %v9205_v50  ;;  %v9209_v9 = vld [vmem:[#allocation76_spill] sm:$0xff] }
 0x331   : > { %v2278_v36 = vsel %vm1392_vm8, %v1363_v3, %v4336_v62  ;;  %v2143_v62 = vsel %vm1299_vm5, %v9183_v41, %v7264_v55 }
 0x332   : > { %v2179_v23 = vsel %vm1330_vm6, %v2143_v62, %v7296_v25  ;;  %v9211_v62 = vld [vmem:[#allocation185_spill] sm:$0xff] }
 0x333   : > { %v1891_v57 = vpop.permute.xlu1 %1890  ;;  %1249 = vrot.lane.b32.xlu0 %v9186_v22, %s4448_s28  ;;  %v9201_v22 = vmov 0  }
 0x334   : > { %1265 = vrot.lane.b32.xlu1 %v1234_v51, %s4448_s28  ;;  %v1953_v54 = vpop.permute.xlu0 %1952  ;;  %v4326_v51 = vunpack.i.h.bf16 %v9195_v44  ;;  %v9206_v44 = vld [vmem:[#allocation237_spill] sm:$0xff]  ;;  %v2215_v41 = vsel %vm1361_vm7, %v2179_v23, %v1891_v57  ;;  %v9212_v57 = vld [vmem:[#allocation36_spill] sm:$0xff]  ;;  %v9214_v23 = vld [vmem:[#allocation186_spill] sm:$0xff]  ;;  %s4372_s28 = scalar_lea.vmem %s8066_s13, 1024 }
 0x335   : > { %p4373_p11 = scmp.ne.s32.totalorder %s8066_s13, %s4372_s28  ;;  %p4380_p1 = scmp.lt.s32.totalorder %s4378_s6, %s4372_s28 }
 0x336   : > { %v2145_v0 = vsel %vm1299_vm5, 0, %v4326_v51 }
 0x337   : > { %v7330_v15 = vpop.permute.xlu1 %1872  ;;  %1279 = vrot.lane.b32.xlu0 %v9188_v59, %s4449_s27  ;;  %v9202_v59 = vld [vmem:[#allocation227_spill] sm:$0xff]  ;;  %p4374_p12 = pnand %p4373_p11, %p4517_p5  ;;  %p4381_p2 = por %p4380_p1, %p4379_p0 }
 0x338   : > { %1295 = vrot.lane.b32.xlu1 %v9182_v61, %s4449_s27  ;;  %v1893_v37 = vpop.permute.xlu0 %1892  ;;  %v2247_v61 = vsel %vm1392_vm8, %v7345_v6, %v1953_v54  ;;  %v7366_v2 = vunpack.i.l.bf16 %v9202_v59  ;;  %v2345_v54 = vsel %vm1456_vm10, %v2298_v52, %v9203_v29 }
 0x339   : > { %v2301_v16 = vsel %vm1423_vm9, %v2247_v61, %v9204_v60  ;;  %v2393_v11 = vsel %vm1489_vm11, %v2345_v54, %v9206_v44  ;;  %v2325_v61 = vsel %vm1423_vm9, %v2278_v36, %v9197_v48  ;;  %v9208_v54 = vld [vmem:[#allocation239_spill] sm:$0xff]  ;;  %v9210_v36 = vld [vmem:[#allocation238_spill] sm:$0xff]  ;;  %p4375_p13 = pneg %p4374_p12 }
 0x33a   : > { %v2418_v49 = vsel %vm1489_vm11, %v2370_v13, %v7366_v2  ;;  %v2348_v53 = vsel %vm1456_vm10, %v2301_v16, %v9207_v31  ;;  %v2181_v13 = vsel %vm1330_vm6, %v2145_v0, %v4331_v12  ;;  %v2441_v50 = vsel %vm8470_vm12, %v2393_v11, %v9209_v9 }
 0x33b   : > { %v1951_v32 = vpop.permute.xlu1 %1950  ;;  %1281 = vrot.lane.b32.xlu0 %v9193_v56, %s4449_s27  ;;  %v2466_v16 = vsel %vm8470_vm12, %v2418_v49, %v9208_v54  ;;  %v2217_v12 = vsel %vm1361_vm7, %v2181_v13, %v1893_v37  ;;  %v7408_v0 = vsel %vm1392_vm8, %v1363_v3, %v4335_v24  ;;  %v2123_v37 = vsel %vm1299_vm5, %v9212_v57, %v7254_v38  ;;  %v9213_v13 = vld [vmem:[#allocation77_spill] sm:$0xff]  ;;  %p4382_p3 = pnand %p4381_p2, %p4375_p13 }
 0x33c   : > { %1297 = vrot.lane.b32.xlu1 %v9201_v22, %s4449_s27  ;;  %v1983_v40 = vpop.permute.xlu0 %1982  ;;  %v2373_v22 = vsel %vm1456_vm10, %v2325_v61, %v7351_v21  ;;  %v2396_v61 = vsel %vm1489_vm11, %v2348_v53, %v9210_v36  ;;  %v7413_v11 = vsel %vm1555_vm13, %v2466_v16, 0  ;;  %v7418_v53 = vsel %vm1392_vm8, %v7161_v10, %v9211_v62 }
 0x33d   : > { %v2421_v51 = vsel %vm1489_vm11, %v2373_v22, %v7366_v2  ;;  %v2277_v22 = vsel %vm1392_vm8, %v2215_v41, %v1983_v40  ;;  %v2279_v25 = vsel %vm1392_vm8, %v2217_v12, %v1983_v40  ;;  %v2444_v3 = vsel %vm8470_vm12, %v2396_v61, %v9213_v13 }
 0x33e   : > { %v2469_v55 = vsel %vm8470_vm12, %v2421_v51, %v9208_v54  ;;  %v2483_v51 = vsel %vm1555_vm13, %v2441_v50, 0  ;;  %v7428_v40 = vsel %vm1392_vm8, %v1379_v18, %v9214_v23  ;;  %v4341_v16 = vunpack.i.h.bf16 %v9199_v7 }
 0x33f   : > { %v1955_v56 = vpop.permute.xlu1 %1954  ;;  %v7432_v41 = vsel %vm1555_vm13, %v2469_v55, 0  ;;  %v2159_v10 = vsel %vm1330_vm6, %v2123_v37, %v7293_v47  ;;  %v2324_v61 = vsel %vm1423_vm9, %v2277_v22, %v9197_v48  ;;  %v2326_v50 = vsel %vm1423_vm9, %v2279_v25, %v9197_v48 }
 0x340   : > { %v1997_v52 = vpop.permute.xlu0 %1996  ;;  %v2195_v38 = vsel %vm1361_vm7, %v2159_v10, %v7309_v19  ;;  %v2645_v18 = vshll.u32 %v7413_v11, 16  ;;  %v4346_v7 = vunpack.i.h.bf16 %v9202_v59  ;;  %v2565_v62 = vshll.u32 %v2483_v51, 16  ;;  %v9215_v19 = vld [vmem:[#allocation41_spill] sm:$0xff] }
 0x341   : > { %v2245_v55 = vsel %vm1392_vm8, %v2195_v38, %v1951_v32  ;;  %v2485_v57 = vsel %vm1555_vm13, %v2444_v3, 0  ;;  %v2655_v47 = vshll.u32 %v7432_v41, 16  ;;  %v2125_v37 = vsel %vm1299_vm5, %v9215_v19, %v7291_v42 }
 0x342   : > { %v2300_v22 = vsel %vm1423_vm9, %v2245_v55, %v1997_v52  ;;  %v2643_v25 = vshrl.u32 %v7413_v11, 16  ;;  %v2161_v10 = vsel %vm1330_vm6, %v2125_v37, %v7303_v43  ;;  %v2372_v32 = vsel %vm1456_vm10, %v2324_v61, %v4341_v16 }
 0x343   : > { %v1999_v20 = vpop.permute.xlu1 %1998  ;;  %v2374_v3 = vsel %vm1456_vm10, %v2326_v50, %v4341_v16  ;;  %v2197_v38 = vsel %vm1361_vm7, %v2161_v10, %v7330_v15  ;;  %v2575_v19 = vshll.u32 %v2485_v57, 16  ;;  %v2647_v52 = vrot.slane %v2645_v18, 1 }
 0x344   : > { %v2027_v49 = vpop.permute.xlu0 %2026  ;;  %v2249_v55 = vsel %vm1392_vm8, %v2197_v38, %v1955_v56  ;;  %v2563_v33 = vshrl.u32 %v2483_v51, 16  ;;  %v2567_v43 = vrot.slane %v2565_v62, 1  ;;  %v2420_v16 = vsel %vm1489_vm11, %v2372_v32, %v4346_v7 }
 0x345   : > { %v2347_v59 = vsel %vm1456_vm10, %v2300_v22, %v2027_v49  ;;  %v2303_v49 = vsel %vm1423_vm9, %v2249_v55, %v1999_v20  ;;  %v2422_v15 = vsel %vm1489_vm11, %v2374_v3, %v4346_v7  ;;  %v2577_v22 = vrot.slane %v2575_v19, 1  ;;  %v9216_v19 = vld [vmem:[#allocation195_spill] sm:$0xff] }
 0x346   : > { %v2657_v3 = vrot.slane %v2655_v47, 1 }
 0x347   : > { %v2029_v24 = vpop.permute.xlu1 %2028 }
 0x348   : > { %v2059_v12 = vpop.permute.xlu0 %2058  ;;  %v2350_v50 = vsel %vm1456_vm10, %v2303_v49, %v2029_v24  ;;  %v1425_v24 = vsel %vm1423_vm9, %v7408_v0, %v9197_v48  ;;  %v2573_v49 = vshrl.u32 %v2485_v57, 16 }
 0x349   : > { %v2395_v27 = vsel %vm1489_vm11, %v2347_v59, %v2059_v12 }
 0x34b   : > { %v2061_v23 = vpop.permute.xlu1 %2060 }
 0x34c   : > { %v2091_v42 = vpop.permute.xlu0 %2090 }
 0x34d   : > { %v2443_v11 = vsel %vm8470_vm12, %v2395_v27, %v2091_v42  ;;  %v2398_v27 = vsel %vm1489_vm11, %v2350_v50, %v2061_v23  ;;  %v2568_v23 = vor.u32 %v2567_v43, %v2563_v33  ;;  %v2578_v33 = vor.u32 %v2577_v22, %v2573_v49  ;;  %v9220_v22 = vld [vmem:[#allocation116_spill] sm:$0xff]  ;;  %v9226_v49 = vld [vmem:[#allocation94_spill] sm:$0xff] }
 0x34e   : > { %v2484_v61 = vsel %vm1555_vm13, %v2443_v11, 0 }
 0x34f   : > { %v2109_v37 = vpop.permute.xlu1 %2108  ;;  %v2569_v12 = vshll.u32 %v2484_v61, 16  ;;  %v2648_v61 = vor.u32 %v2647_v52, %v2643_v25 }
 0x350   : > { %v2468_v18 = vsel %vm8470_vm12, %v2420_v16, %v2109_v37  ;;  %v2470_v56 = vsel %vm8470_vm12, %v2422_v15, %v2109_v37  ;;  %v2093_v62 = vpop.permute.xlu0 %2092  ;;  %v1427_v37 = vsel %vm1423_vm9, %v7408_v0, %v9216_v19  ;;  %v1458_v16 = vsel %vm1456_vm10, %v1425_v24, %v7351_v21  ;;  %v9223_v24 = vld [vmem:[#allocation98_spill] sm:$0xff] }
 0x351   : > { %v2500_v51 = vsel %vm1555_vm13, %v2468_v18, 0  ;;  %v2502_v20 = vsel %vm1555_vm13, %v2470_v56, 0  ;;  %v2571_v10 = vrot.slane %v2569_v12, 1  ;;  %v2446_v7 = vsel %vm8470_vm12, %v2398_v27, %v2093_v62  ;;  %v9227_v19 = vld [vmem:[#allocation74_spill] sm:$0xff] }
 0x352   : > { %v2649_v59 = vshll.u32 %v2500_v51, 16  ;;  %v2659_v32 = vshll.u32 %v2502_v20, 16  ;;  %v2486_v38 = vsel %vm1555_vm13, %v2446_v7, 0  ;;  %v2653_v15 = vshrl.u32 %v7432_v41, 16  ;;  %v9217_v41 = vld [vmem:[#allocation211_spill] sm:$0xff]  ;;  %v9219_v51 = vld [vmem:[#allocation90_spill] sm:$0xff] }
 0x353   : > { %v7477_v42 = vpop.permute.xlu1 %1251  ;;  %v2579_v11 = vshll.u32 %v2486_v38, 16  ;;  %v2572_v48 = vsel %vm375_vm0, %v2568_v23, %v2571_v10  ;;  %v1441_v0 = vsel %vm1423_vm9, %v7418_v53, %v9164_v30  ;;  %v1443_v21 = vsel %vm1423_vm9, %v7428_v40, %v9200_v28  ;;  %v9218_v40 = vld [vmem:[#allocation228_spill] sm:$0xff]  ;;  %v9224_v38 = vld [vmem:[#allocation259_spill] sm:$0xff] }
 0x354   : > { %v2651_v55 = vrot.slane %v2649_v59, 1  ;;  %v7486_v47 = vpop.permute.xlu0 %1253  ;;  %v2661_v50 = vrot.slane %v2659_v32, 1  ;;  %2675 = vrot.lane.b32.xlu0 %v2572_v48, %s4450_s29  ;;  %v1460_v25 = vsel %vm1456_vm10, %v1427_v37, %v9217_v41  ;;  %v1491_v52 = vsel %vm1489_vm11, %v1458_v16, %v7366_v2  ;;  %v9221_v59 = vld [vmem:[#allocation60_spill] sm:$0xff]  ;;  %v9228_v16 = vld [vmem:[#allocation149_spill] sm:$0xff] }
 0x355   : > { %v2581_v12 = vrot.slane %v2579_v11, 1  ;;  %v1474_v18 = vsel %vm1456_vm10, %v1441_v0, %v9171_v17  ;;  %v1524_v56 = vsel %vm8470_vm12, %v1491_v52, %v9208_v54  ;;  %v2658_v53 = vor.u32 %v2657_v3, %v2653_v15  ;;  %v9222_v32 = vld [vmem:[#allocation248_spill] sm:$0xff] }
 0x356   : > { %v2652_v57 = vsel %vm375_vm0, %v2648_v61, %v2651_v55  ;;  %v1476_v28 = vsel %vm1456_vm10, %v1443_v21, %v9203_v29  ;;  %v1493_v27 = vsel %vm1489_vm11, %v1460_v25, %v9218_v40  ;;  %v1507_v2 = vsel %vm1489_vm11, %v1474_v18, %v9176_v26  ;;  %v9225_v55 = vld [vmem:[#allocation57_spill] sm:$0xff]  ;;  %v9233_v25 = vld [vmem:[#allocation12_spill] sm:$0xff]  ;;  %v9234_v18 = vld [vmem:[#allocation178_spill] sm:$0xff] }
 0x357   : > { %v1268_v43 = vpop.permute.xlu1 %1267  ;;  %2691 = vrot.lane.b32.xlu1 %v2652_v57, %s4450_s29  ;;  %v2582_v30 = vsel %vm375_vm0, %v2578_v33, %v2581_v12  ;;  %v1557_v20 = vsel %vm1555_vm13, %v1524_v56, %v9219_v51  ;;  %v1509_v17 = vsel %vm1489_vm11, %v1476_v28, %v9206_v44  ;;  %v1540_v54 = vsel %vm8470_vm12, %v1507_v2, %v9179_v1  ;;  %v9230_v12 = vld [vmem:[#allocation58_spill] sm:$0xff]  ;;  %v9232_v21 = vld [vmem:[#allocation249_spill] sm:$0xff]  ;;  %v9235_v28 = vld [vmem:[#allocation260_spill] sm:$0xff] }
 0x358   : > { %v1284_v62 = vpop.permute.xlu0 %1283  ;;  %v1590_v10 = vsel %vm1588_vm14, %v1557_v20, %v9220_v22  ;;  %2677 = vrot.lane.b32.xlu0 %v2582_v30, %s4450_s29  ;;  %v2662_v29 = vsel %vm375_vm0, %v2658_v53, %v2661_v50  ;;  %v1526_v26 = vsel %vm8470_vm12, %v1493_v27, %v9221_v59  ;;  %v1573_v7 = vsel %vm1555_vm13, %v1540_v54, %v9222_v32  ;;  %v9229_v50 = vld [vmem:[#allocation253_spill] sm:$0xff]  ;;  %v9231_v57 = vld [vmem:[#allocation102_spill] sm:$0xff]  ;;  %v9238_v22 = vld [vmem:[#allocation176_spill] sm:$0xff] }
 0x359   : > { %v1623_v3 = vsel %vm1621_vm15, %v1590_v10, %v9223_v24  ;;  %v1542_v1 = vsel %vm8470_vm12, %v1509_v17, %v9209_v9  ;;  %v1606_v23 = vsel %vm1588_vm14, %v1573_v7, %v9224_v38  ;;  %vm1753_vm0 = vcmask 490496   ;;  %v9236_v27 = vld [vmem:[#allocation170_spill] sm:$0xff]  ;;  %v9237_v17 = vld [vmem:[#allocation19_spill] sm:$0xff]  ;;  %v9239_v59 = vld [vmem:[#allocation100_spill] sm:$0xff] }
 0x35a   : > { %v1656_v11 = vsel %vm1654_vm1, %v1623_v3, %v9225_v55  ;;  %v1559_v61 = vsel %vm1555_vm13, %v1526_v26, %v9226_v49  ;;  %v1639_v37 = vsel %vm1621_vm15, %v1606_v23, %v9227_v19  ;;  %vm2780_vm12 = vcmask 850944   ;;  %v9240_v32 = vld [vmem:[#allocation120_spill] sm:$0xff]  ;;  %v9241_v24 = vld [vmem:[#allocation193_spill] sm:$0xff] }
 0x35b   : > { %v1270_v44 = vpop.permute.xlu1 %1269  ;;  %2693 = vrot.lane.b32.xlu1 %v2662_v29, %s4450_s29  ;;  %v1689_v15 = vsel %vm1687_vm2, %v1656_v11, %v9228_v16  ;;  %v1592_v9 = vsel %vm1588_vm14, %v1559_v61, %v9229_v50  ;;  %v1672_v33 = vsel %vm1654_vm1, %v1639_v37, %v9230_v12  ;;  %v1575_v41 = vsel %vm1555_vm13, %v1542_v1, %v9232_v21  ;;  %v9242_v61 = vld [vmem:[#allocation136_spill] sm:$0xff]  ;;  %v9243_v19 = vld [vmem:[#allocation9_spill] sm:$0xff]  ;;  %v9248_v21 = vld [vmem:[#allocation187_spill] sm:$0xff]  ;;  %s8063_s29 = scalar_lea.hbm %s8117_s4, %s4178_s22 }
 0x35c   : > { %v1286_v48 = vpop.permute.xlu0 %1285  ;;  %v1722_v0 = vsel %vm1720_vm4, %v1689_v15, %v9231_v57  ;;  %v1625_v52 = vsel %vm1621_vm15, %v1592_v9, %v9233_v25  ;;  %v1705_v56 = vsel %vm1687_vm2, %v1672_v33, %v9234_v18  ;;  %v1608_v40 = vsel %vm1588_vm14, %v1575_v41, %v9235_v28  ;;  %v9244_v16 = vld [vmem:[#allocation152_spill] sm:$0xff] }
 0x35d   : > { %v1755_v30 = vsel %vm1753_vm0, %v1722_v0, %v1268_v43  ;;  %v1658_v2 = vsel %vm1654_vm1, %v1625_v52, %v9236_v27  ;;  %v1738_v51 = vsel %vm1720_vm4, %v1705_v56, %v7477_v42  ;;  %v1641_v54 = vsel %vm1621_vm15, %v1608_v40, %v9237_v17  ;;  %v9247_v33 = vld [vmem:[#allocation196_spill] sm:$0xff]  ;;  %v9250_v56 = vld [vmem:[#allocation229_spill] sm:$0xff]  ;;  %v9252_v40 = vld [vmem:[#allocation42_spill] sm:$0xff] }
 0x35e   : > { %v1691_v10 = vsel %vm1687_vm2, %v1658_v2, %v9238_v22  ;;  %v1771_v43 = vsel %vm1753_vm0, %v1738_v51, %v1284_v62  ;;  %v1674_v26 = vsel %vm1654_vm1, %v1641_v54, %v9239_v59  ;;  %v1303_v37 = vsel %vm1299_vm5, %v9243_v19, %v9242_v61  ;;  %v9249_v25 = vld [vmem:[#allocation212_spill] sm:$0xff]  ;;  %v9253_v51 = vld [vmem:[#allocation67_spill] sm:$0xff]  ;;  %v9267_v61 = vld [vmem:[#allocation261_spill] sm:$0xff] }
 0x35f   : > { %v2664_v53 = vpop.permute.xlu1 %2663  ;;  %v1724_v7 = vsel %vm1720_vm4, %v1691_v10, %v9240_v32  ;;  %v1707_v3 = vsel %vm1687_vm2, %v1674_v26, %v9241_v24  ;;  %v1334_v15 = vsel %vm1330_vm6, %v1303_v37, %v9244_v16  ;;  %v1412_v41 = vsel %vm1392_vm8, %v7345_v6, %v9248_v21  ;;  %v9251_v28 = vld [vmem:[#allocation96_spill] sm:$0xff]  ;;  %v9256_v54 = vld [vmem:[#allocation243_spill] sm:$0xff]  ;;  %v9259_v26 = vld [vmem:[#allocation213_spill] sm:$0xff] }
 0x360   : > { %v2697_v20 = vsel %vm2695_vm3, %v1755_v30, %v2664_v53  ;;  %v2680_v29 = vpop.permute.xlu0 %2679  ;;  %v1757_v1 = vsel %vm1753_vm0, %v1724_v7, %v1270_v44  ;;  %v1740_v62 = vsel %vm1720_vm4, %v1707_v3, %v7486_v47  ;;  %v9245_v47 = vld [vmem:[#allocation69_spill] sm:$0xff]  ;;  %v1445_v18 = vsel %vm1423_vm9, %v1412_v41, %v9204_v60  ;;  %v9261_v7 = vld [vmem:[#allocation254_spill] sm:$0xff]  ;;  %v9268_v37 = vld [vmem:[#allocation184_spill] sm:$0xff] }
 0x361   : > { %4216 = vmatprep.mubr.msk.bf16.mxu0 %vm2780_vm12, %v2697_v20  ;;  %v2713_v42 = vsel %vm2695_vm3, %v1771_v43, %v2680_v29  ;;  %v1773_v55 = vsel %vm1753_vm0, %v1740_v62, %v1286_v48  ;;  %v1365_v50 = vsel %vm1361_vm7, %v1334_v15, %v9245_v47  ;;  %v9246_v48 = vld [vmem:[#allocation179_spill] sm:$0xff]  ;;  %v1398_v27 = vsel %vm1392_vm8, %v9252_v40, %v9251_v28  ;;  %v9255_v20 = vld [vmem:[#allocation197_spill] sm:$0xff]  ;;  %v9257_v43 = vld [vmem:[#allocation188_spill] sm:$0xff] }
 0x362   : > { %4232 = vmatprep.mubr.msk.bf16.mxu1 %vm2780_vm12, %v2713_v42  ;;  %v1396_v12 = vsel %vm1392_vm8, %v1365_v50, %v9246_v48  ;;  %v1478_v2 = vsel %vm1456_vm10, %v1445_v18, %v9207_v31  ;;  %vm9254_vm5 = vcmask 261120   ;;  %v1431_v17 = vsel %vm1423_vm9, %v1398_v27, %v9255_v20  ;;  %v9258_v29 = vld [vmem:[#allocation108_spill] sm:$0xff]  ;;  %v9262_v24 = vld [vmem:[#allocation205_spill] sm:$0xff]  ;;  %v9270_v50 = vld [vmem:[#allocation142_spill] sm:$0xff] }
 0x363   : > { %v2666_v38 = vpop.permute.xlu1 %2665  ;;  %v1429_v57 = vsel %vm1423_vm9, %v1396_v12, %v9247_v33  ;;  %v1511_v60 = vsel %vm1489_vm11, %v1478_v2, %v9210_v36  ;;  %v1414_v59 = vsel %vm1392_vm8, %v9258_v29, %v9257_v43  ;;  %v1464_v31 = vsel %vm1456_vm10, %v1431_v17, %v9259_v26  ;;  %vm9260_vm6 = vmmov %vm9254_vm5  ;;  %v9264_v62 = vld [vmem:[#allocation113_spill] sm:$0xff]  ;;  %v9271_v12 = vld [vmem:[#allocation163_spill] sm:$0xff] }
 0x364   : > { %v2699_v23 = vsel %vm2695_vm3, %v1757_v1, %v2666_v38  ;;  %v2682_v11 = vpop.permute.xlu0 %2681  ;;  %v1462_v52 = vsel %vm1456_vm10, %v1429_v57, %v9249_v25  ;;  %v1544_v32 = vsel %vm9260_vm6, %v1511_v60, %v9213_v13  ;;  %v1447_v36 = vsel %vm1423_vm9, %v1414_v59, %v9262_v24  ;;  %v9263_v1 = vld [vmem:[#allocation250_spill] sm:$0xff]  ;;  %vm9266_vm7 = vmmov %vm9254_vm5  ;;  %v9269_v15 = vld [vmem:[#allocation245_spill] sm:$0xff] }
 0x365   : > { %4217 = vmatmul.mubr.msk.bf16.vlgmr.msra.gmra.mxu0 %vm2780_vm12, %v2699_v23  ;;  %v2715_v49 = vsel %vm2695_vm3, %v1773_v55, %v2682_v11  ;;  %v1495_v30 = vsel %vm1489_vm11, %v1462_v52, %v9250_v56  ;;  %v1497_v3 = vsel %vm1489_vm11, %v1464_v31, %v9069_v58  ;;  %v1577_v38 = vsel %vm1555_vm13, %v1544_v32, %v9263_v1  ;;  %v9265_v11 = vld [vmem:[#allocation222_spill] sm:$0xff]  ;;  %v9272_v21 = vld [vmem:[#allocation255_spill] sm:$0xff]  ;;  %v9273_v25 = vld [vmem:[#allocation148_spill] sm:$0xff] }
 0x366   : > { %4233 = vmatmul.mubr.msk.bf16.vlgmr.msra.gmra.mxu1 %vm2780_vm12, %v2715_v49  ;;  %v1528_v6 = vsel %vm9254_vm5, %v1495_v30, %v9253_v51  ;;  %v1480_v49 = vsel %vm1456_vm10, %v1447_v36, %v9265_v11  ;;  %v1530_v13 = vsel %vm9266_vm7, %v1497_v3, %v9075_v34  ;;  %v1610_v19 = vsel %vm1588_vm14, %v1577_v38, %v9267_v61  ;;  %v9275_v56 = vld [vmem:[#allocation251_spill] sm:$0xff]  ;;  %v9276_v28 = vld [vmem:[#allocation13_spill] sm:$0xff]  ;;  %v9280_v43 = vld [vmem:[#allocation18_spill] sm:$0xff] }
 0x367   : > { %v1256_v44 = vpop.permute.xlu1 %1255  ;;  %v1561_v22 = vsel %vm1555_vm13, %v1528_v6, %v9256_v54  ;;  %v1513_v58 = vsel %vm1489_vm11, %v1480_v49, %v9073_v4  ;;  %v1563_v47 = vsel %vm1555_vm13, %v1530_v13, %v9269_v15  ;;  %v1643_v48 = vsel %vm1621_vm15, %v1610_v19, %v9270_v50  ;;  %v9274_v4 = vld [vmem:[#allocation101_spill] sm:$0xff]  ;;  %v9277_v27 = vld [vmem:[#allocation11_spill] sm:$0xff]  ;;  %v9278_v6 = vld [vmem:[#allocation262_spill] sm:$0xff] }
 0x368   : > { %v1242_v9 = vpop.permute.xlu0 %1241  ;;  %v1594_v42 = vsel %vm1588_vm14, %v1561_v22, %v9261_v7  ;;  %v1546_v34 = vsel %vm9254_vm5, %v1513_v58, %v9077_v14  ;;  %v1596_v41 = vsel %vm1588_vm14, %v1563_v47, %v9272_v21  ;;  %v1676_v52 = vsel %vm1654_vm1, %v1643_v48, %v9273_v25  ;;  %v9279_v17 = vld [vmem:[#allocation83_spill] sm:$0xff]  ;;  %v9281_v59 = vld [vmem:[#allocation190_spill] sm:$0xff]  ;;  %v9282_v32 = vld [vmem:[#allocation161_spill] sm:$0xff] }
 0x369   : > { %v1627_v23 = vsel %vm1621_vm15, %v1594_v42, %v9264_v62  ;;  %v1579_v30 = vsel %vm1555_vm13, %v1546_v34, %v9275_v56  ;;  %v1629_v40 = vsel %vm1621_vm15, %v1596_v41, %v9276_v28  ;;  %v1709_v2 = vsel %vm1687_vm2, %v1676_v52, %v9277_v27  ;;  %v9283_v24 = vld [vmem:[#allocation52_spill] sm:$0xff]  ;;  %v9284_v61 = vld [vmem:[#allocation181_spill] sm:$0xff]  ;;  %v9285_v19 = vld [vmem:[#allocation43_spill] sm:$0xff] }
 0x36a   : > { %v1660_v16 = vsel %vm1654_vm1, %v1627_v23, %v9268_v37  ;;  %v1612_v20 = vsel %vm1588_vm14, %v1579_v30, %v9278_v6  ;;  %v1662_v60 = vsel %vm1654_vm1, %v1629_v40, %v9279_v17  ;;  %v1742_v54 = vsel %vm1720_vm4, %v1709_v2, %v1256_v44  ;;  %v9287_v15 = vld [vmem:[#allocation189_spill] sm:$0xff]  ;;  %v9288_v47 = vld [vmem:[#allocation46_spill] sm:$0xff]  ;;  %vm9290_vm6 = vmmov %vm9254_vm5 }
 0x36b   : > { %v1258_v0 = vpop.permute.xlu1 %1257  ;;  %v1693_v33 = vsel %vm1687_vm2, %v1660_v16, %v9271_v12  ;;  %v1645_v29 = vsel %vm1621_vm15, %v1612_v20, %v9280_v43  ;;  %v1695_v26 = vsel %vm1687_vm2, %v1662_v60, %v9281_v59  ;;  %v1400_v37 = vsel %vm1392_vm8, %v9285_v19, %v9284_v61  ;;  %v9289_v12 = vld [vmem:[#allocation206_spill] sm:$0xff]  ;;  %vm9292_vm7 = vmmov %vm9254_vm5  ;;  %v9295_v28 = vld [vmem:[#allocation141_spill] sm:$0xff] }
 0x36c   : > { %v1272_v53 = vpop.permute.xlu0 %1271  ;;  %v1726_v18 = vsel %vm1720_vm4, %v1693_v33, %v9274_v4  ;;  %v1678_v7 = vsel %vm1654_vm1, %v1645_v29, %v9282_v32  ;;  %v1728_v42 = vsel %vm1720_vm4, %v1695_v26, %v1242_v9  ;;  %v1416_v50 = vsel %vm1392_vm8, %v9288_v47, %v9287_v15  ;;  %v9291_v52 = vld [vmem:[#allocation246_spill] sm:$0xff]  ;;  %v9302_v29 = vld [vmem:[#allocation199_spill] sm:$0xff]  ;;  %v9310_v61 = vld [vmem:[#allocation156_spill] sm:$0xff] }
 0x36d   : > { %v1759_v14 = vsel %vm1753_vm0, %v1726_v18, %v1272_v53  ;;  %v1711_v36 = vsel %vm1687_vm2, %v1678_v7, %v9283_v24  ;;  %v1449_v33 = vsel %vm1423_vm9, %v1416_v50, %v9289_v12  ;;  %v9293_v18 = vld [vmem:[#allocation256_spill] sm:$0xff]  ;;  %v9300_v17 = vld [vmem:[#allocation182_spill] sm:$0xff]  ;;  %v9303_v26 = vld [vmem:[#allocation99_spill] sm:$0xff] }
 0x36e   : > { %v1482_v21 = vsel %vm1456_vm10, %v1449_v33, %v9070_v35  ;;  %v1402_v60 = vsel %vm1392_vm8, %v6904_v8, %v9300_v17  ;;  %v9304_v7 = vld [vmem:[#allocation216_spill] sm:$0xff]  ;;  %v9305_v24 = vld [vmem:[#allocation233_spill] sm:$0xff]  ;;  %vm9307_vm8 = vmmov %vm9254_vm5 }
 0x36f   : > { %v1288_v10 = vpop.permute.xlu1 %1287  ;;  %v1515_v25 = vsel %vm1489_vm11, %v1482_v21, %v9076_v46  ;;  %v9297_v46 = vld [vmem:[#allocation20_spill] sm:$0xff]  ;;  %v1435_v59 = vsel %vm1423_vm9, %v1402_v60, %v9302_v29  ;;  %v7793_v29 = vld [vmem:[%s8115_s2] ss:$0 sm:$0xff] }
 0x370   : > { %v1274_v55 = vpop.permute.xlu0 %1273  ;;  %v1775_v31 = vsel %vm1753_vm0, %v1742_v54, %v1288_v10  ;;  %v1744_v10 = vsel %vm1720_vm4, %v1711_v36, %v1258_v0  ;;  %v9286_v0 = vld [vmem:[#allocation198_spill] sm:$0xff]  ;;  %v9301_v54 = vld [vmem:[#allocation117_spill] sm:$0xff] }
 0x371   : > { %v1761_v3 = vsel %vm1753_vm0, %v1728_v42, %v1274_v55  ;;  %v1433_v16 = vsel %vm1423_vm9, %v1400_v37, %v9286_v0  ;;  %v1468_v42 = vsel %vm1456_vm10, %v1435_v59, %v9304_v7  ;;  %v9311_v37 = vld [vmem:[#allocation114_spill] sm:$0xff]  ;;  %v4451_v59 = vmov 1983009808  }
 0x372   : > { %v1466_v48 = vsel %vm1456_vm10, %v1433_v16, %v9067_v63  ;;  %v1548_v63 = vsel %vm9292_vm7, %v1515_v25, %v9080_v45  ;;  %v9299_v45 = vld [vmem:[#allocation150_spill] sm:$0xff]  ;;  %v1501_v36 = vsel %vm1489_vm11, %v1468_v42, %v9305_v24  ;;  %v9312_v16 = vld [vmem:[#allocation177_spill] sm:$0xff]  ;;  %vm3456_vm9 = vcmask 1041408  }
 0x373   : > { %v1290_v57 = vpop.permute.xlu1 %1289  ;;  %vm3969_vm10 = vcmask 1041409  }
 0x374   : > { %v2668_v51 = vpop.permute.xlu0 %2667  ;;  %v1777_v62 = vsel %vm1753_vm0, %v1744_v10, %v1290_v57  ;;  %v1499_v57 = vsel %vm1489_vm11, %v1466_v48, %v9074_v5  ;;  %v9294_v5 = vld [vmem:[#allocation252_spill] sm:$0xff]  ;;  %v9313_v48 = vld [vmem:[#allocation115_spill] sm:$0xff]  ;;  %vm3971_vm11 = vcmask 1042434  }
 0x375   : > { %v2701_v22 = vsel %vm2695_vm3, %v1759_v14, %v2668_v51  ;;  %v1532_v41 = vsel %vm9290_vm6, %v1499_v57, %v9079_v39  ;;  %v1581_v30 = vsel %vm1555_vm13, %v1548_v63, %v9294_v5  ;;  %v9296_v39 = vld [vmem:[#allocation263_spill] sm:$0xff]  ;;  %v9306_v10 = vld [vmem:[#allocation72_spill] sm:$0xff] }
 0x376   : > { %4220 = vmatprep.mubr.msk.bf16.mxu0 %vm2780_vm12, %v2701_v22  ;;  %v1565_v4 = vsel %vm1555_vm13, %v1532_v41, %v9291_v52  ;;  %v1614_v27 = vsel %vm1588_vm14, %v1581_v30, %v9296_v39  ;;  %v9298_v14 = vld [vmem:[#allocation91_spill] sm:$0xff] }
 0x377   : > { %v2684_v53 = vpop.permute.xlu1 %2683  ;;  %v1598_v56 = vsel %vm1588_vm14, %v1565_v4, %v9293_v18  ;;  %v1647_v51 = vsel %vm1621_vm15, %v1614_v27, %v9298_v14  ;;  %v9315_v30 = vld [vmem:[#allocation75_spill] sm:$0xff] }
 0x378   : > { %v2717_v44 = vsel %vm2695_vm3, %v1775_v31, %v2684_v53  ;;  %v2670_v1 = vpop.permute.xlu0 %2669  ;;  %v1631_v35 = vsel %vm1621_vm15, %v1598_v56, %v9295_v28  ;;  %v1680_v22 = vsel %vm1654_vm1, %v1647_v51, %v9301_v54  ;;  %v9316_v14 = vld [vmem:[#allocation191_spill] sm:$0xff] }
 0x379   : > { %4236 = vmatprep.mubr.msk.bf16.mxu1 %vm2780_vm12, %v2717_v44  ;;  %v2703_v38 = vsel %vm2695_vm3, %v1761_v3, %v2670_v1  ;;  %v1664_v2 = vsel %vm1654_vm1, %v1631_v35, %v9297_v46  ;;  %v1713_v31 = vsel %vm1687_vm2, %v1680_v22, %v9303_v26  ;;  %v3122_v26 = vunpack.c.l.s4 %v4451_v59 }
 0x37a   : > { %4221 = vmatmul.mubr.msk.bf16.gmra.mxu0 %vm2780_vm12, %v2703_v38  ;;  %v1697_v6 = vsel %vm1687_vm2, %v1664_v2, %v9299_v45  ;;  %v1534_v38 = vsel %vm9307_vm8, %v1501_v36, %v9306_v10  ;;  %v9317_v45 = vld [vmem:[#allocation92_spill] sm:$0xff] }
 0x37b   : > { %v2686_v23 = vpop.permute.xlu1 %2685 }
 0x37c   : > { %v2719_v9 = vsel %vm2695_vm3, %v1777_v62, %v2686_v23  ;;  %v1244_v11 = vpop.permute.xlu0 %1243  ;;  %v9308_v23 = vld [vmem:[#allocation247_spill] sm:$0xff] }
 0x37d   : > { %4237 = vmatmul.mubr.msk.bf16.gmra.mxu1 %vm2780_vm12, %v2719_v9  ;;  %v1730_v43 = vsel %vm1720_vm4, %v1697_v6, %v1244_v11  ;;  %v1567_v9 = vsel %vm1555_vm13, %v1534_v38, %v9308_v23  ;;  %v9309_v11 = vld [vmem:[#allocation258_spill] sm:$0xff]  ;;  %vm3975_vm13 = vcmask 1044484  }
 0x37f   : > { %v1260_v49 = vpop.permute.xlu1 %1259 }
 0x380   : > { %v1246_v13 = vpop.permute.xlu0 %1245  ;;  %v1746_v44 = vsel %vm1720_vm4, %v1713_v31, %v1260_v49  ;;  %v1600_v49 = vsel %vm1588_vm14, %v1567_v9, %v9309_v11  ;;  %v3124_v31 = vlaneseq  ;;  %vm3977_vm14 = vcmask 1045509  }
 0x381   : > { %v1633_v19 = vsel %vm1621_vm15, %v1600_v49, %v9310_v61  ;;  %vm3979_vm15 = vcmask 1046534  }
 0x382   : > { %v1666_v0 = vsel %vm1654_vm1, %v1633_v19, %v9311_v37  ;;  %v3125_v24 = vshrl.u32 %v3124_v31, 7  ;;  %vm3981_vm1 = vcmask 1047559  }
 0x383   : > { %v1262_v55 = vpop.permute.xlu1 %1261 }
 0x384   : > { %v1276_v58 = vpop.permute.xlu0 %1275  ;;  %v1748_v12 = vsel %vm1720_vm4, %v9313_v48, %v1262_v55  ;;  %v9314_v55 = vld [vmem:[#allocation165_spill] sm:$0xff] }
 0x385   : > { %v1763_v53 = vsel %vm1753_vm0, %v1730_v43, %v1276_v58  ;;  %v1699_v58 = vsel %vm1687_vm2, %v1666_v0, %v9312_v16 }
 0x386   : > { %v1732_v15 = vsel %vm1720_vm4, %v1699_v58, %v1246_v13 }
 0x387   : > { %v1292_v34 = vpop.permute.xlu1 %1291 }
 0x388   : > { %v1278_v40 = vpop.permute.xlu0 %1277  ;;  %v1779_v3 = vsel %vm1753_vm0, %v1746_v44, %v1292_v34 }
 0x389   : > { %v1765_v47 = vsel %vm1753_vm0, %v1732_v15, %v1278_v40 }
 0x38b   : > { %v1294_v20 = vpop.permute.xlu1 %1293 }
 0x38c   : > { %v1781_v57 = vsel %vm1753_vm0, %v1748_v12, %v1294_v20 }
 0x392   : > { %v2672_v32 = vpop.permute.xlu0 %2671 }
 0x393   : > { %v2705_v8 = vsel %vm2695_vm3, %v1763_v53, %v2672_v32  ;;  %v7798_v32 = vld [vmem:[%s8116_s3] ss:$0 sm:$0xff] }
 0x394   : > { %4224 = vmatprep.mubr.msk.bf16.mxu0 %vm2780_vm12, %v2705_v8  ;;  %v3123_v8 = vunpack.c.0.s8 %v3122_v26 }
 0x395   : > { %v2688_v1 = vpop.permute.xlu1 %2687 }
 0x396   : > { %v2721_v62 = vsel %vm2695_vm3, %v1779_v3, %v2688_v1  ;;  %v7807_v11 = vsub.s32 %v3123_v8, %v3125_v24 }
 0x397   : > { %4240 = vmatprep.mubr.msk.bf16.mxu1 %vm2780_vm12, %v2721_v62 }
 0x39d   : > { %v2674_v50 = vpop.permute.xlu0 %2673 }
 0x39e   : > { %v2707_v33 = vsel %vm2695_vm3, %v1765_v47, %v2674_v50  ;;  %v2690_v34 = vpop.permute.xlu1 %2689 }
 0x39f   : > { %4225 = vmatmul.mubr.msk.bf16.gmra.mxu0 %vm2780_vm12, %v2707_v33  ;;  %v2723_v21 = vsel %vm2695_vm3, %v1781_v57, %v2690_v34 }
 0x3a0   : > { %4241 = vmatmul.mubr.msk.bf16.gmra.mxu1 %vm2780_vm12, %v2723_v21 }
 0x3a1   : > { %v1248_v41 = vpop.permute.xlu0 %1247 }
 0x3a2   : > { %v1264_v25 = vpop.permute.xlu1 %1263  ;;  %v1734_v5 = vsel %vm1720_vm4, %v9314_v55, %v1248_v41 }
 0x3a3   : > { %v1750_v28 = vsel %vm1720_vm4, %v9315_v30, %v1264_v25 }
 0x3a5   : > { %v1250_v13 = vpop.permute.xlu0 %1249 }
 0x3a6   : > { %v1266_v52 = vpop.permute.xlu1 %1265  ;;  %v1736_v51 = vsel %vm1720_vm4, %v9316_v14, %v1250_v13 }
 0x3a7   : > { %v1752_v6 = vsel %vm1720_vm4, %v9317_v45, %v1266_v52 }
 0x3a9   : > { %v1280_v4 = vpop.permute.xlu0 %1279 }
 0x3aa   : > { %v1296_v63 = vpop.permute.xlu1 %1295  ;;  %v1767_v35 = vsel %vm1753_vm0, %v1734_v5, %v1280_v4 }
 0x3ab   : > { %v1783_v39 = vsel %vm1753_vm0, %v1750_v28, %v1296_v63 }
 0x3ad   : > { %v1282_v18 = vpop.permute.xlu0 %1281 }
 0x3ae   : > { %v1298_v56 = vpop.permute.xlu1 %1297  ;;  %v1769_v20 = vsel %vm1753_vm0, %v1736_v51, %v1282_v18 }
 0x3af   : > { %v1785_v60 = vsel %vm1753_vm0, %v1752_v6, %v1298_v56 }
 0x3c6   : > { %v2676_v40 = vpop.permute.xlu0 %2675 }
 0x3c7   : > { %v2709_v27 = vsel %vm2695_vm3, %v1767_v35, %v2676_v40 }
 0x3c8   : > { %4228 = vmatprep.mubr.msk.bf16.mxu0 %vm2780_vm12, %v2709_v27 }
 0x3c9   : > { %v2692_v46 = vpop.permute.xlu1 %2691 }
 0x3ca   : > { %v2725_v2 = vsel %vm2695_vm3, %v1783_v39, %v2692_v46  ;;  %v2678_v17 = vpop.permute.xlu0 %2677 }
 0x3cb   : > { %4244 = vmatprep.mubr.msk.bf16.mxu1 %vm2780_vm12, %v2725_v2  ;;  %v2711_v54 = vsel %vm2695_vm3, %v1769_v20, %v2678_v17 }
 0x3cc   : > { %4229 = vmatmul.mubr.msk.bf16.gmra.mxu0 %vm2780_vm12, %v2711_v54 }
 0x3cd   : > { %v2694_v22 = vpop.permute.xlu1 %2693 }
 0x3ce   : > { %v2727_v43 = vsel %vm2695_vm3, %v1785_v60, %v2694_v22 }
 0x3cf   : > { %4245 = vmatmul.mubr.msk.bf16.gmra.mxu1 %vm2780_vm12, %v2727_v43  ;;  %vm3973_vm12 = vcmask 1043459  }
 0x425   : > { %v4218_v53 = vpop.f32.mrf.mxu0 }
 0x426   : > { %v2987_v7 = vmul.f32 %v4218_v53, %v7793_v29  ;;  %v4234_v42 = vpop.f32.mrf.mxu1 }
 0x427   : > { %v2851_v44 = vpop.f32.mrf.mxu0  ;;  %v3003_v3 = vmul.f32 %v4234_v42, %v7793_v29 }
 0x428   : > { %v3026_v36 = vadd.f32 %v7798_v32, %v2987_v7  ;;  %v2985_v1 = vmul.f32 %v7793_v29, %v2851_v44  ;;  %v2915_v10 = vpop.f32.mrf.mxu1 }
 0x429   : > { %v4219_v38 = vpop.f32.mrf.mxu0  ;;  %v3042_v62 = vadd.f32 %v7798_v32, %v3003_v3  ;;  %v3001_v9 = vmul.f32 %v7793_v29, %v2915_v10 }
 0x42a   : > { %v3024_v23 = vadd.f32 %v7798_v32, %v2985_v1  ;;  %v2988_v49 = vmul.f32 %v4219_v38, %v7793_v29  ;;  %v4235_v61 = vpop.f32.mrf.mxu1  ;;  %v3058_v37 = vmax.f32 %v3026_v36, 0.0 }
 0x42b   : > { %v2854_v19 = vpop.f32.mrf.mxu0  ;;  %v3040_v16 = vadd.f32 %v7798_v32, %v3001_v9  ;;  %v3004_v58 = vmul.f32 %v4235_v61, %v7793_v29  ;;  %v3074_v15 = vmax.f32 %v3042_v62, 0.0 }
 0x42c   : > { %v3056_v0 = vmax.f32 %v3024_v23, 0.0  ;;  %v3027_v47 = vadd.f32 %v7798_v32, %v2988_v49  ;;  %v2986_v50 = vmul.f32 %v7793_v29, %v2854_v19  ;;  %v2918_v48 = vpop.f32.mrf.mxu1 }
 0x42d   : > { %v3072_v33 = vmax.f32 %v3040_v16, 0.0  ;;  %v7815_v57 = vadd.f32 %v7798_v32, %v3004_v58  ;;  %v3002_v34 = vmul.f32 %v7793_v29, %v2918_v48 }
 0x42e   : > { %v3088_v12 = vmax.f32 %v3056_v0, %v3058_v37  ;;  %v3025_v21 = vadd.f32 %v7798_v32, %v2986_v50  ;;  %v3059_v52 = vmax.f32 %v3027_v47, 0.0 }
 0x42f   : > { %v3096_v13 = vmax.f32 %v3072_v33, %v3074_v15  ;;  %v3075_v4 = vmax.f32 %v7815_v57, 0.0  ;;  %v7822_v18 = vadd.f32 %v7798_v32, %v3002_v34 }
 0x430   : > { %v3120_v41 = vcombine.high %v3088_v12, %v3088_v12  ;;  %v3127_v25 = vrot.slane %v3088_v12, %v7807_v11  ;;  %v3057_v63 = vmax.f32 %v3025_v21, 0.0 }
 0x431   : > { %v3256_v30 = vcombine.high %v3096_v13, %v3096_v13  ;;  %v3263_v35 = vrot.slane %v3096_v13, %v7807_v11  ;;  %v3073_v39 = vmax.f32 %v7822_v18, 0.0 }
 0x432   : > { %v3134_v56 = vrot.slane %v3120_v41, %v7807_v11  ;;  %v3135_v55 = vcombine.high %v3127_v25, %v3127_v25  ;;  %v3457_v5 = vsel %vm3456_vm9, %v3127_v25, -inf  ;;  %v3089_v40 = vmax.f32 %v3057_v63, %v3059_v52 }
 0x433   : > { %v3458_v28 = vrot.slane %v3457_v5, 4  ;;  %v3270_v14 = vrot.slane %v3256_v30, %v7807_v11  ;;  %v3271_v20 = vcombine.high %v3263_v35, %v3263_v35  ;;  %v3681_v54 = vsel %vm3456_vm9, %v3263_v35, -inf }
 0x434   : > { %v3136_v27 = vcombine.high %v3134_v56, %v3134_v56  ;;  %v3464_v46 = vsel %vm3456_vm9, %v3135_v55, -inf  ;;  %v3471_v2 = vsel %vm3456_vm9, %v3134_v56, -inf  ;;  %v3682_v53 = vrot.slane %v3681_v54, 4 }
 0x435   : > { %v3459_v51 = vmax.f32 %v3457_v5, %v3458_v28  ;;  %v3465_v45 = vrot.slane %v3464_v46, 4  ;;  %v3472_v6 = vrot.slane %v3471_v2, 4  ;;  %v3272_v60 = vcombine.high %v3270_v14, %v3270_v14 }
 0x436   : > { %v3478_v17 = vsel %vm3456_vm9, %v3136_v27, -inf  ;;  %v3695_v22 = vsel %vm3456_vm9, %v3270_v14, -inf  ;;  %v3688_v7 = vsel %vm3456_vm9, %v3271_v20, -inf  ;;  %v3683_v1 = vmax.f32 %v3681_v54, %v3682_v53 }
 0x437   : > { %v3460_v43 = vrot.slane %v3459_v51, 2  ;;  %v3466_v59 = vmax.f32 %v3464_v46, %v3465_v45  ;;  %v3473_v26 = vmax.f32 %v3471_v2, %v3472_v6  ;;  %v3479_v31 = vrot.slane %v3478_v17, 4 }
 0x438   : > { %v3696_v42 = vrot.slane %v3695_v22, 4  ;;  %v3702_v44 = vsel %vm3456_vm9, %v3272_v60, -inf  ;;  %v3689_v10 = vrot.slane %v3688_v7, 4  ;;  %v3684_v19 = vrot.slane %v3683_v1, 2 }
 0x439   : > { %v3461_v8 = vmax.f32 %v3459_v51, %v3460_v43  ;;  %v3467_v24 = vrot.slane %v3466_v59, 2  ;;  %v3474_v36 = vrot.slane %v3473_v26, 2  ;;  %v3480_v3 = vmax.f32 %v3478_v17, %v3479_v31 }
 0x43a   : > { %v3697_v38 = vmax.f32 %v3695_v22, %v3696_v42  ;;  %v3703_v62 = vrot.slane %v3702_v44, 4  ;;  %v3690_v37 = vmax.f32 %v3688_v7, %v3689_v10  ;;  %v3685_v48 = vmax.f32 %v3683_v1, %v3684_v19  ;;  %v4222_v17 = vpop.f32.mrf.mxu0 }
 0x43b   : > { %v3462_v23 = vrot.slane %v3461_v8, 1  ;;  %v3468_v9 = vmax.f32 %v3466_v59, %v3467_v24  ;;  %v3475_v49 = vmax.f32 %v3473_v26, %v3474_v36  ;;  %v3481_v61 = vrot.slane %v3480_v3, 2 }
 0x43c   : > { %v3698_v0 = vrot.slane %v3697_v38, 2  ;;  %v3704_v16 = vmax.f32 %v3702_v44, %v3703_v62  ;;  %v3691_v12 = vrot.slane %v3690_v37, 2  ;;  %v3137_v13 = vcombine.high %v3089_v40, %v3089_v40  ;;  %v2867_v1 = vpop.f32.mrf.mxu0 }
 0x43d   : > { %v3463_v58 = vmax.f32 %v3461_v8, %v3462_v23  ;;  %v3469_v15 = vrot.slane %v3468_v9, 1  ;;  %v3476_v47 = vrot.slane %v3475_v49, 1  ;;  %v3482_v50 = vmax.f32 %v3480_v3, %v3481_v61 }
 0x43e   : > { %v3699_v33 = vmax.f32 %v3697_v38, %v3698_v0  ;;  %v3705_v34 = vrot.slane %v3704_v16, 2  ;;  %v3686_v52 = vrot.slane %v3685_v48, 1  ;;  %v3692_v63 = vmax.f32 %v3690_v37, %v3691_v12 }
 0x43f   : > { %v3470_v21 = vmax.f32 %v3468_v9, %v3469_v15  ;;  %v3477_v41 = vmax.f32 %v3475_v49, %v3476_v47  ;;  %v3483_v25 = vrot.slane %v3482_v50, 1  ;;  %v3144_v28 = vrot.slane %v3089_v40, %v7807_v11 }
 0x440   : > { %v3700_v56 = vrot.slane %v3699_v33, 1  ;;  %v3706_v55 = vmax.f32 %v3704_v16, %v3705_v34  ;;  %v3151_v35 = vrot.slane %v3137_v13, %v7807_v11  ;;  %v3687_v46 = vmax.f32 %v3685_v48, %v3686_v52 }
 0x441   : > { %v3484_v5 = vmax.f32 %v3482_v50, %v3483_v25  ;;  %v3970_v30 = vsel %vm3969_vm10, %v3470_v21, %v3463_v58  ;;  %v3693_v2 = vrot.slane %v3692_v63, 1  ;;  %v3152_v45 = vcombine.high %v3144_v28, %v3144_v28 }
 0x442   : > { %v3972_v27 = vsel %vm3971_vm11, %v3477_v41, %v3970_v30  ;;  %v3701_v14 = vmax.f32 %v3699_v33, %v3700_v56  ;;  %v3707_v51 = vrot.slane %v3706_v55, 1  ;;  %v3153_v6 = vcombine.high %v3151_v35, %v3151_v35  ;;  %v4223_v30 = vpop.f32.mrf.mxu0 }
 0x443   : > { %v3485_v20 = vsel %vm3456_vm9, %v3144_v28, -inf  ;;  %v3694_v60 = vmax.f32 %v3692_v63, %v3693_v2  ;;  %v3499_v22 = vsel %vm3456_vm9, %v3151_v35, -inf  ;;  %v3974_v43 = vsel %vm3973_vm12, %v3484_v5, %v3972_v27 }
 0x444   : > { %v3486_v54 = vrot.slane %v3485_v20, 4  ;;  %v3708_v40 = vmax.f32 %v3706_v55, %v3707_v51  ;;  %v3492_v59 = vsel %vm3456_vm9, %v3152_v45, -inf  ;;  %v3500_v26 = vrot.slane %v3499_v22, 4 }
 0x445   : > { %v3506_v31 = vsel %vm3456_vm9, %v3153_v6, -inf  ;;  %v4004_v53 = vsel %vm3969_vm10, %v3694_v60, %v3687_v46  ;;  %v3493_v42 = vrot.slane %v3492_v59, 4  ;;  %v3097_v36 = vmax.f32 %v3073_v39, %v3075_v4 }
 0x446   : > { %v3487_v7 = vmax.f32 %v3485_v20, %v3486_v54  ;;  %v3507_v44 = vrot.slane %v3506_v31, 4  ;;  %v4005_v8 = vsel %vm3971_vm11, %v3701_v14, %v4004_v53  ;;  %v3501_v24 = vmax.f32 %v3499_v22, %v3500_v26  ;;  %v4238_v54 = vpop.f32.mrf.mxu1 }
 0x447   : > { %v2991_v3 = vmul.f32 %v4222_v17, %v7793_v29  ;;  %v3494_v38 = vmax.f32 %v3492_v59, %v3493_v42  ;;  %v7853_v23 = vsel %vm3973_vm12, %v3708_v40, %v4005_v8  ;;  %v3273_v49 = vcombine.high %v3097_v36, %v3097_v36 }
 0x448   : > { %v3488_v10 = vrot.slane %v3487_v7, 2  ;;  %v3508_v62 = vmax.f32 %v3506_v31, %v3507_v44  ;;  %v3502_v9 = vrot.slane %v3501_v24, 2  ;;  %v3280_v61 = vrot.slane %v3097_v36, %v7807_v11  ;;  %v2870_v31 = vpop.f32.mrf.mxu0 }
 0x449   : > { %v3030_v57 = vadd.f32 %v7798_v32, %v2991_v3  ;;  %v3495_v4 = vrot.slane %v3494_v38, 2  ;;  %v2989_v19 = vmul.f32 %v7793_v29, %v2867_v1  ;;  %v3287_v0 = vrot.slane %v3273_v49, %v7807_v11 }
 0x44a   : > { %v3489_v18 = vmax.f32 %v3487_v7, %v3488_v10  ;;  %v3509_v39 = vrot.slane %v3508_v62, 2  ;;  %v3503_v37 = vmax.f32 %v3501_v24, %v3502_v9  ;;  %v3288_v16 = vcombine.high %v3280_v61, %v3280_v61 }
 0x44b   : > { %v3709_v58 = vsel %vm3456_vm9, %v3280_v61, -inf  ;;  %v3496_v47 = vmax.f32 %v3494_v38, %v3495_v4  ;;  %v3289_v33 = vcombine.high %v3287_v0, %v3287_v0  ;;  %v3723_v21 = vsel %vm3456_vm9, %v3287_v0, -inf }
 0x44c   : > { %v3490_v15 = vrot.slane %v3489_v18, 1  ;;  %v3510_v50 = vmax.f32 %v3508_v62, %v3509_v39  ;;  %v3710_v48 = vrot.slane %v3709_v58, 4  ;;  %v3504_v12 = vrot.slane %v3503_v37, 1 }
 0x44d   : > { %v3716_v34 = vsel %vm3456_vm9, %v3288_v16, -inf  ;;  %v3497_v25 = vrot.slane %v3496_v47, 1  ;;  %v3724_v55 = vrot.slane %v3723_v21, 4  ;;  %v3730_v5 = vsel %vm3456_vm9, %v3289_v33, -inf }
 0x44e   : > { %v3491_v41 = vmax.f32 %v3489_v18, %v3490_v15  ;;  %v3511_v13 = vrot.slane %v3510_v50, 1  ;;  %v3711_v52 = vmax.f32 %v3709_v58, %v3710_v48  ;;  %v3505_v63 = vmax.f32 %v3503_v37, %v3504_v12 }
 0x44f   : > { %v3717_v56 = vrot.slane %v3716_v34, 4  ;;  %v3498_v28 = vmax.f32 %v3496_v47, %v3497_v25  ;;  %v3725_v14 = vmax.f32 %v3723_v21, %v3724_v55  ;;  %v3731_v51 = vrot.slane %v3730_v5, 4 }
 0x450   : > { %v3512_v35 = vmax.f32 %v3510_v50, %v3511_v13  ;;  %v3976_v27 = vsel %vm3975_vm13, %v3491_v41, %v3974_v43  ;;  %v3712_v46 = vrot.slane %v3711_v52, 2  ;;  %v3062_v45 = vmax.f32 %v3030_v57, 0.0  ;;  %v2931_v57 = vpop.f32.mrf.mxu1 }
 0x451   : > { %v3718_v2 = vmax.f32 %v3716_v34, %v3717_v56  ;;  %v3978_v6 = vsel %vm3977_vm14, %v3498_v28, %v3976_v27  ;;  %v3028_v17 = vadd.f32 %v7798_v32, %v2989_v19  ;;  %v2992_v60 = vmul.f32 %v4223_v30, %v7793_v29 }
 0x452   : > { %v3713_v20 = vmax.f32 %v3711_v52, %v3712_v46  ;;  %v3980_v22 = vsel %vm3979_vm15, %v3505_v63, %v3978_v6  ;;  %v3726_v59 = vrot.slane %v3725_v14, 2  ;;  %v3732_v26 = vmax.f32 %v3730_v5, %v3731_v51  ;;  %v4239_v21 = vpop.f32.mrf.mxu1 }
 0x453   : > { %v3719_v40 = vrot.slane %v3718_v2, 2  ;;  %v3982_v43 = vsel %vm3981_vm1, %v3512_v35, %v3980_v22  ;;  %v3060_v7 = vmax.f32 %v3028_v17, 0.0  ;;  %v3031_v42 = vadd.f32 %v7798_v32, %v2992_v60 }
 0x454   : > { %v3714_v53 = vrot.slane %v3713_v20, 1  ;;  %4040 = vst [vmem:[%s7873_s10] sm:$0xff] %v3982_v43  ;;  %v3727_v8 = vmax.f32 %v3725_v14, %v3726_v59  ;;  %v3733_v24 = vrot.slane %v3732_v26, 2  ;;  %v3007_v36 = vmul.f32 %v4238_v54, %v7793_v29 }
 0x455   : > { %v3720_v44 = vmax.f32 %v3718_v2, %v3719_v40  ;;  %v3090_v1 = vmax.f32 %v3060_v7, %v3062_v45  ;;  %v3063_v10 = vmax.f32 %v3031_v42, 0.0  ;;  %v2990_v38 = vmul.f32 %v7793_v29, %v2870_v31 }
 0x456   : > { %v3715_v3 = vmax.f32 %v3713_v20, %v3714_v53  ;;  %v3728_v9 = vrot.slane %v3727_v8, 1  ;;  %v3734_v49 = vmax.f32 %v3732_v26, %v3733_v24  ;;  %v3046_v61 = vadd.f32 %v7798_v32, %v3007_v36 }
 0x457   : > { %v3721_v62 = vrot.slane %v3720_v44, 1  ;;  %v3154_v4 = vcombine.high %v3090_v1, %v3090_v1  ;;  %v3161_v39 = vrot.slane %v3090_v1, %v7807_v11  ;;  %v3029_v19 = vadd.f32 %v7798_v32, %v2990_v38 }
 0x458   : > { %v4007_v18 = vsel %vm3975_vm13, %v3715_v3, %v7853_v23  ;;  %v3729_v0 = vmax.f32 %v3727_v8, %v3728_v9  ;;  %v3735_v16 = vrot.slane %v3734_v49, 1  ;;  %v3078_v58 = vmax.f32 %v3046_v61, 0.0 }
 0x459   : > { %v3722_v37 = vmax.f32 %v3720_v44, %v3721_v62  ;;  %v3168_v15 = vrot.slane %v3154_v4, %v7807_v11  ;;  %v3169_v47 = vcombine.high %v3161_v39, %v3161_v39  ;;  %v3513_v50 = vsel %vm3456_vm9, %v3161_v39, -inf }
 0x45a   : > { %v3061_v48 = vmax.f32 %v3029_v19, 0.0  ;;  %v3736_v12 = vmax.f32 %v3734_v49, %v3735_v16  ;;  %v3514_v23 = vrot.slane %v3513_v50, 4  ;;  %v3005_v34 = vmul.f32 %v7793_v29, %v2931_v57 }
 0x45b   : > { %v4008_v33 = vsel %vm3977_vm14, %v3722_v37, %v4007_v18  ;;  %v3170_v25 = vcombine.high %v3168_v15, %v3168_v15  ;;  %v3520_v13 = vsel %vm3456_vm9, %v3169_v47, -inf  ;;  %v3527_v52 = vsel %vm3456_vm9, %v3168_v15, -inf }
 0x45c   : > { %v4009_v41 = vsel %vm3979_vm15, %v3729_v0, %v4008_v33  ;;  %v3515_v56 = vmax.f32 %v3513_v50, %v3514_v23  ;;  %v3521_v55 = vrot.slane %v3520_v13, 4  ;;  %v3528_v5 = vrot.slane %v3527_v52, 4 }
 0x45d   : > { %v4010_v63 = vsel %vm3981_vm1, %v3736_v12, %v4009_v41  ;;  %v3534_v30 = vsel %vm3456_vm9, %v3170_v25, -inf  ;;  %v3091_v28 = vmax.f32 %v3061_v48, %v3063_v10  ;;  %v3044_v35 = vadd.f32 %v7798_v32, %v3005_v34 }
 0x45e   : > { %4044 = vst [vmem:[%s7873_s10 + $0x20] sm:$0xff] %v4010_v63  ;;  %v3008_v27 = vmul.f32 %v4239_v21, %v7793_v29  ;;  %v3516_v46 = vrot.slane %v3515_v56, 2  ;;  %v3522_v2 = vmax.f32 %v3520_v13, %v3521_v55  ;;  %v3529_v14 = vmax.f32 %v3527_v52, %v3528_v5 }
 0x45f   : > { %v3535_v51 = vrot.slane %v3534_v30, 4  ;;  %v3171_v45 = vcombine.high %v3091_v28, %v3091_v28  ;;  %v3178_v6 = vrot.slane %v3091_v28, %v7807_v11  ;;  %v3076_v20 = vmax.f32 %v3044_v35, 0.0 }
 0x460   : > { %v7897_v17 = vadd.f32 %v7798_v32, %v3008_v27  ;;  %v3517_v60 = vmax.f32 %v3515_v56, %v3516_v46  ;;  %v3523_v54 = vrot.slane %v3522_v2, 2  ;;  %v3530_v22 = vrot.slane %v3529_v14, 2 }
 0x461   : > { %v3536_v40 = vmax.f32 %v3534_v30, %v3535_v51  ;;  %v3185_v59 = vrot.slane %v3171_v45, %v7807_v11  ;;  %v3186_v26 = vcombine.high %v3178_v6, %v3178_v6  ;;  %v3541_v31 = vsel %vm3456_vm9, %v3178_v6, -inf }
 0x462   : > { %v3098_v43 = vmax.f32 %v3076_v20, %v3078_v58  ;;  %v3518_v53 = vrot.slane %v3517_v60, 1  ;;  %v3524_v7 = vmax.f32 %v3522_v2, %v3523_v54  ;;  %v3531_v42 = vmax.f32 %v3529_v14, %v3530_v22  ;;  %v4226_v54 = vpop.f32.mrf.mxu0 }
 0x463   : > { %v3537_v44 = vrot.slane %v3536_v40, 2  ;;  %v3187_v8 = vcombine.high %v3185_v59, %v3185_v59  ;;  %v3542_v24 = vrot.slane %v3541_v31, 4  ;;  %v3548_v36 = vsel %vm3456_vm9, %v3186_v26, -inf }
 0x464   : > { %v3555_v3 = vsel %vm3456_vm9, %v3185_v59, -inf  ;;  %v3519_v1 = vmax.f32 %v3517_v60, %v3518_v53  ;;  %v3525_v10 = vrot.slane %v3524_v7, 1  ;;  %v3532_v38 = vrot.slane %v3531_v42, 1  ;;  %v2934_v60 = vpop.f32.mrf.mxu1 }
 0x465   : > { %v3538_v62 = vmax.f32 %v3536_v40, %v3537_v44  ;;  %v3543_v9 = vmax.f32 %v3541_v31, %v3542_v24  ;;  %v3549_v49 = vrot.slane %v3548_v36, 4  ;;  %v3556_v61 = vrot.slane %v3555_v3, 4 }
 0x466   : > { %v3562_v57 = vsel %vm3456_vm9, %v3187_v8, -inf  ;;  %v3526_v18 = vmax.f32 %v3524_v7, %v3525_v10  ;;  %v3533_v4 = vmax.f32 %v3531_v42, %v3532_v38  ;;  %v3290_v58 = vcombine.high %v3098_v43, %v3098_v43 }
 0x467   : > { %v3539_v39 = vrot.slane %v3538_v62, 1  ;;  %v3563_v19 = vrot.slane %v3562_v57, 4  ;;  %v3544_v37 = vrot.slane %v3543_v9, 2  ;;  %v3550_v0 = vmax.f32 %v3548_v36, %v3549_v49  ;;  %v4242_v36 = vpop.f32.mrf.mxu1 }
 0x468   : > { %v3557_v16 = vmax.f32 %v3555_v3, %v3556_v61  ;;  %v3983_v47 = vsel %vm3969_vm10, %v3526_v18, %v3519_v1  ;;  %v3297_v48 = vrot.slane %v3098_v43, %v7807_v11  ;;  %v3304_v25 = vrot.slane %v3290_v58, %v7807_v11 }
 0x469   : > { %v3540_v15 = vmax.f32 %v3538_v62, %v3539_v39  ;;  %v3564_v50 = vmax.f32 %v3562_v57, %v3563_v19  ;;  %v3984_v12 = vsel %vm3971_vm11, %v3533_v4, %v3983_v47  ;;  %v3545_v33 = vmax.f32 %v3543_v9, %v3544_v37  ;;  %v2883_v62 = vpop.f32.mrf.mxu0  ;;  %v2947_v58 = vpop.f32.mrf.mxu1 }
 0x46a   : > { %v3551_v23 = vrot.slane %v3550_v0, 2  ;;  %v3558_v34 = vrot.slane %v3557_v16, 2  ;;  %v3305_v13 = vcombine.high %v3297_v48, %v3297_v48  ;;  %v3737_v55 = vsel %vm3456_vm9, %v3297_v48, -inf }
 0x46b   : > { %v3565_v21 = vrot.slane %v3564_v50, 2  ;;  %v3985_v41 = vsel %vm3973_vm12, %v3540_v15, %v3984_v12  ;;  %v3546_v52 = vrot.slane %v3545_v33, 1  ;;  %v3306_v30 = vcombine.high %v3304_v25, %v3304_v25 }
 0x46c   : > { %v3552_v63 = vmax.f32 %v3550_v0, %v3551_v23  ;;  %v3559_v56 = vmax.f32 %v3557_v16, %v3558_v34  ;;  %v3738_v28 = vrot.slane %v3737_v55, 4  ;;  %v3744_v35 = vsel %vm3456_vm9, %v3305_v13, -inf }
 0x46d   : > { %v3566_v5 = vmax.f32 %v3564_v50, %v3565_v21  ;;  %v3547_v27 = vmax.f32 %v3545_v33, %v3546_v52  ;;  %v3745_v14 = vrot.slane %v3744_v35, 4  ;;  %v3751_v6 = vsel %vm3456_vm9, %v3304_v25, -inf  ;;  %v4227_v21 = vpop.f32.mrf.mxu0 }
 0x46e   : > { %v3553_v46 = vrot.slane %v3552_v63, 1  ;;  %v3560_v2 = vrot.slane %v3559_v56, 1  ;;  %v3739_v45 = vmax.f32 %v3737_v55, %v3738_v28  ;;  %v3758_v20 = vsel %vm3456_vm9, %v3306_v30, -inf }
 0x46f   : > { %v3567_v51 = vrot.slane %v3566_v5, 1  ;;  %v3986_v59 = vsel %vm3975_vm13, %v3547_v27, %v3985_v41  ;;  %v3746_v26 = vmax.f32 %v3744_v35, %v3745_v14  ;;  %v3752_v53 = vrot.slane %v3751_v6, 4 }
 0x470   : > { %v3554_v22 = vmax.f32 %v3552_v63, %v3553_v46  ;;  %v3561_v40 = vmax.f32 %v3559_v56, %v3560_v2  ;;  %v3740_v43 = vrot.slane %v3739_v45, 2  ;;  %v3759_v7 = vrot.slane %v3758_v20, 4 }
 0x471   : > { %v3568_v31 = vmax.f32 %v3566_v5, %v3567_v51  ;;  %v3747_v44 = vrot.slane %v3746_v26, 2  ;;  %v3079_v8 = vmax.f32 %v7897_v17, 0.0  ;;  %v3006_v24 = vmul.f32 %v7793_v29, %v2934_v60 }
 0x472   : > { %v3987_v42 = vsel %vm3977_vm14, %v3554_v22, %v3986_v59  ;;  %v3741_v1 = vmax.f32 %v3739_v45, %v3740_v43  ;;  %v3753_v10 = vmax.f32 %v3751_v6, %v3752_v53  ;;  %v3760_v38 = vmax.f32 %v3758_v20, %v3759_v7 }
 0x473   : > { %v3988_v3 = vsel %vm3979_vm15, %v3561_v40, %v3987_v42  ;;  %v3748_v49 = vmax.f32 %v3746_v26, %v3747_v44  ;;  %v3045_v61 = vadd.f32 %v7798_v32, %v3006_v24  ;;  %v2995_v57 = vmul.f32 %v4226_v54, %v7793_v29 }
 0x474   : > { %v3989_v9 = vsel %vm3981_vm1, %v3568_v31, %v3988_v3  ;;  %v3742_v18 = vrot.slane %v3741_v1, 1  ;;  %v3754_v4 = vrot.slane %v3753_v10, 2  ;;  %v3761_v17 = vrot.slane %v3760_v38, 2 }
 0x475   : > { %4041 = vst [vmem:[%s7873_s10 + $0x8] sm:$0xff] %v3989_v9  ;;  %v3011_v39 = vmul.f32 %v4242_v36, %v7793_v29  ;;  %v3749_v19 = vrot.slane %v3748_v49, 1  ;;  %v3077_v37 = vmax.f32 %v3045_v61, 0.0  ;;  %v3034_v0 = vadd.f32 %v7798_v32, %v2995_v57 }
 0x476   : > { %v2993_v16 = vmul.f32 %v7793_v29, %v2883_v62  ;;  %v3743_v15 = vmax.f32 %v3741_v1, %v3742_v18  ;;  %v3755_v47 = vmax.f32 %v3753_v10, %v3754_v4  ;;  %v3762_v50 = vmax.f32 %v3760_v38, %v3761_v17 }
 0x477   : > { %v3050_v48 = vadd.f32 %v7798_v32, %v3011_v39  ;;  %v3750_v12 = vmax.f32 %v3748_v49, %v3749_v19  ;;  %v3099_v33 = vmax.f32 %v3077_v37, %v3079_v8  ;;  %v3066_v23 = vmax.f32 %v3034_v0, 0.0 }
 0x478   : > { %v3032_v34 = vadd.f32 %v7798_v32, %v2993_v16  ;;  %v3756_v41 = vrot.slane %v3755_v47, 1  ;;  %v3763_v25 = vrot.slane %v3762_v50, 1  ;;  %v3009_v52 = vmul.f32 %v7793_v29, %v2947_v58 }
 0x479   : > { %v3082_v13 = vmax.f32 %v3050_v48, 0.0  ;;  %v4011_v63 = vsel %vm3969_vm10, %v3750_v12, %v3743_v15  ;;  %v3307_v56 = vcombine.high %v3099_v33, %v3099_v33  ;;  %v3314_v55 = vrot.slane %v3099_v33, %v7807_v11 }
 0x47a   : > { %v3064_v5 = vmax.f32 %v3032_v34, 0.0  ;;  %v3757_v30 = vmax.f32 %v3755_v47, %v3756_v41  ;;  %v3764_v28 = vmax.f32 %v3762_v50, %v3763_v25  ;;  %v3048_v35 = vadd.f32 %v7798_v32, %v3009_v52 }
 0x47b   : > { %v2996_v27 = vmul.f32 %v4227_v21, %v7793_v29  ;;  %v3321_v46 = vrot.slane %v3307_v56, %v7807_v11  ;;  %v3322_v2 = vcombine.high %v3314_v55, %v3314_v55  ;;  %v3765_v14 = vsel %vm3456_vm9, %v3314_v55, -inf }
 0x47c   : > { %v3092_v51 = vmax.f32 %v3064_v5, %v3066_v23  ;;  %v4012_v45 = vsel %vm3971_vm11, %v3757_v30, %v4011_v63  ;;  %v3766_v6 = vrot.slane %v3765_v14, 4  ;;  %v3080_v20 = vmax.f32 %v3048_v35, 0.0 }
 0x47d   : > { %v7936_v60 = vadd.f32 %v7798_v32, %v2996_v27  ;;  %v3323_v54 = vcombine.high %v3321_v46, %v3321_v46  ;;  %v3772_v22 = vsel %vm3456_vm9, %v3322_v2, -inf  ;;  %v3779_v40 = vsel %vm3456_vm9, %v3321_v46, -inf }
 0x47e   : > { %v4013_v59 = vsel %vm3973_vm12, %v3764_v28, %v4012_v45  ;;  %v3767_v26 = vmax.f32 %v3765_v14, %v3766_v6  ;;  %v3773_v31 = vrot.slane %v3772_v22, 4  ;;  %v3780_v43 = vrot.slane %v3779_v40, 4 }
 0x47f   : > { %v3188_v53 = vcombine.high %v3092_v51, %v3092_v51  ;;  %v3786_v7 = vsel %vm3456_vm9, %v3323_v54, -inf  ;;  %v3195_v42 = vrot.slane %v3092_v51, %v7807_v11  ;;  %v3100_v44 = vmax.f32 %v3080_v20, %v3082_v13 }
 0x480   : > { %v3067_v8 = vmax.f32 %v7936_v60, 0.0  ;;  %v3768_v24 = vrot.slane %v3767_v26, 2  ;;  %v3774_v36 = vmax.f32 %v3772_v22, %v3773_v31  ;;  %v3781_v3 = vmax.f32 %v3779_v40, %v3780_v43 }
 0x481   : > { %v3787_v1 = vrot.slane %v3786_v7, 4  ;;  %v3202_v10 = vrot.slane %v3188_v53, %v7807_v11  ;;  %v3203_v38 = vcombine.high %v3195_v42, %v3195_v42  ;;  %v3569_v62 = vsel %vm3456_vm9, %v3195_v42, -inf  ;;  %v2886_v42 = vpop.f32.mrf.mxu0 }
 0x482   : > { %v3324_v9 = vcombine.high %v3100_v44, %v3100_v44  ;;  %v3769_v49 = vmax.f32 %v3767_v26, %v3768_v24  ;;  %v3775_v61 = vrot.slane %v3774_v36, 2  ;;  %v3782_v57 = vrot.slane %v3781_v3, 2 }
 0x483   : > { %v3788_v18 = vmax.f32 %v3786_v7, %v3787_v1  ;;  %v3204_v4 = vcombine.high %v3202_v10, %v3202_v10  ;;  %v3570_v17 = vrot.slane %v3569_v62, 4  ;;  %v3576_v39 = vsel %vm3456_vm9, %v3203_v38, -inf  ;;  %v4243_v7 = vpop.f32.mrf.mxu1 }
 0x484   : > { %v3583_v19 = vsel %vm3456_vm9, %v3202_v10, -inf  ;;  %v3770_v37 = vrot.slane %v3769_v49, 1  ;;  %v3776_v0 = vmax.f32 %v3774_v36, %v3775_v61  ;;  %v3783_v16 = vmax.f32 %v3781_v3, %v3782_v57 }
 0x485   : > { %v3789_v58 = vrot.slane %v3788_v18, 2  ;;  %v3571_v15 = vmax.f32 %v3569_v62, %v3570_v17  ;;  %v3577_v47 = vrot.slane %v3576_v39, 4  ;;  %v3584_v50 = vrot.slane %v3583_v19, 4 }
 0x486   : > { %v3590_v48 = vsel %vm3456_vm9, %v3204_v4, -inf  ;;  %v3771_v12 = vmax.f32 %v3769_v49, %v3770_v37  ;;  %v3777_v33 = vrot.slane %v3776_v0, 1  ;;  %v3784_v23 = vrot.slane %v3783_v16, 1  ;;  %v2950_v37 = vpop.f32.mrf.mxu1 }
 0x487   : > { %v3790_v34 = vmax.f32 %v3788_v18, %v3789_v58  ;;  %v3572_v21 = vrot.slane %v3571_v15, 2  ;;  %v3578_v41 = vmax.f32 %v3576_v39, %v3577_v47  ;;  %v3585_v25 = vmax.f32 %v3583_v19, %v3584_v50 }
 0x488   : > { %v3591_v13 = vrot.slane %v3590_v48, 4  ;;  %v3778_v52 = vmax.f32 %v3776_v0, %v3777_v33  ;;  %v3785_v63 = vmax.f32 %v3783_v16, %v3784_v23  ;;  %v4014_v55 = vsel %vm3975_vm13, %v3771_v12, %v4013_v59 }
 0x489   : > { %v3791_v56 = vrot.slane %v3790_v34, 1  ;;  %v3573_v5 = vmax.f32 %v3571_v15, %v3572_v21  ;;  %v3579_v30 = vrot.slane %v3578_v41, 2  ;;  %v3586_v28 = vrot.slane %v3585_v25, 2 }
 0x48a   : > { %v3592_v35 = vmax.f32 %v3590_v48, %v3591_v13  ;;  %v4015_v46 = vsel %vm3977_vm14, %v3778_v52, %v4014_v55  ;;  %v3331_v2 = vrot.slane %v3100_v44, %v7807_v11  ;;  %v3338_v14 = vrot.slane %v3324_v9, %v7807_v11 }
 0x48b   : > { %v3792_v27 = vmax.f32 %v3790_v34, %v3791_v56  ;;  %v4016_v51 = vsel %vm3979_vm15, %v3785_v63, %v4015_v46  ;;  %v3574_v45 = vrot.slane %v3573_v5, 1  ;;  %v3580_v6 = vmax.f32 %v3578_v41, %v3579_v30 }
 0x48c   : > { %v3587_v20 = vmax.f32 %v3585_v25, %v3586_v28  ;;  %v3593_v22 = vrot.slane %v3592_v35, 2  ;;  %v3339_v40 = vcombine.high %v3331_v2, %v3331_v2  ;;  %v3340_v59 = vcombine.high %v3338_v14, %v3338_v14  ;;  %v4230_v9 = vpop.f32.mrf.mxu0 }
 0x48d   : > { %v4017_v54 = vsel %vm3981_vm1, %v3792_v27, %v4016_v51  ;;  %v3575_v26 = vmax.f32 %v3573_v5, %v3574_v45  ;;  %v3581_v31 = vrot.slane %v3580_v6, 1  ;;  %v3793_v53 = vsel %vm3456_vm9, %v3331_v2, -inf }
 0x48e   : > { %4045 = vst [vmem:[%s7873_s10 + $0x28] sm:$0xff] %v4017_v54  ;;  %v3588_v43 = vrot.slane %v3587_v20, 1  ;;  %v3594_v44 = vmax.f32 %v3592_v35, %v3593_v22  ;;  %v3794_v24 = vrot.slane %v3793_v53, 4  ;;  %v3800_v36 = vsel %vm3456_vm9, %v3339_v40, -inf  ;;  %v2899_v33 = vpop.f32.mrf.mxu0 }
 0x48f   : > { %v3807_v3 = vsel %vm3456_vm9, %v3338_v14, -inf  ;;  %v3582_v1 = vmax.f32 %v3580_v6, %v3581_v31  ;;  %v3801_v38 = vrot.slane %v3800_v36, 4  ;;  %v3814_v57 = vsel %vm3456_vm9, %v3340_v59, -inf }
 0x490   : > { %v3589_v10 = vmax.f32 %v3587_v20, %v3588_v43  ;;  %v3808_v62 = vrot.slane %v3807_v3, 4  ;;  %v3595_v49 = vrot.slane %v3594_v44, 1  ;;  %v3795_v61 = vmax.f32 %v3793_v53, %v3794_v24  ;;  %v4231_v2 = vpop.f32.mrf.mxu0 }
 0x491   : > { %v3012_v18 = vmul.f32 %v4243_v7, %v7793_v29  ;;  %v3990_v4 = vsel %vm3969_vm10, %v3582_v1, %v3575_v26  ;;  %v3802_v17 = vmax.f32 %v3800_v36, %v3801_v38  ;;  %v3815_v19 = vrot.slane %v3814_v57, 4 }
 0x492   : > { %v3809_v39 = vmax.f32 %v3807_v3, %v3808_v62  ;;  %v3596_v0 = vmax.f32 %v3594_v44, %v3595_v49  ;;  %v3991_v16 = vsel %vm3971_vm11, %v3589_v10, %v3990_v4  ;;  %v3796_v58 = vrot.slane %v3795_v61, 2 }
 0x493   : > { %v3051_v15 = vadd.f32 %v7798_v32, %v3012_v18  ;;  %v3803_v47 = vrot.slane %v3802_v17, 2  ;;  %v3816_v48 = vmax.f32 %v3814_v57, %v3815_v19  ;;  %v2994_v12 = vmul.f32 %v7793_v29, %v2886_v42 }
 0x494   : > { %v3810_v50 = vrot.slane %v3809_v39, 2  ;;  %v3797_v23 = vmax.f32 %v3795_v61, %v3796_v58  ;;  %v7966_v21 = vsel %vm3973_vm12, %v3596_v0, %v3991_v16  ;;  %v3010_v41 = vmul.f32 %v7793_v29, %v2950_v37 }
 0x495   : > { %v3083_v34 = vmax.f32 %v3051_v15, 0.0  ;;  %v3804_v25 = vmax.f32 %v3802_v17, %v3803_v47  ;;  %v3817_v52 = vrot.slane %v3816_v48, 2  ;;  %v3033_v63 = vadd.f32 %v7798_v32, %v2994_v12 }
 0x496   : > { %v3811_v13 = vmax.f32 %v3809_v39, %v3810_v50  ;;  %v3798_v56 = vrot.slane %v3797_v23, 1  ;;  %v3049_v55 = vadd.f32 %v7798_v32, %v3010_v41  ;;  %v2999_v5 = vmul.f32 %v4230_v9, %v7793_v29 }
 0x497   : > { %v2997_v30 = vmul.f32 %v7793_v29, %v2899_v33  ;;  %v3805_v28 = vrot.slane %v3804_v25, 1  ;;  %v3818_v27 = vmax.f32 %v3816_v48, %v3817_v52  ;;  %v3065_v46 = vmax.f32 %v3033_v63, 0.0 }
 0x498   : > { %v3812_v35 = vrot.slane %v3811_v13, 1  ;;  %v3799_v14 = vmax.f32 %v3797_v23, %v3798_v56  ;;  %v3081_v51 = vmax.f32 %v3049_v55, 0.0  ;;  %v3038_v45 = vadd.f32 %v7798_v32, %v2999_v5 }
 0x499   : > { %v3036_v6 = vadd.f32 %v7798_v32, %v2997_v30  ;;  %v3806_v20 = vmax.f32 %v3804_v25, %v3805_v28  ;;  %v3819_v22 = vrot.slane %v3818_v27, 1  ;;  %v3093_v40 = vmax.f32 %v3065_v46, %v3067_v8 }
 0x49a   : > { %v3813_v54 = vmax.f32 %v3811_v13, %v3812_v35  ;;  %v3101_v59 = vmax.f32 %v3081_v51, %v3083_v34  ;;  %v3070_v26 = vmax.f32 %v3038_v45, 0.0  ;;  %v7978_v43 = vmul.f32 %v4231_v2, %v7793_v29 }
 0x49b   : > { %v3068_v31 = vmax.f32 %v3036_v6, 0.0  ;;  %v3820_v53 = vmax.f32 %v3818_v27, %v3819_v22  ;;  %v4018_v7 = vsel %vm3969_vm10, %v3806_v20, %v3799_v14  ;;  %v3205_v42 = vcombine.high %v3093_v40, %v3093_v40 }
 0x49c   : > { %v3212_v44 = vrot.slane %v3093_v40, %v7807_v11  ;;  %v4019_v32 = vsel %vm3971_vm11, %v3813_v54, %v4018_v7  ;;  %v3341_v24 = vcombine.high %v3101_v59, %v3101_v59  ;;  %v3348_v36 = vrot.slane %v3101_v59, %v7807_v11 }
 0x49d   : > { %v7984_v3 = vmax.f32 %v3068_v31, %v3070_v26  ;;  %v3219_v60 = vrot.slane %v3205_v42, %v7807_v11  ;;  %v4020_v29 = vsel %vm3973_vm12, %v3820_v53, %v4019_v32 }
 0x49e   : > { %v3220_v8 = vcombine.high %v3212_v44, %v3212_v44  ;;  %v3597_v1 = vsel %vm3456_vm9, %v3212_v44, -inf  ;;  %v3355_v38 = vrot.slane %v3341_v24, %v7807_v11  ;;  %v3356_v62 = vcombine.high %v3348_v36, %v3348_v36  ;;  %v4246_v44 = vpop.f32.mrf.mxu1 }
 0x49f   : > { %v3598_v10 = vrot.slane %v3597_v1, 4  ;;  %v3821_v9 = vsel %vm3456_vm9, %v3348_v36, -inf  ;;  %v3221_v49 = vcombine.high %v3219_v60, %v3219_v60  ;;  %v3611_v57 = vsel %vm3456_vm9, %v3219_v60, -inf }
 0x4a0   : > { %v3604_v61 = vsel %vm3456_vm9, %v3220_v8, -inf  ;;  %v3822_v18 = vrot.slane %v3821_v9, 4  ;;  %v3612_v39 = vrot.slane %v3611_v57, 4  ;;  %v3357_v19 = vcombine.high %v3355_v38, %v3355_v38 }
 0x4a1   : > { %v3599_v4 = vmax.f32 %v3597_v1, %v3598_v10  ;;  %v3605_v17 = vrot.slane %v3604_v61, 4  ;;  %v3618_v37 = vsel %vm3456_vm9, %v3221_v49, -inf  ;;  %v3828_v16 = vsel %vm3456_vm9, %v3356_v62, -inf }
 0x4a2   : > { %v3823_v0 = vmax.f32 %v3821_v9, %v3822_v18  ;;  %v3835_v58 = vsel %vm3456_vm9, %v3355_v38, -inf  ;;  %v3613_v50 = vmax.f32 %v3611_v57, %v3612_v39  ;;  %v3619_v48 = vrot.slane %v3618_v37, 4 }
 0x4a3   : > { %v3600_v15 = vrot.slane %v3599_v4, 2  ;;  %v3606_v47 = vmax.f32 %v3604_v61, %v3605_v17  ;;  %v3829_v33 = vrot.slane %v3828_v16, 4  ;;  %v3836_v23 = vrot.slane %v3835_v58, 4 }
 0x4a4   : > { %v3824_v12 = vrot.slane %v3823_v0, 2  ;;  %v3842_v34 = vsel %vm3456_vm9, %v3357_v19, -inf  ;;  %v3614_v13 = vrot.slane %v3613_v50, 2  ;;  %v3620_v52 = vmax.f32 %v3618_v37, %v3619_v48 }
 0x4a5   : > { %v3601_v41 = vmax.f32 %v3599_v4, %v3600_v15  ;;  %v3607_v25 = vrot.slane %v3606_v47, 2  ;;  %v3830_v56 = vmax.f32 %v3828_v16, %v3829_v33  ;;  %v3837_v55 = vmax.f32 %v3835_v58, %v3836_v23  ;;  %v2963_v4 = vpop.f32.mrf.mxu1  ;;  %v4370_v33 = vld [vmem:[%s8116_s3] ss:$0 sm:$0xff] }
 0x4a6   : > { %v3825_v63 = vmax.f32 %v3823_v0, %v3824_v12  ;;  %v3843_v5 = vrot.slane %v3842_v34, 4  ;;  %v3615_v35 = vmax.f32 %v3613_v50, %v3614_v13  ;;  %v3621_v27 = vrot.slane %v3620_v52, 2 }
 0x4a7   : > { %v3602_v30 = vrot.slane %v3601_v41, 1  ;;  %v3608_v28 = vmax.f32 %v3606_v47, %v3607_v25  ;;  %v3831_v2 = vrot.slane %v3830_v56, 2  ;;  %v3838_v14 = vrot.slane %v3837_v55, 2  ;;  %v4247_v13 = vpop.f32.mrf.mxu1 }
 0x4a8   : > { %v3826_v46 = vrot.slane %v3825_v63, 1  ;;  %v3844_v51 = vmax.f32 %v3842_v34, %v3843_v5  ;;  %v3616_v20 = vrot.slane %v3615_v35, 1  ;;  %v3622_v54 = vmax.f32 %v3620_v52, %v3621_v27  ;;  %v4371_v34 = vld [vmem:[%s8115_s2] ss:$0 sm:$0xff] }
 0x4a9   : > { %v3603_v45 = vmax.f32 %v3601_v41, %v3602_v30  ;;  %v3609_v6 = vrot.slane %v3608_v28, 1  ;;  %v3832_v40 = vmax.f32 %v3830_v56, %v3831_v2  ;;  %v3839_v59 = vmax.f32 %v3837_v55, %v3838_v14 }
 0x4aa   : > { %v3827_v22 = vmax.f32 %v3825_v63, %v3826_v46  ;;  %v3845_v26 = vrot.slane %v3844_v51, 2  ;;  %v3617_v53 = vmax.f32 %v3615_v35, %v3616_v20  ;;  %v3623_v7 = vrot.slane %v3622_v54, 1 }
 0x4ab   : > { %v3610_v31 = vmax.f32 %v3608_v28, %v3609_v6  ;;  %v3993_v42 = vsel %vm3975_vm13, %v3603_v45, %v7966_v21  ;;  %v3833_v32 = vrot.slane %v3832_v40, 1  ;;  %v3840_v24 = vrot.slane %v3839_v59, 1  ;;  %v2966_v6 = vpop.f32.mrf.mxu1 }
 0x4ac   : > { %v3846_v36 = vmax.f32 %v3844_v51, %v3845_v26  ;;  %v4021_v60 = vsel %vm3975_vm13, %v3827_v22, %v4020_v29  ;;  %v3624_v8 = vmax.f32 %v3622_v54, %v3623_v7  ;;  %v3222_v10 = vcombine.high %v7984_v3, %v7984_v3 }
 0x4ad   : > { %v3994_v1 = vsel %vm3977_vm14, %v3610_v31, %v3993_v42  ;;  %v3229_v38 = vrot.slane %v7984_v3, %v7807_v11  ;;  %v3834_v9 = vmax.f32 %v3832_v40, %v3833_v32  ;;  %v3841_v21 = vmax.f32 %v3839_v59, %v3840_v24  ;;  %v2902_v3 = vpop.f32.mrf.mxu0 }
 0x4ae   : > { %v3995_v62 = vsel %vm3979_vm15, %v3617_v53, %v3994_v1  ;;  %v3847_v49 = vrot.slane %v3846_v36, 1  ;;  %v3236_v57 = vrot.slane %v3222_v10, %v7807_v11  ;;  %v3039_v23 = vadd.f32 %v4370_v33, %v7978_v43 }
 0x4af   : > { %v3996_v61 = vsel %vm3981_vm1, %v3624_v8, %v3995_v62  ;;  %v3237_v18 = vcombine.high %v3229_v38, %v3229_v38  ;;  %v3625_v29 = vsel %vm3456_vm9, %v3229_v38, -inf  ;;  %v4022_v39 = vsel %vm3977_vm14, %v3834_v9, %v4021_v60 }
 0x4b0   : > { %4042 = vst [vmem:[%s7873_s10 + $0x10] sm:$0xff] %v3996_v61  ;;  %v3848_v17 = vmax.f32 %v3846_v36, %v3847_v49  ;;  %v3626_v19 = vrot.slane %v3625_v29, 4  ;;  %v4023_v37 = vsel %vm3979_vm15, %v3841_v21, %v4022_v39  ;;  %v3238_v0 = vcombine.high %v3236_v57, %v3236_v57 }
 0x4b1   : > { %v3632_v16 = vsel %vm3456_vm9, %v3237_v18, -inf  ;;  %v3639_v58 = vsel %vm3456_vm9, %v3236_v57, -inf  ;;  %v3015_v41 = vmul.f32 %v4371_v34, %v4246_v44  ;;  %v2998_v25 = vmul.f32 %v4371_v34, %v2902_v3 }
 0x4b2   : > { %v4024_v15 = vsel %vm3981_vm1, %v3848_v17, %v4023_v37  ;;  %v3627_v47 = vmax.f32 %v3625_v29, %v3626_v19  ;;  %v3633_v50 = vrot.slane %v3632_v16, 4  ;;  %v3640_v48 = vrot.slane %v3639_v58, 4 }
 0x4b3   : > { %4046 = vst [vmem:[%s7873_s10 + $0x30] sm:$0xff] %v4024_v15  ;;  %v3646_v12 = vsel %vm3456_vm9, %v3238_v0, -inf  ;;  %v3054_v5 = vadd.f32 %v4370_v33, %v3015_v41  ;;  %v3037_v30 = vadd.f32 %v4370_v33, %v2998_v25  ;;  %v3013_v28 = vmul.f32 %v4371_v34, %v2963_v4 }
 0x4b4   : > { %v3628_v52 = vrot.slane %v3627_v47, 2  ;;  %v3634_v63 = vmax.f32 %v3632_v16, %v3633_v50  ;;  %v3641_v56 = vmax.f32 %v3639_v58, %v3640_v48  ;;  %v3647_v55 = vrot.slane %v3646_v12, 4 }
 0x4b5   : > { %v3071_v14 = vmax.f32 %v3039_v23, 0.0  ;;  %v3069_v43 = vmax.f32 %v3037_v30, 0.0  ;;  %v3052_v51 = vadd.f32 %v4370_v33, %v3013_v28  ;;  %v3016_v45 = vmul.f32 %v4371_v34, %v4247_v13 }
 0x4b6   : > { %v3629_v35 = vmax.f32 %v3627_v47, %v3628_v52  ;;  %v3635_v27 = vrot.slane %v3634_v63, 2  ;;  %v3642_v46 = vrot.slane %v3641_v56, 2  ;;  %v3648_v2 = vmax.f32 %v3646_v12, %v3647_v55 }
 0x4b7   : > { %v3086_v59 = vmax.f32 %v3054_v5, 0.0  ;;  %v3095_v26 = vmax.f32 %v3069_v43, %v3071_v14  ;;  %v3084_v31 = vmax.f32 %v3052_v51, 0.0  ;;  %v3014_v44 = vmul.f32 %v4371_v34, %v2966_v6 }
 0x4b8   : > { %v3630_v20 = vrot.slane %v3629_v35, 1  ;;  %v3636_v54 = vmax.f32 %v3634_v63, %v3635_v27  ;;  %v3643_v22 = vmax.f32 %v3641_v56, %v3642_v46  ;;  %v3649_v40 = vrot.slane %v3648_v2, 2 }
 0x4b9   : > { %v3239_v32 = vcombine.high %v3095_v26, %v3095_v26  ;;  %v3246_v24 = vrot.slane %v3095_v26, %v7807_v11  ;;  %v3102_v36 = vmax.f32 %v3084_v31, %v3086_v59  ;;  %v8025_v60 = vadd.f32 %v4370_v33, %v3016_v45 }
 0x4ba   : > { %v3637_v53 = vrot.slane %v3636_v54, 1  ;;  %v3644_v7 = vrot.slane %v3643_v22, 1  ;;  %v3650_v42 = vmax.f32 %v3648_v2, %v3649_v40  ;;  %v3631_v8 = vmax.f32 %v3629_v35, %v3630_v20 }
 0x4bb   : > { %v3253_v62 = vrot.slane %v3239_v32, %v7807_v11  ;;  %v3254_v9 = vcombine.high %v3246_v24, %v3246_v24  ;;  %v3653_v21 = vsel %vm3456_vm9, %v3246_v24, -inf  ;;  %v3358_v49 = vcombine.high %v3102_v36, %v3102_v36 }
 0x4bc   : > { %v3638_v1 = vmax.f32 %v3636_v54, %v3637_v53  ;;  %v3645_v10 = vmax.f32 %v3643_v22, %v3644_v7  ;;  %v3651_v38 = vrot.slane %v3650_v42, 1  ;;  %v3654_v57 = vrot.slane %v3653_v21, 4 }
 0x4bd   : > { %v3365_v18 = vrot.slane %v3102_v36, %v7807_v11  ;;  %v3053_v29 = vadd.f32 %v4370_v33, %v3014_v44  ;;  %v3255_v17 = vcombine.high %v3253_v62, %v3253_v62  ;;  %v3660_v39 = vsel %vm3456_vm9, %v3254_v9, -inf }
 0x4be   : > { %v3997_v61 = vsel %vm3969_vm10, %v3638_v1, %v3631_v8  ;;  %v3652_v4 = vmax.f32 %v3650_v42, %v3651_v38  ;;  %v3667_v19 = vsel %vm3456_vm9, %v3253_v62, -inf  ;;  %v3655_v37 = vmax.f32 %v3653_v21, %v3654_v57 }
 0x4bf   : > { %v3998_v3 = vsel %vm3971_vm11, %v3645_v10, %v3997_v61  ;;  %v3661_v0 = vrot.slane %v3660_v39, 4  ;;  %v3668_v16 = vrot.slane %v3667_v19, 4  ;;  %v3674_v58 = vsel %vm3456_vm9, %v3255_v17, -inf }
 0x4c0   : > { %v3372_v15 = vrot.slane %v3358_v49, %v7807_v11  ;;  %v3373_v47 = vcombine.high %v3365_v18, %v3365_v18  ;;  %v3849_v50 = vsel %vm3456_vm9, %v3365_v18, -inf  ;;  %v3656_v48 = vrot.slane %v3655_v37, 2 }
 0x4c1   : > { %v3662_v12 = vmax.f32 %v3660_v39, %v3661_v0  ;;  %v3669_v33 = vmax.f32 %v3667_v19, %v3668_v16  ;;  %v3675_v23 = vrot.slane %v3674_v58, 4  ;;  %v3850_v41 = vrot.slane %v3849_v50, 4 }
 0x4c2   : > { %v3374_v34 = vcombine.high %v3372_v15, %v3372_v15  ;;  %v3856_v25 = vsel %vm3456_vm9, %v3373_v47, -inf  ;;  %v3863_v13 = vsel %vm3456_vm9, %v3372_v15, -inf  ;;  %v3657_v52 = vmax.f32 %v3655_v37, %v3656_v48 }
 0x4c3   : > { %v3663_v63 = vrot.slane %v3662_v12, 2  ;;  %v3670_v56 = vrot.slane %v3669_v33, 2  ;;  %v3676_v55 = vmax.f32 %v3674_v58, %v3675_v23  ;;  %v3851_v5 = vmax.f32 %v3849_v50, %v3850_v41 }
 0x4c4   : > { %v3857_v30 = vrot.slane %v3856_v25, 4  ;;  %v3864_v28 = vrot.slane %v3863_v13, 4  ;;  %v3870_v35 = vsel %vm3456_vm9, %v3374_v34, -inf  ;;  %v3658_v27 = vrot.slane %v3657_v52, 1 }
 0x4c5   : > { %v3664_v46 = vmax.f32 %v3662_v12, %v3663_v63  ;;  %v3671_v2 = vmax.f32 %v3669_v33, %v3670_v56  ;;  %v3677_v14 = vrot.slane %v3676_v55, 2  ;;  %v3999_v43 = vsel %vm3973_vm12, %v3652_v4, %v3998_v3 }
 0x4c6   : > { %v3858_v51 = vmax.f32 %v3856_v25, %v3857_v30  ;;  %v3865_v45 = vmax.f32 %v3863_v13, %v3864_v28  ;;  %v3871_v6 = vrot.slane %v3870_v35, 4  ;;  %v3659_v20 = vmax.f32 %v3657_v52, %v3658_v27 }
 0x4c7   : > { %v3665_v54 = vrot.slane %v3664_v46, 1  ;;  %v3672_v22 = vrot.slane %v3671_v2, 1  ;;  %v3678_v40 = vmax.f32 %v3676_v55, %v3677_v14  ;;  %v3852_v59 = vrot.slane %v3851_v5, 2 }
 0x4c8   : > { %v3859_v26 = vrot.slane %v3858_v51, 2  ;;  %v3866_v31 = vrot.slane %v3865_v45, 2  ;;  %v3872_v53 = vmax.f32 %v3870_v35, %v3871_v6  ;;  %v4000_v32 = vsel %vm3975_vm13, %v3659_v20, %v3999_v43 }
 0x4c9   : > { %v3666_v7 = vmax.f32 %v3664_v46, %v3665_v54  ;;  %v3673_v42 = vmax.f32 %v3671_v2, %v3672_v22  ;;  %v3679_v44 = vrot.slane %v3678_v40, 1  ;;  %v3087_v1 = vmax.f32 %v8025_v60, 0.0 }
 0x4ca   : > { %v3860_v24 = vmax.f32 %v3858_v51, %v3859_v26  ;;  %v3085_v10 = vmax.f32 %v3053_v29, 0.0  ;;  %v3853_v62 = vmax.f32 %v3851_v5, %v3852_v59  ;;  %v3873_v9 = vrot.slane %v3872_v53, 2 }
 0x4cb   : > { %v3680_v36 = vmax.f32 %v3678_v40, %v3679_v44  ;;  %v4001_v8 = vsel %vm3977_vm14, %v3666_v7, %v4000_v32  ;;  %v3867_v49 = vmax.f32 %v3865_v45, %v3866_v31 }
 0x4cc   : > { %v4002_v38 = vsel %vm3979_vm15, %v3673_v42, %v4001_v8  ;;  %v3103_v61 = vmax.f32 %v3085_v10, %v3087_v1  ;;  %v3861_v57 = vrot.slane %v3860_v24, 1  ;;  %v3854_v17 = vrot.slane %v3853_v62, 1 }
 0x4cd   : > { %v4003_v21 = vsel %vm3981_vm1, %v3680_v36, %v4002_v38  ;;  %v3874_v39 = vmax.f32 %v3872_v53, %v3873_v9  ;;  %v3868_v19 = vrot.slane %v3867_v49, 1 }
 0x4ce   : > { %4043 = vst [vmem:[%s7873_s10 + $0x18] sm:$0xff] %v4003_v21  ;;  %v3375_v18 = vcombine.high %v3103_v61, %v3103_v61  ;;  %v3382_v4 = vrot.slane %v3103_v61, %v7807_v11  ;;  %v3862_v29 = vmax.f32 %v3860_v24, %v3861_v57  ;;  %v3855_v47 = vmax.f32 %v3853_v62, %v3854_v17 }
 0x4cf   : > { %v3875_v50 = vrot.slane %v3874_v39, 1  ;;  %v3869_v33 = vmax.f32 %v3867_v49, %v3868_v19 }
 0x4d0   : > { %v3389_v3 = vrot.slane %v3375_v18, %v7807_v11  ;;  %v3390_v60 = vcombine.high %v3382_v4, %v3382_v4  ;;  %v3877_v37 = vsel %vm3456_vm9, %v3382_v4, -inf  ;;  %v4025_v11 = vsel %vm3969_vm10, %v3862_v29, %v3855_v47 }
 0x4d1   : > { %v3878_v16 = vrot.slane %v3877_v37, 4  ;;  %v3876_v63 = vmax.f32 %v3874_v39, %v3875_v50  ;;  %v4026_v30 = vsel %vm3971_vm11, %v3869_v33, %v4025_v11 }
 0x4d2   : > { %v3391_v0 = vcombine.high %v3389_v3, %v3389_v3  ;;  %v3884_v58 = vsel %vm3456_vm9, %v3390_v60, -inf  ;;  %v3891_v15 = vsel %vm3456_vm9, %v3389_v3, -inf }
 0x4d3   : > { %v3885_v48 = vrot.slane %v3884_v58, 4  ;;  %v3892_v12 = vrot.slane %v3891_v15, 4  ;;  %v3879_v23 = vmax.f32 %v3877_v37, %v3878_v16  ;;  %v4027_v45 = vsel %vm3973_vm12, %v3876_v63, %v4026_v30 }
 0x4d4   : > { %v3898_v34 = vsel %vm3456_vm9, %v3391_v0, -inf }
 0x4d5   : > { %v3886_v41 = vmax.f32 %v3884_v58, %v3885_v48  ;;  %v3893_v25 = vmax.f32 %v3891_v15, %v3892_v12  ;;  %v3899_v13 = vrot.slane %v3898_v34, 4  ;;  %v3880_v52 = vrot.slane %v3879_v23, 2 }
 0x4d7   : > { %v3887_v56 = vrot.slane %v3886_v41, 2  ;;  %v3894_v55 = vrot.slane %v3893_v25, 2  ;;  %v3900_v5 = vmax.f32 %v3898_v34, %v3899_v13  ;;  %v3881_v28 = vmax.f32 %v3879_v23, %v3880_v52 }
 0x4d9   : > { %v3888_v35 = vmax.f32 %v3886_v41, %v3887_v56  ;;  %v3895_v27 = vmax.f32 %v3893_v25, %v3894_v55  ;;  %v3901_v46 = vrot.slane %v3900_v5, 2  ;;  %v3882_v2 = vrot.slane %v3881_v28, 1 }
 0x4db   : > { %v3889_v14 = vrot.slane %v3888_v35, 1  ;;  %v3896_v43 = vrot.slane %v3895_v27, 1  ;;  %v3902_v51 = vmax.f32 %v3900_v5, %v3901_v46  ;;  %v3883_v6 = vmax.f32 %v3881_v28, %v3882_v2 }
 0x4dd   : > { %v3890_v20 = vmax.f32 %v3888_v35, %v3889_v14  ;;  %v3897_v54 = vmax.f32 %v3895_v27, %v3896_v43  ;;  %v3903_v22 = vrot.slane %v3902_v51, 1  ;;  %v4028_v40 = vsel %vm3975_vm13, %v3883_v6, %v4027_v45 }
 0x4df   : > { %v3904_v59 = vmax.f32 %v3902_v51, %v3903_v22  ;;  %v4029_v26 = vsel %vm3977_vm14, %v3890_v20, %v4028_v40 }
 0x4e0   : > { %v4030_v31 = vsel %vm3979_vm15, %v3897_v54, %v4029_v26 }
 0x4e1   : > { %v4031_v53 = vsel %vm3981_vm1, %v3904_v59, %v4030_v31 }
 0x4e2   : > { %4047 = vst [vmem:[%s7873_s10 + $0x38] sm:$0xff] %v4031_v53 }
 0x4e3   : > { %4385 = shalt.err (!%p4382_p3)
}
 0x4e4   : > { %s4386_s8 = scalar_lea.hbm %s8063_s29, 1024  ;;  %s4390_s14 = scalar_lea.hbm %s8117_s4, 2048 }
 0x4e5   : > { %p4387_p4 = scmp.ne.s32.totalorder %s8063_s29, %s4386_s8  ;;  %p4391_p9 = scmp.lt.s32.totalorder %s8063_s29, %s8117_s4 }
 0x4e6   : > { %p4392_p10 = scmp.lt.s32.totalorder %s4390_s14, %s4386_s8 }
 0x4e7   : > { %p4388_p7 = pnand %p4387_p4, %p4517_p5 }
 0x4e8   : > { %p4393_p11 = por %p4392_p10, %p4391_p9 }
 0x4e9   : > { %p4389_p8 = pneg %p4388_p7 }
 0x4eb   : > { %p4394_p12 = pnand %p4393_p11, %p4389_p8 }
 0x4ed   : > { %4397 = shalt.err (!%p4394_p12)
}
 0x4ee   : > { %s4453_s12 = smov 128  }
 0x4ef   : > { %4264 = dma.vmem_to_hbm [thread:$0]  (%p4517_p5), %s8066_s13, 1024, %s8063_s29, %s8072_s19, %s4453_s12, %s4453_s12, %s4436_s7  }
 0x4f0 PF: > { %p4270_p13 = scmp.ge.s32.totalorder %s4432_s18, 2  ;;  %s4077_s22 = sand.u32 1, %s4420_s15  }
 0x4f1   : > { %s4078_s23 = scalar_lea.sflag [#allocation3], %s4077_s22 }
 0x4f2   : > { %p4267_p0 = pnand %p4270_p13, %p4521_p6 }
 0x4f4   : > { %p4268_p1 = pneg %p4267_p0 }
 0x4f6   : > { %4415 = dma.done.wait (%p4268_p1), %s4078_s23, 1024  }
 0x4f7   : > { %4417 = vsyncadd (%p4268_p1), %s4078_s23, 4294966272  ;;  %p14_p2 = scmp.ge.s32.totalorder %s4504_s21, 4   ;;  %s9318_s15 = smov %s4424_s16 }
 0x4f8   : > { %s9319_s16 = smov %s4428_s17  ;;  %s9320_s17 = smov %s4515_s24 }
 0x4f9   : > { %s9321_s18 = smov %s4504_s21  ;;  %16 = sbr.rel (!%p14_p2) target bundleno = 3 (0x3), region = 71 }
 0x4fe   :  { %4083 = vsyncpa [#allocation3], 1 }
 0x4ff   :  { %4085 = vsyncpa [#allocation3 + $0x1], 1 }

</bundles_post_ra>
